<compile_context>
chip_gen: v7x
topology: tpu7x:2x2x1
jax: 0.10.0
libtpu: 0.0.40
codegen_flags: <defaults>
</compile_context>

<pallas_src>
import jax
import jax.numpy as jnp
from jax import lax
from jax.experimental import pallas as pl
from jax.experimental.pallas import tpu as pltpu

EPS = 1e-8  # asteroid gLN epsilon

# ----------------------------- configuration --------------------------------
N_SRC = 2          # number of sources
T = 32             # number of time frames / samples
SPK_EMBED = 16     # SpeakerStack embed_dim
SPK_BLOCKS = 3     # SpeakerStack n_blocks (n_repeats = 1)
SEP_EMBED = 16     # SeparationStack embed_dim
SEP_BLOCKS = 2     # SeparationStack n_blocks
SEP_REPEATS = 2    # SeparationStack n_repeats
KSIZE = 3          # conv kernel size
SPK_VEC_CHAN = SPK_EMBED * N_SRC   # spk_vec_dim * n_src
BATCH = 2
KMEANS_ITERS = 10

SPK_DILS = tuple(2 ** i for i in range(SPK_BLOCKS))                              # (1, 2, 4)
SEP_DILS = tuple(2 ** i for _ in range(SEP_REPEATS) for i in range(SEP_BLOCKS))  # (1, 2, 1, 2)
SEP_NB = len(SEP_DILS)
SPK_MAXPAD = max((KSIZE - 1) * d // 2 for d in SPK_DILS)                          # 4
SEP_MAXPAD = max((KSIZE - 1) * d // 2 for d in SEP_DILS)                          # 2


# ========================= in-kernel building blocks =========================

def _prelu(y, a):
    """PReLU, single shared parameter broadcast to [E, 1]."""
    return jnp.maximum(y, 0.0) + a * jnp.minimum(y, 0.0)


def _gln(y, g, bt):
    """asteroid gLN over (channel, time).  mean and mean-of-squares share one
    lane reduction over the stacked [y ; y*y] value, then two tiny sublane
    reductions; multiply-by-rsqrt rides the EUP slot."""
    c = y.shape[0]
    n = float(c * y.shape[1])
    both = jnp.concatenate([y, y * y], axis=0)              # [2C, T]
    col = jnp.sum(both, axis=1, keepdims=True)               # [2C, 1]
    mean = jnp.sum(col[:c], axis=0, keepdims=True) / n       # [1, 1]
    mean_sq = jnp.sum(col[c:], axis=0, keepdims=True) / n    # [1, 1]
    var = jnp.maximum(mean_sq - mean * mean, 0.0)
    return (y - mean) * lax.rsqrt(var + EPS) * g + bt


def _shifted(x, off, lane):
    """out[:, t] = x[:, t + off] with zero fill outside [0, T).
    Register-only: XLU roll + VPU select (no VMEM scratch round trip)."""
    if off == 0:
        return x
    r = pltpu.roll(x, shift=(-off) % T, axis=1)
    if off > 0:
        return jnp.where(lane < T - off, r, 0.0)
    return jnp.where(lane >= -off, r, 0.0)


def _conv_first(xrow, w0, dil, maxpad):
    """Block 0 (C_in == 1): x is pre-padded on the host, taps are static
    lane-offset slices, no matmul needed.  xrow: [1, T+2*maxpad], w0: [E, K]."""
    pad = (KSIZE - 1) * dil // 2
    acc = jnp.zeros((w0.shape[0], T), jnp.float32)
    for k in range(KSIZE):
        s = maxpad - pad + k * dil
        acc = acc + w0[:, k:k + 1] * xrow[:, s:s + T]
    return acc


def _conv_im2col(cur, w2, dil, lane):
    """Blocks >= 1: build the K shifted taps in registers, concatenate along
    sublanes and hit the MXU once: [C_out, K*C] @ [K*C, T]."""
    pad = (KSIZE - 1) * dil // 2
    taps = [_shifted(cur, k * dil - pad, lane) for k in range(KSIZE)]
    cat = jnp.concatenate(taps, axis=0)                       # [K*C, T]
    return jnp.dot(w2, cat, preferred_element_type=jnp.float32)


def _kmeans_tail(embs):
    """Fixed-iteration Lloyd k-means over the n_src*T normalized embedding
    columns of one batch element, entirely in registers.
    embs: list of N_SRC arrays [E, T].  Returns centers [N_SRC, E].
    # TODO(synk): third-party kmeans (random init / convergence tolerance)
    # semantics are not exactly reproducible; fixed-iteration Lloyd used here.
    """
    e_dim = embs[0].shape[0]
    ones_row = jnp.ones((1, T), jnp.float32)
    augs = [jnp.concatenate([es, ones_row], axis=0) for es in embs]   # [E+1, T]

    # Deterministic init: first k data points = source-0 frames 0..k-1,
    # gathered with a selection matmul (avoids an in-kernel transpose).
    row = lax.broadcasted_iota(jnp.int32, (N_SRC, T), 0)
    colv = lax.broadcasted_iota(jnp.int32, (N_SRC, T), 1)
    sel = (row == colv).astype(jnp.float32)                           # [K, T]
    c0 = lax.dot_general(sel, embs[0], (((1,), (1,)), ((), ())),
                         preferred_element_type=jnp.float32)          # [K, E]

    def step(_, cent):
        c2 = jnp.sum(cent * cent, axis=1, keepdims=True)              # [K, 1]
        sums = jnp.zeros((N_SRC, e_dim + 1), jnp.float32)             # last col = counts
        for s in range(N_SRC):
            dots = jnp.dot(cent, embs[s],
                           preferred_element_type=jnp.float32)        # [K, T]
            # N_SRC == 2: argmin(dist) with ties -> cluster 0.
            score0 = 2.0 * dots[0:1, :] - c2[0:1, :]
            score1 = 2.0 * dots[1:2, :] - c2[1:2, :]
            m0 = (score0 >= score1).astype(jnp.float32)               # [1, T]
            onehot = jnp.concatenate([m0, 1.0 - m0], axis=0)          # [K, T]
            sums = sums + lax.dot_general(
                onehot, augs[s], (((1,), (1,)), ((), ())),
                preferred_element_type=jnp.float32)                    # [K, E+1]
        counts = sums[:, e_dim:e_dim + 1]                              # [K, 1]
        means = sums[:, :e_dim] / jnp.maximum(counts, 1.0)
        return jnp.where(counts > 0.0, means, cent)

    return lax.fori_loop(0, KMEANS_ITERS, step, c0, unroll=True)


# ============================ fused Pallas kernels ===========================

def _speaker_stack_kernel(x_ref, w0_ref, wr_ref, vec_ref, mh_ref, cent_ref):
    """Whole SpeakerStack (+ fused Lloyd k-means) for one batch element.

    x_ref : [1, 1, T + 2*SPK_MAXPAD]   pre-padded input
    w0_ref: [E, K]                     block-0 conv weight (C_in = 1)
    wr_ref: [NB-1, E, K*E]             im2col conv weights of the other blocks
    vec_ref: [NB, E, 4]                packed (b, g, bt, a)
    mh_ref: [n_src*E, E+1]             packed mask_net weight|bias
    cent_ref: [1, n_src, E]            k-means speaker centers
    """
    lane = lax.broadcasted_iota(jnp.int32, (1, T), 1)
    xrow = x_ref[0]                                       # [1, Tp]
    w0 = w0_ref[...]                                      # [E, K]

    out = None
    for i, dil in enumerate(SPK_DILS):
        if i == 0:
            acc = _conv_first(xrow, w0, dil, SPK_MAXPAD)
        else:
            acc = _conv_im2col(out, wr_ref[i - 1], dil, lane)
        vi = vec_ref[i]                                   # [E, 4] = b, g, bt, a
        y = _gln(_prelu(acc + vi[:, 0:1], vi[:, 3:4]), vi[:, 1:2], vi[:, 2:3])
        out = y if i == 0 else out + y

    # mask_net (1x1 conv) + per-source L2 normalization over the embed dim.
    mh = mh_ref[...]
    emb = (jnp.dot(mh[:, :SPK_EMBED], out, preferred_element_type=jnp.float32)
           + mh[:, SPK_EMBED:SPK_EMBED + 1])              # [n_src*E, T]
    embs = []
    for s in range(N_SRC):
        es = emb[s * SPK_EMBED:(s + 1) * SPK_EMBED, :]    # [E, T]
        # NOTE: PyTorch reference divides by sqrt(sum) with no eps; a tiny
        # guard is added to avoid NaN on an exactly-zero column.
        inv = lax.rsqrt(jnp.sum(es * es, axis=0, keepdims=True) + 1e-12)
        embs.append(es * inv)

    # Fused k-means tail: embeddings never leave VMEM/vregs, only the centers
    # are written to HBM.
    cent_ref[0] = _kmeans_tail(embs).astype(cent_ref.dtype)


def _sep_stack_kernel(x_ref, spk_ref, w0_ref, wr_ref, vec_ref, fw_ref, lh_ref,
                      o_ref):
    """Whole SeparationStack for one batch element.

    x_ref : [1, 1, T + 2*SEP_MAXPAD]   pre-padded input
    spk_ref: [1, SPK_VEC_CHAN, 1]      speaker vector (column)
    w0_ref: [E, K];  wr_ref: [NB-1, E, K*E]
    vec_ref: [NB, E, 6]                packed (b, bm, ba, g, bt, a)
    fw_ref : [NB*2*E, SPK_VEC_CHAN]    packed FiLM (mul|add) weights
    lh_ref : [NB, n_src, E+1]          packed per-layer head weight|bias
    o_ref  : [1, NB*n_src, T]          all per-layer mask heads (single store)
    """
    lane = lax.broadcasted_iota(jnp.int32, (1, T), 1)
    xrow = x_ref[0]                                       # [1, Tp]
    spk_col = spk_ref[0]                                  # [SPK_VEC_CHAN, 1]
    w0 = w0_ref[...]

    # All FiLM projections at once: one MXU pass, constant over time.
    film = jnp.dot(fw_ref[...], spk_col,
                   preferred_element_type=jnp.float32)    # [NB*2*E, 1]

    out = None
    heads = []
    for i, dil in enumerate(SEP_DILS):
        if i == 0:
            acc = _conv_first(xrow, w0, dil, SEP_MAXPAD)
        else:
            acc = _conv_im2col(out, wr_ref[i - 1], dil, lane)
        vi = vec_ref[i]                                   # [E, 6] = b,bm,ba,g,bt,a
        mul = film[(2 * i) * SEP_EMBED:(2 * i + 1) * SEP_EMBED, :] + vi[:, 1:2]
        add = film[(2 * i + 1) * SEP_EMBED:(2 * i + 2) * SEP_EMBED, :] + vi[:, 2:3]
        y = _gln(_prelu(mul * (acc + vi[:, 0:1]) + add, vi[:, 5:6]),
                 vi[:, 3:4], vi[:, 4:5])
        out = y if i == 0 else out + y
        lh = lh_ref[i]                                    # [n_src, E+1]
        heads.append(jnp.dot(lh[:, :SEP_EMBED], out,
                             preferred_element_type=jnp.float32)
                     + lh[:, SEP_EMBED:SEP_EMBED + 1])    # [n_src, T]

    # Single store of all per-layer heads.
    o_ref[0] = jnp.concatenate(heads, axis=0).astype(o_ref.dtype)  # [NB*n_src, T]


# ============================ host-side wrappers =============================

def _pack_conv_w(w):
    """[K, C_out, C_in] -> [C_out, K*C_in], matching the tap-concat ordering."""
    k, cout, cin = w.shape
    return jnp.transpose(w, (1, 0, 2)).reshape(cout, k * cin)


def _pack_first_w(w):
    """[K, C_out, 1] -> [C_out, K]."""
    return jnp.transpose(w[:, :, 0], (1, 0))


def speaker_stack_centers(x3, params):
    """x3: [B, 1, T] -> k-means speaker centers [B, n_src, E] (one pallas_call)."""
    B = x3.shape[0]
    Tp = T + 2 * SPK_MAXPAD
    x_pad = jnp.pad(x3, ((0, 0), (0, 0), (SPK_MAXPAD, SPK_MAXPAD)))

    blocks = params["blocks"]
    w0 = _pack_first_w(blocks[0]["w"])                            # [E, K]
    wr = jnp.stack([_pack_conv_w(b["w"]) for b in blocks[1:]])    # [NB-1, E, K*E]
    vecs = jnp.stack([
        jnp.concatenate([b["b"], b["g"], b["bt"],
                         jnp.broadcast_to(b["a"], (SPK_EMBED, 1))], axis=1)
        for b in blocks])                                         # [NB, E, 4]
    mh = jnp.concatenate([params["mask_w"], params["mask_b"]], axis=1)  # [2E*nsrc? -> n_src*E, E+1]

    return pl.pallas_call(
        _speaker_stack_kernel,
        out_shape=jax.ShapeDtypeStruct((B, N_SRC, SPK_EMBED), jnp.float32),
        grid=(B,),
        in_specs=[
            pl.BlockSpec((1, 1, Tp), lambda bi: (bi, 0, 0)),
            pl.BlockSpec(w0.shape, lambda bi: (0, 0)),
            pl.BlockSpec(wr.shape, lambda bi: (0, 0, 0)),
            pl.BlockSpec(vecs.shape, lambda bi: (0, 0, 0)),
            pl.BlockSpec(mh.shape, lambda bi: (0, 0)),
        ],
        out_specs=pl.BlockSpec((1, N_SRC, SPK_EMBED), lambda bi: (bi, 0, 0)),
        compiler_params=pltpu.CompilerParams(dimension_semantics=("parallel",)),
    )(x_pad, w0, wr, vecs, mh)


def separation_stack(x3, spk_flat, params):
    """x3: [B,1,T]; spk_flat: [B, n_src*spk_vec] -> list of [B, n_src, T]."""
    B = x3.shape[0]
    Tp = T + 2 * SEP_MAXPAD
    x_pad = jnp.pad(x3, ((0, 0), (0, 0), (SEP_MAXPAD, SEP_MAXPAD)))
    spk_col = spk_flat[:, :, None]                                # [B, 32, 1]

    blocks = params["blocks"]
    nb = len(blocks)
    w0 = _pack_first_w(blocks[0]["w"])                            # [E, K]
    wr = jnp.stack([_pack_conv_w(b["w"]) for b in blocks[1:]])    # [NB-1, E, K*E]
    vecs = jnp.stack([
        jnp.concatenate([b["b"], b["bm"], b["ba"], b["g"], b["bt"],
                         jnp.broadcast_to(b["a"], (SEP_EMBED, 1))], axis=1)
        for b in blocks])                                         # [NB, E, 6]
    fw = jnp.concatenate(
        [jnp.stack([b["wm"], b["wa"]]) for b in blocks], axis=0
    ).reshape(nb * 2 * SEP_EMBED, SPK_VEC_CHAN)                   # [NB*2*E, 32]
    lh = jnp.stack([jnp.concatenate([b["lin_w"], b["lin_b"]], axis=1)
                    for b in blocks])                             # [NB, n_src, E+1]

    out = pl.pallas_call(
        _sep_stack_kernel,
        out_shape=jax.ShapeDtypeStruct((B, nb * N_SRC, T), jnp.float32),
        grid=(B,),
        in_specs=[
            pl.BlockSpec((1, 1, Tp), lambda bi: (bi, 0, 0)),
            pl.BlockSpec((1, SPK_VEC_CHAN, 1), lambda bi: (bi, 0, 0)),
            pl.BlockSpec(w0.shape, lambda bi: (0, 0)),
            pl.BlockSpec(wr.shape, lambda bi: (0, 0, 0)),
            pl.BlockSpec(vecs.shape, lambda bi: (0, 0, 0)),
            pl.BlockSpec(fw.shape, lambda bi: (0, 0)),
            pl.BlockSpec(lh.shape, lambda bi: (0, 0, 0)),
        ],
        out_specs=pl.BlockSpec((1, nb * N_SRC, T), lambda bi: (bi, 0, 0)),
        compiler_params=pltpu.CompilerParams(dimension_semantics=("parallel",)),
    )(x_pad, spk_col, w0, wr, vecs, fw, lh)

    out = out.reshape(B, nb, N_SRC, T)
    return [out[:, i] for i in range(nb)]


def wavesplit_forward(x, params):
    """x: [B, T] audio -> list of per-layer masks [B, n_src, T]."""
    x3 = x[:, None, :]                                   # [B, 1, T]
    centers = speaker_stack_centers(x3, params["spk"])   # [B, n_src, E]
    spk_flat = centers.reshape(centers.shape[0], N_SRC * SPK_EMBED)
    return separation_stack(x3, spk_flat, params["sep"])


# ============================ parameter init =================================

def kaiming_uniform(key, shape, fan_in):
    bound = (6.0 / fan_in) ** 0.5
    return jax.random.uniform(key, shape, jnp.float32, -bound, bound)


def bias_uniform(key, shape, fan_in):
    bound = 1.0 / (fan_in ** 0.5)
    return jax.random.uniform(key, shape, jnp.float32, -bound, bound)


def init_params(key):
    keys = iter(jax.random.split(key, 512))
    params = {"spk": {"blocks": []}, "sep": {"blocks": []}}

    # SpeakerStack blocks
    for xb in range(SPK_BLOCKS):
        in_chan = 1 if xb == 0 else SPK_EMBED
        fan_in = in_chan * KSIZE
        params["spk"]["blocks"].append(dict(
            w=kaiming_uniform(next(keys), (KSIZE, SPK_EMBED, in_chan), fan_in),
            b=bias_uniform(next(keys), (SPK_EMBED, 1), fan_in),
            a=jnp.full((1, 1), 0.25, jnp.float32),
            g=jnp.ones((SPK_EMBED, 1), jnp.float32),
            bt=jnp.zeros((SPK_EMBED, 1), jnp.float32),
        ))
    params["spk"]["mask_w"] = kaiming_uniform(next(keys),
                                              (N_SRC * SPK_EMBED, SPK_EMBED),
                                              SPK_EMBED)
    params["spk"]["mask_b"] = bias_uniform(next(keys),
                                           (N_SRC * SPK_EMBED, 1), SPK_EMBED)

    # SeparationStack blocks
    for r in range(SEP_REPEATS):
        for xb in range(SEP_BLOCKS):
            in_chan = 1 if (r == 0 and xb == 0) else SEP_EMBED
            fan_in = in_chan * KSIZE
            params["sep"]["blocks"].append(dict(
                w=kaiming_uniform(next(keys), (KSIZE, SEP_EMBED, in_chan), fan_in),
                b=bias_uniform(next(keys), (SEP_EMBED, 1), fan_in),
                wm=kaiming_uniform(next(keys), (SEP_EMBED, SPK_VEC_CHAN), SPK_VEC_CHAN),
                bm=bias_uniform(next(keys), (SEP_EMBED, 1), SPK_VEC_CHAN),
                wa=kaiming_uniform(next(keys), (SEP_EMBED, SPK_VEC_CHAN), SPK_VEC_CHAN),
                ba=bias_uniform(next(keys), (SEP_EMBED, 1), SPK_VEC_CHAN),
                a=jnp.full((1, 1), 0.25, jnp.float32),
                g=jnp.ones((SEP_EMBED, 1), jnp.float32),
                bt=jnp.zeros((SEP_EMBED, 1), jnp.float32),
                lin_w=kaiming_uniform(next(keys), (N_SRC, SEP_EMBED), SEP_EMBED),
                lin_b=bias_uniform(next(keys), (N_SRC, 1), SEP_EMBED),
            ))
    return params


# ================================= main ======================================

if __name__ == "__main__":
    root = jax.random.PRNGKey(0)
    k_param, k_x = jax.random.split(root)
    params = init_params(k_param)
    x = jax.random.normal(k_x, (BATCH, T), jnp.float32)

    fwd = jax.jit(wavesplit_forward)
    outputs = jax.block_until_ready(fwd(x, params))

    assert len(outputs) == SEP_REPEATS * SEP_BLOCKS
    for o in outputs:
        assert o.shape == (BATCH, N_SRC, T), o.shape
        assert bool(jnp.all(jnp.isfinite(o)))
    print("KERNEL_OK")
</pallas_src>

<mosaic_0001>
module attributes {stable_mosaic.version = 11 : i64} {
  func.func @_speaker_stack_kernel(%arg0: i32, %arg1: memref<1x1x40xf32, #tpu.memory_space<vmem>>, %arg2: memref<16x3xf32, #tpu.memory_space<vmem>>, %arg3: memref<2x16x48xf32, #tpu.memory_space<vmem>>, %arg4: memref<3x16x4xf32, #tpu.memory_space<vmem>>, %arg5: memref<32x17xf32, #tpu.memory_space<vmem>>, %arg6: memref<1x2x16xf32, #tpu.memory_space<vmem>>) attributes {dimension_semantics = [#tpu.dimension_semantics<parallel>], iteration_bounds = array<i64: 2>, scalar_prefetch = 0 : i64, scratch_operands = 0 : i64, tpu.core_type = #tpu.core_type<tc>, window_params = [{transform_indices = @transform_0, window_bounds = array<i64: 1, 1, 40>}, {pipeline_mode = #tpu.pipeline_mode<synchronous>, transform_indices = @transform_1, window_bounds = array<i64: 16, 3>}, {pipeline_mode = #tpu.pipeline_mode<synchronous>, transform_indices = @transform_2, window_bounds = array<i64: 2, 16, 48>}, {pipeline_mode = #tpu.pipeline_mode<synchronous>, transform_indices = @transform_3, window_bounds = array<i64: 3, 16, 4>}, {pipeline_mode = #tpu.pipeline_mode<synchronous>, transform_indices = @transform_4, window_bounds = array<i64: 32, 17>}, {transform_indices = @transform_5, window_bounds = array<i64: 1, 2, 16>}]} {
    %0 = tpu.iota {dimensions = array<i32: 1>} : vector<1x32xi32>
    %c0 = arith.constant 0 : index
    %c0_0 = arith.constant 0 : index
    %c0_1 = arith.constant 0 : index
    %1 = vector.load %arg1[%c0, %c0_0, %c0_1] : memref<1x1x40xf32, #tpu.memory_space<vmem>>, vector<1x1x40xf32>
    %2 = vector.shape_cast %1 : vector<1x1x40xf32> to vector<1x40xf32>
    %c0_2 = arith.constant 0 : index
    %c0_3 = arith.constant 0 : index
    %3 = vector.load %arg2[%c0_2, %c0_3] : memref<16x3xf32, #tpu.memory_space<vmem>>, vector<16x3xf32>
    %cst = arith.constant 0.000000e+00 : f32
    %4 = vector.broadcast %cst : f32 to vector<16x32xf32>
    %5 = vector.extract_strided_slice %3 {offsets = [0, 0], sizes = [16, 1], strides = [1, 1]} : vector<16x3xf32> to vector<16x1xf32>
    %6 = vector.extract_strided_slice %2 {offsets = [0, 3], sizes = [1, 32], strides = [1, 1]} : vector<1x40xf32> to vector<1x32xf32>
    %7 = vector.broadcast %5 : vector<16x1xf32> to vector<16x32xf32>
    %8 = vector.broadcast %6 : vector<1x32xf32> to vector<16x32xf32>
    %9 = arith.mulf %7, %8 : vector<16x32xf32>
    %10 = arith.addf %4, %9 : vector<16x32xf32>
    %11 = vector.extract_strided_slice %3 {offsets = [0, 1], sizes = [16, 1], strides = [1, 1]} : vector<16x3xf32> to vector<16x1xf32>
    %12 = vector.extract_strided_slice %2 {offsets = [0, 4], sizes = [1, 32], strides = [1, 1]} : vector<1x40xf32> to vector<1x32xf32>
    %13 = vector.broadcast %11 : vector<16x1xf32> to vector<16x32xf32>
    %14 = vector.broadcast %12 : vector<1x32xf32> to vector<16x32xf32>
    %15 = arith.mulf %13, %14 : vector<16x32xf32>
    %16 = arith.addf %10, %15 : vector<16x32xf32>
    %17 = vector.extract_strided_slice %3 {offsets = [0, 2], sizes = [16, 1], strides = [1, 1]} : vector<16x3xf32> to vector<16x1xf32>
    %18 = vector.extract_strided_slice %2 {offsets = [0, 5], sizes = [1, 32], strides = [1, 1]} : vector<1x40xf32> to vector<1x32xf32>
    %19 = vector.broadcast %17 : vector<16x1xf32> to vector<16x32xf32>
    %20 = vector.broadcast %18 : vector<1x32xf32> to vector<16x32xf32>
    %21 = arith.mulf %19, %20 : vector<16x32xf32>
    %22 = arith.addf %16, %21 : vector<16x32xf32>
    %c0_4 = arith.constant 0 : index
    %c0_5 = arith.constant 0 : index
    %c0_6 = arith.constant 0 : index
    %23 = vector.load %arg4[%c0_4, %c0_5, %c0_6] : memref<3x16x4xf32, #tpu.memory_space<vmem>>, vector<1x16x4xf32>
    %24 = vector.shape_cast %23 : vector<1x16x4xf32> to vector<16x4xf32>
    %25 = vector.extract_strided_slice %24 {offsets = [0, 0], sizes = [16, 1], strides = [1, 1]} : vector<16x4xf32> to vector<16x1xf32>
    %26 = vector.broadcast %25 : vector<16x1xf32> to vector<16x32xf32>
    %27 = arith.addf %22, %26 : vector<16x32xf32>
    %28 = vector.extract_strided_slice %24 {offsets = [0, 3], sizes = [16, 1], strides = [1, 1]} : vector<16x4xf32> to vector<16x1xf32>
    %cst_7 = arith.constant 0.000000e+00 : f32
    %29 = vector.broadcast %cst_7 : f32 to vector<16x32xf32>
    %30 = arith.maximumf %27, %29 : vector<16x32xf32>
    %cst_8 = arith.constant 0.000000e+00 : f32
    %31 = vector.broadcast %cst_8 : f32 to vector<16x32xf32>
    %32 = arith.minimumf %27, %31 : vector<16x32xf32>
    %33 = vector.broadcast %28 : vector<16x1xf32> to vector<16x32xf32>
    %34 = arith.mulf %33, %32 : vector<16x32xf32>
    %35 = arith.addf %30, %34 : vector<16x32xf32>
    %36 = vector.extract_strided_slice %24 {offsets = [0, 1], sizes = [16, 1], strides = [1, 1]} : vector<16x4xf32> to vector<16x1xf32>
    %37 = vector.extract_strided_slice %24 {offsets = [0, 2], sizes = [16, 1], strides = [1, 1]} : vector<16x4xf32> to vector<16x1xf32>
    %38 = arith.mulf %35, %35 : vector<16x32xf32>
    %39 = tpu.concatenate %35, %38 in 0 : vector<16x32xf32>, vector<16x32xf32> -> vector<32x32xf32>
    %cst_9 = arith.constant dense<0.000000e+00> : vector<32xf32>
    %40 = vector.multi_reduction <add>, %39, %cst_9 [1] : vector<32x32xf32> to vector<32xf32>
    %41 = vector.shape_cast %40 : vector<32xf32> to vector<32x1xf32>
    %42 = vector.extract_strided_slice %41 {offsets = [0, 0], sizes = [16, 1], strides = [1, 1]} : vector<32x1xf32> to vector<16x1xf32>
    %cst_10 = arith.constant dense<0.000000e+00> : vector<1xf32>
    %43 = vector.multi_reduction <add>, %42, %cst_10 [0] : vector<16x1xf32> to vector<1xf32>
    %44 = vector.shape_cast %43 : vector<1xf32> to vector<1x1xf32>
    %cst_11 = arith.constant 5.120000e+02 : f32
    %45 = vector.broadcast %cst_11 : f32 to vector<1x1xf32>
    %46 = arith.divf %44, %45 : vector<1x1xf32>
    %47 = vector.extract_strided_slice %41 {offsets = [16, 0], sizes = [16, 1], strides = [1, 1]} : vector<32x1xf32> to vector<16x1xf32>
    %cst_12 = arith.constant dense<0.000000e+00> : vector<1xf32>
    %48 = vector.multi_reduction <add>, %47, %cst_12 [0] : vector<16x1xf32> to vector<1xf32>
    %49 = vector.shape_cast %48 : vector<1xf32> to vector<1x1xf32>
    %cst_13 = arith.constant 5.120000e+02 : f32
    %50 = vector.broadcast %cst_13 : f32 to vector<1x1xf32>
    %51 = arith.divf %49, %50 : vector<1x1xf32>
    %52 = arith.mulf %46, %46 : vector<1x1xf32>
    %53 = arith.subf %51, %52 : vector<1x1xf32>
    %cst_14 = arith.constant 0.000000e+00 : f32
    %54 = vector.broadcast %cst_14 : f32 to vector<1x1xf32>
    %55 = arith.maximumf %53, %54 : vector<1x1xf32>
    %56 = vector.broadcast %46 : vector<1x1xf32> to vector<16x32xf32>
    %57 = arith.subf %35, %56 : vector<16x32xf32>
    %cst_15 = arith.constant 9.99999993E-9 : f32
    %58 = vector.broadcast %cst_15 : f32 to vector<1x1xf32>
    %59 = arith.addf %55, %58 : vector<1x1xf32>
    %60 = math.rsqrt %59 : vector<1x1xf32>
    %61 = vector.broadcast %60 : vector<1x1xf32> to vector<16x32xf32>
    %62 = arith.mulf %57, %61 : vector<16x32xf32>
    %63 = vector.broadcast %36 : vector<16x1xf32> to vector<16x32xf32>
    %64 = arith.mulf %62, %63 : vector<16x32xf32>
    %65 = vector.broadcast %37 : vector<16x1xf32> to vector<16x32xf32>
    %66 = arith.addf %64, %65 : vector<16x32xf32>
    %c0_16 = arith.constant 0 : index
    %c0_17 = arith.constant 0 : index
    %c0_18 = arith.constant 0 : index
    %67 = vector.load %arg3[%c0_16, %c0_17, %c0_18] : memref<2x16x48xf32, #tpu.memory_space<vmem>>, vector<1x16x48xf32>
    %68 = vector.shape_cast %67 : vector<1x16x48xf32> to vector<16x48xf32>
    %c2_i32 = arith.constant 2 : i32
    %69 = tpu.dynamic_rotate %66 by %c2_i32 dim 1 : vector<16x32xf32>, i32 -> vector<16x32xf32>
    %c2_i32_19 = arith.constant 2 : i32
    %70 = vector.broadcast %c2_i32_19 : i32 to vector<1x32xi32>
    %71 = arith.cmpi sge, %0, %70 : vector<1x32xi32>
    %cst_20 = arith.constant 0.000000e+00 : f32
    %72 = vector.shape_cast %71 : vector<1x32xi1> to vector<1x32xi1>
    %73 = vector.broadcast %72 : vector<1x32xi1> to vector<16x32xi1>
    %74 = vector.broadcast %cst_20 : f32 to vector<16x32xf32>
    %75 = arith.select %73, %69, %74 : vector<16x32xi1>, vector<16x32xf32>
    %c30_i32 = arith.constant 30 : i32
    %76 = tpu.dynamic_rotate %66 by %c30_i32 dim 1 : vector<16x32xf32>, i32 -> vector<16x32xf32>
    %c30_i32_21 = arith.constant 30 : i32
    %77 = vector.broadcast %c30_i32_21 : i32 to vector<1x32xi32>
    %78 = arith.cmpi slt, %0, %77 : vector<1x32xi32>
    %cst_22 = arith.constant 0.000000e+00 : f32
    %79 = vector.shape_cast %78 : vector<1x32xi1> to vector<1x32xi1>
    %80 = vector.broadcast %79 : vector<1x32xi1> to vector<16x32xi1>
    %81 = vector.broadcast %cst_22 : f32 to vector<16x32xf32>
    %82 = arith.select %80, %76, %81 : vector<16x32xi1>, vector<16x32xf32>
    %83 = tpu.concatenate %75, %66, %82 in 0 : vector<16x32xf32>, vector<16x32xf32>, vector<16x32xf32> -> vector<48x32xf32>
    %cst_23 = arith.constant dense<0.000000e+00> : vector<16x32xf32>
    %84 = tpu.matmul %68, %83, %cst_23 {dimension_numbers = #tpu.dot_dimension_numbers<[1], [0], [0], [1], [0, 0, 1, 1], [], []>} : vector<16x48xf32>, vector<48x32xf32>, vector<16x32xf32> -> vector<16x32xf32>
    %c1 = arith.constant 1 : index
    %c0_24 = arith.constant 0 : index
    %c0_25 = arith.constant 0 : index
    %85 = vector.load %arg4[%c1, %c0_24, %c0_25] : memref<3x16x4xf32, #tpu.memory_space<vmem>>, vector<1x16x4xf32>
    %86 = vector.shape_cast %85 : vector<1x16x4xf32> to vector<16x4xf32>
    %87 = vector.extract_strided_slice %86 {offsets = [0, 0], sizes = [16, 1], strides = [1, 1]} : vector<16x4xf32> to vector<16x1xf32>
    %88 = vector.broadcast %87 : vector<16x1xf32> to vector<16x32xf32>
    %89 = arith.addf %84, %88 : vector<16x32xf32>
    %90 = vector.extract_strided_slice %86 {offsets = [0, 3], sizes = [16, 1], strides = [1, 1]} : vector<16x4xf32> to vector<16x1xf32>
    %cst_26 = arith.constant 0.000000e+00 : f32
    %91 = vector.broadcast %cst_26 : f32 to vector<16x32xf32>
    %92 = arith.maximumf %89, %91 : vector<16x32xf32>
    %cst_27 = arith.constant 0.000000e+00 : f32
    %93 = vector.broadcast %cst_27 : f32 to vector<16x32xf32>
    %94 = arith.minimumf %89, %93 : vector<16x32xf32>
    %95 = vector.broadcast %90 : vector<16x1xf32> to vector<16x32xf32>
    %96 = arith.mulf %95, %94 : vector<16x32xf32>
    %97 = arith.addf %92, %96 : vector<16x32xf32>
    %98 = vector.extract_strided_slice %86 {offsets = [0, 1], sizes = [16, 1], strides = [1, 1]} : vector<16x4xf32> to vector<16x1xf32>
    %99 = vector.extract_strided_slice %86 {offsets = [0, 2], sizes = [16, 1], strides = [1, 1]} : vector<16x4xf32> to vector<16x1xf32>
    %100 = arith.mulf %97, %97 : vector<16x32xf32>
    %101 = tpu.concatenate %97, %100 in 0 : vector<16x32xf32>, vector<16x32xf32> -> vector<32x32xf32>
    %cst_28 = arith.constant dense<0.000000e+00> : vector<32xf32>
    %102 = vector.multi_reduction <add>, %101, %cst_28 [1] : vector<32x32xf32> to vector<32xf32>
    %103 = vector.shape_cast %102 : vector<32xf32> to vector<32x1xf32>
    %104 = vector.extract_strided_slice %103 {offsets = [0, 0], sizes = [16, 1], strides = [1, 1]} : vector<32x1xf32> to vector<16x1xf32>
    %cst_29 = arith.constant dense<0.000000e+00> : vector<1xf32>
    %105 = vector.multi_reduction <add>, %104, %cst_29 [0] : vector<16x1xf32> to vector<1xf32>
    %106 = vector.shape_cast %105 : vector<1xf32> to vector<1x1xf32>
    %cst_30 = arith.constant 5.120000e+02 : f32
    %107 = vector.broadcast %cst_30 : f32 to vector<1x1xf32>
    %108 = arith.divf %106, %107 : vector<1x1xf32>
    %109 = vector.extract_strided_slice %103 {offsets = [16, 0], sizes = [16, 1], strides = [1, 1]} : vector<32x1xf32> to vector<16x1xf32>
    %cst_31 = arith.constant dense<0.000000e+00> : vector<1xf32>
    %110 = vector.multi_reduction <add>, %109, %cst_31 [0] : vector<16x1xf32> to vector<1xf32>
    %111 = vector.shape_cast %110 : vector<1xf32> to vector<1x1xf32>
    %cst_32 = arith.constant 5.120000e+02 : f32
    %112 = vector.broadcast %cst_32 : f32 to vector<1x1xf32>
    %113 = arith.divf %111, %112 : vector<1x1xf32>
    %114 = arith.mulf %108, %108 : vector<1x1xf32>
    %115 = arith.subf %113, %114 : vector<1x1xf32>
    %cst_33 = arith.constant 0.000000e+00 : f32
    %116 = vector.broadcast %cst_33 : f32 to vector<1x1xf32>
    %117 = arith.maximumf %115, %116 : vector<1x1xf32>
    %118 = vector.broadcast %108 : vector<1x1xf32> to vector<16x32xf32>
    %119 = arith.subf %97, %118 : vector<16x32xf32>
    %cst_34 = arith.constant 9.99999993E-9 : f32
    %120 = vector.broadcast %cst_34 : f32 to vector<1x1xf32>
    %121 = arith.addf %117, %120 : vector<1x1xf32>
    %122 = math.rsqrt %121 : vector<1x1xf32>
    %123 = vector.broadcast %122 : vector<1x1xf32> to vector<16x32xf32>
    %124 = arith.mulf %119, %123 : vector<16x32xf32>
    %125 = vector.broadcast %98 : vector<16x1xf32> to vector<16x32xf32>
    %126 = arith.mulf %124, %125 : vector<16x32xf32>
    %127 = vector.broadcast %99 : vector<16x1xf32> to vector<16x32xf32>
    %128 = arith.addf %126, %127 : vector<16x32xf32>
    %129 = arith.addf %66, %128 : vector<16x32xf32>
    %c1_35 = arith.constant 1 : index
    %c0_36 = arith.constant 0 : index
    %c0_37 = arith.constant 0 : index
    %130 = vector.load %arg3[%c1_35, %c0_36, %c0_37] : memref<2x16x48xf32, #tpu.memory_space<vmem>>, vector<1x16x48xf32>
    %131 = vector.shape_cast %130 : vector<1x16x48xf32> to vector<16x48xf32>
    %c4_i32 = arith.constant 4 : i32
    %132 = tpu.dynamic_rotate %129 by %c4_i32 dim 1 : vector<16x32xf32>, i32 -> vector<16x32xf32>
    %c4_i32_38 = arith.constant 4 : i32
    %133 = vector.broadcast %c4_i32_38 : i32 to vector<1x32xi32>
    %134 = arith.cmpi sge, %0, %133 : vector<1x32xi32>
    %cst_39 = arith.constant 0.000000e+00 : f32
    %135 = vector.shape_cast %134 : vector<1x32xi1> to vector<1x32xi1>
    %136 = vector.broadcast %135 : vector<1x32xi1> to vector<16x32xi1>
    %137 = vector.broadcast %cst_39 : f32 to vector<16x32xf32>
    %138 = arith.select %136, %132, %137 : vector<16x32xi1>, vector<16x32xf32>
    %c28_i32 = arith.constant 28 : i32
    %139 = tpu.dynamic_rotate %129 by %c28_i32 dim 1 : vector<16x32xf32>, i32 -> vector<16x32xf32>
    %c28_i32_40 = arith.constant 28 : i32
    %140 = vector.broadcast %c28_i32_40 : i32 to vector<1x32xi32>
    %141 = arith.cmpi slt, %0, %140 : vector<1x32xi32>
    %cst_41 = arith.constant 0.000000e+00 : f32
    %142 = vector.shape_cast %141 : vector<1x32xi1> to vector<1x32xi1>
    %143 = vector.broadcast %142 : vector<1x32xi1> to vector<16x32xi1>
    %144 = vector.broadcast %cst_41 : f32 to vector<16x32xf32>
    %145 = arith.select %143, %139, %144 : vector<16x32xi1>, vector<16x32xf32>
    %146 = tpu.concatenate %138, %129, %145 in 0 : vector<16x32xf32>, vector<16x32xf32>, vector<16x32xf32> -> vector<48x32xf32>
    %cst_42 = arith.constant dense<0.000000e+00> : vector<16x32xf32>
    %147 = tpu.matmul %131, %146, %cst_42 {dimension_numbers = #tpu.dot_dimension_numbers<[1], [0], [0], [1], [0, 0, 1, 1], [], []>} : vector<16x48xf32>, vector<48x32xf32>, vector<16x32xf32> -> vector<16x32xf32>
    %c2 = arith.constant 2 : index
    %c0_43 = arith.constant 0 : index
    %c0_44 = arith.constant 0 : index
    %148 = vector.load %arg4[%c2, %c0_43, %c0_44] : memref<3x16x4xf32, #tpu.memory_space<vmem>>, vector<1x16x4xf32>
    %149 = vector.shape_cast %148 : vector<1x16x4xf32> to vector<16x4xf32>
    %150 = vector.extract_strided_slice %149 {offsets = [0, 0], sizes = [16, 1], strides = [1, 1]} : vector<16x4xf32> to vector<16x1xf32>
    %151 = vector.broadcast %150 : vector<16x1xf32> to vector<16x32xf32>
    %152 = arith.addf %147, %151 : vector<16x32xf32>
    %153 = vector.extract_strided_slice %149 {offsets = [0, 3], sizes = [16, 1], strides = [1, 1]} : vector<16x4xf32> to vector<16x1xf32>
    %cst_45 = arith.constant 0.000000e+00 : f32
    %154 = vector.broadcast %cst_45 : f32 to vector<16x32xf32>
    %155 = arith.maximumf %152, %154 : vector<16x32xf32>
    %cst_46 = arith.constant 0.000000e+00 : f32
    %156 = vector.broadcast %cst_46 : f32 to vector<16x32xf32>
    %157 = arith.minimumf %152, %156 : vector<16x32xf32>
    %158 = vector.broadcast %153 : vector<16x1xf32> to vector<16x32xf32>
    %159 = arith.mulf %158, %157 : vector<16x32xf32>
    %160 = arith.addf %155, %159 : vector<16x32xf32>
    %161 = vector.extract_strided_slice %149 {offsets = [0, 1], sizes = [16, 1], strides = [1, 1]} : vector<16x4xf32> to vector<16x1xf32>
    %162 = vector.extract_strided_slice %149 {offsets = [0, 2], sizes = [16, 1], strides = [1, 1]} : vector<16x4xf32> to vector<16x1xf32>
    %163 = arith.mulf %160, %160 : vector<16x32xf32>
    %164 = tpu.concatenate %160, %163 in 0 : vector<16x32xf32>, vector<16x32xf32> -> vector<32x32xf32>
    %cst_47 = arith.constant dense<0.000000e+00> : vector<32xf32>
    %165 = vector.multi_reduction <add>, %164, %cst_47 [1] : vector<32x32xf32> to vector<32xf32>
    %166 = vector.shape_cast %165 : vector<32xf32> to vector<32x1xf32>
    %167 = vector.extract_strided_slice %166 {offsets = [0, 0], sizes = [16, 1], strides = [1, 1]} : vector<32x1xf32> to vector<16x1xf32>
    %cst_48 = arith.constant dense<0.000000e+00> : vector<1xf32>
    %168 = vector.multi_reduction <add>, %167, %cst_48 [0] : vector<16x1xf32> to vector<1xf32>
    %169 = vector.shape_cast %168 : vector<1xf32> to vector<1x1xf32>
    %cst_49 = arith.constant 5.120000e+02 : f32
    %170 = vector.broadcast %cst_49 : f32 to vector<1x1xf32>
    %171 = arith.divf %169, %170 : vector<1x1xf32>
    %172 = vector.extract_strided_slice %166 {offsets = [16, 0], sizes = [16, 1], strides = [1, 1]} : vector<32x1xf32> to vector<16x1xf32>
    %cst_50 = arith.constant dense<0.000000e+00> : vector<1xf32>
    %173 = vector.multi_reduction <add>, %172, %cst_50 [0] : vector<16x1xf32> to vector<1xf32>
    %174 = vector.shape_cast %173 : vector<1xf32> to vector<1x1xf32>
    %cst_51 = arith.constant 5.120000e+02 : f32
    %175 = vector.broadcast %cst_51 : f32 to vector<1x1xf32>
    %176 = arith.divf %174, %175 : vector<1x1xf32>
    %177 = arith.mulf %171, %171 : vector<1x1xf32>
    %178 = arith.subf %176, %177 : vector<1x1xf32>
    %cst_52 = arith.constant 0.000000e+00 : f32
    %179 = vector.broadcast %cst_52 : f32 to vector<1x1xf32>
    %180 = arith.maximumf %178, %179 : vector<1x1xf32>
    %181 = vector.broadcast %171 : vector<1x1xf32> to vector<16x32xf32>
    %182 = arith.subf %160, %181 : vector<16x32xf32>
    %cst_53 = arith.constant 9.99999993E-9 : f32
    %183 = vector.broadcast %cst_53 : f32 to vector<1x1xf32>
    %184 = arith.addf %180, %183 : vector<1x1xf32>
    %185 = math.rsqrt %184 : vector<1x1xf32>
    %186 = vector.broadcast %185 : vector<1x1xf32> to vector<16x32xf32>
    %187 = arith.mulf %182, %186 : vector<16x32xf32>
    %188 = vector.broadcast %161 : vector<16x1xf32> to vector<16x32xf32>
    %189 = arith.mulf %187, %188 : vector<16x32xf32>
    %190 = vector.broadcast %162 : vector<16x1xf32> to vector<16x32xf32>
    %191 = arith.addf %189, %190 : vector<16x32xf32>
    %192 = arith.addf %129, %191 : vector<16x32xf32>
    %c0_54 = arith.constant 0 : index
    %c0_55 = arith.constant 0 : index
    %193 = vector.load %arg5[%c0_54, %c0_55] : memref<32x17xf32, #tpu.memory_space<vmem>>, vector<32x17xf32>
    %194 = vector.extract_strided_slice %193 {offsets = [0, 0], sizes = [32, 16], strides = [1, 1]} : vector<32x17xf32> to vector<32x16xf32>
    %cst_56 = arith.constant dense<0.000000e+00> : vector<32x32xf32>
    %195 = tpu.matmul %194, %192, %cst_56 {dimension_numbers = #tpu.dot_dimension_numbers<[1], [0], [0], [1], [0, 0, 1, 1], [], []>} : vector<32x16xf32>, vector<16x32xf32>, vector<32x32xf32> -> vector<32x32xf32>
    %196 = vector.extract_strided_slice %193 {offsets = [0, 16], sizes = [32, 1], strides = [1, 1]} : vector<32x17xf32> to vector<32x1xf32>
    %197 = vector.broadcast %196 : vector<32x1xf32> to vector<32x32xf32>
    %198 = arith.addf %195, %197 : vector<32x32xf32>
    %199 = vector.extract_strided_slice %198 {offsets = [0, 0], sizes = [16, 32], strides = [1, 1]} : vector<32x32xf32> to vector<16x32xf32>
    %200 = arith.mulf %199, %199 : vector<16x32xf32>
    %cst_57 = arith.constant dense<0.000000e+00> : vector<32xf32>
    %201 = vector.multi_reduction <add>, %200, %cst_57 [0] : vector<16x32xf32> to vector<32xf32>
    %202 = vector.shape_cast %201 : vector<32xf32> to vector<1x32xf32>
    %cst_58 = arith.constant 9.99999996E-13 : f32
    %203 = vector.broadcast %cst_58 : f32 to vector<1x32xf32>
    %204 = arith.addf %202, %203 : vector<1x32xf32>
    %205 = math.rsqrt %204 : vector<1x32xf32>
    %206 = vector.broadcast %205 : vector<1x32xf32> to vector<16x32xf32>
    %207 = arith.mulf %199, %206 : vector<16x32xf32>
    %208 = vector.extract_strided_slice %198 {offsets = [16, 0], sizes = [16, 32], strides = [1, 1]} : vector<32x32xf32> to vector<16x32xf32>
    %209 = arith.mulf %208, %208 : vector<16x32xf32>
    %cst_59 = arith.constant dense<0.000000e+00> : vector<32xf32>
    %210 = vector.multi_reduction <add>, %209, %cst_59 [0] : vector<16x32xf32> to vector<32xf32>
    %211 = vector.shape_cast %210 : vector<32xf32> to vector<1x32xf32>
    %cst_60 = arith.constant 9.99999996E-13 : f32
    %212 = vector.broadcast %cst_60 : f32 to vector<1x32xf32>
    %213 = arith.addf %211, %212 : vector<1x32xf32>
    %214 = math.rsqrt %213 : vector<1x32xf32>
    %215 = vector.broadcast %214 : vector<1x32xf32> to vector<16x32xf32>
    %216 = arith.mulf %208, %215 : vector<16x32xf32>
    %cst_61 = arith.constant 1.000000e+00 : f32
    %217 = vector.broadcast %cst_61 : f32 to vector<1x32xf32>
    %218 = tpu.concatenate %207, %217 in 0 : vector<16x32xf32>, vector<1x32xf32> -> vector<17x32xf32>
    %219 = tpu.concatenate %216, %217 in 0 : vector<16x32xf32>, vector<1x32xf32> -> vector<17x32xf32>
    %220 = tpu.iota {dimensions = array<i32: 0>} : vector<2x32xi32>
    %221 = tpu.iota {dimensions = array<i32: 1>} : vector<2x32xi32>
    %222 = arith.cmpi eq, %220, %221 : vector<2x32xi32>
    %223 = arith.extui %222 : vector<2x32xi1> to vector<2x32xi32>
    %224 = arith.sitofp %223 : vector<2x32xi32> to vector<2x32xf32>
    %cst_62 = arith.constant dense<0.000000e+00> : vector<2x16xf32>
    %225 = tpu.matmul %224, %207, %cst_62 {dimension_numbers = #tpu.dot_dimension_numbers<[1], [1], [0], [0], [0, 0, 1, 0], [], []>} : vector<2x32xf32>, vector<16x32xf32>, vector<2x16xf32> -> vector<2x16xf32>
    %c0_i32 = arith.constant 0 : i32
    %226 = arith.mulf %225, %225 : vector<2x16xf32>
    %cst_63 = arith.constant dense<0.000000e+00> : vector<2xf32>
    %227 = vector.multi_reduction <add>, %226, %cst_63 [1] : vector<2x16xf32> to vector<2xf32>
    %228 = vector.shape_cast %227 : vector<2xf32> to vector<2x1xf32>
    %cst_64 = arith.constant 0.000000e+00 : f32
    %229 = vector.broadcast %cst_64 : f32 to vector<2x17xf32>
    %cst_65 = arith.constant dense<0.000000e+00> : vector<2x32xf32>
    %230 = tpu.matmul %225, %207, %cst_65 {dimension_numbers = #tpu.dot_dimension_numbers<[1], [0], [0], [1], [0, 0, 1, 1], [], []>} : vector<2x16xf32>, vector<16x32xf32>, vector<2x32xf32> -> vector<2x32xf32>
    %231 = vector.extract_strided_slice %230 {offsets = [0, 0], sizes = [1, 32], strides = [1, 1]} : vector<2x32xf32> to vector<1x32xf32>
    %cst_66 = arith.constant 2.000000e+00 : f32
    %232 = vector.broadcast %cst_66 : f32 to vector<1x32xf32>
    %233 = arith.mulf %232, %231 : vector<1x32xf32>
    %234 = vector.extract_strided_slice %228 {offsets = [0, 0], sizes = [1, 1], strides = [1, 1]} : vector<2x1xf32> to vector<1x1xf32>
    %235 = vector.broadcast %234 : vector<1x1xf32> to vector<1x32xf32>
    %236 = arith.subf %233, %235 : vector<1x32xf32>
    %237 = vector.extract_strided_slice %230 {offsets = [1, 0], sizes = [1, 32], strides = [1, 1]} : vector<2x32xf32> to vector<1x32xf32>
    %cst_67 = arith.constant 2.000000e+00 : f32
    %238 = vector.broadcast %cst_67 : f32 to vector<1x32xf32>
    %239 = arith.mulf %238, %237 : vector<1x32xf32>
    %240 = vector.extract_strided_slice %228 {offsets = [1, 0], sizes = [1, 1], strides = [1, 1]} : vector<2x1xf32> to vector<1x1xf32>
    %241 = vector.broadcast %240 : vector<1x1xf32> to vector<1x32xf32>
    %242 = arith.subf %239, %241 : vector<1x32xf32>
    %243 = arith.cmpf oge, %236, %242 : vector<1x32xf32>
    %244 = arith.extui %243 : vector<1x32xi1> to vector<1x32xi32>
    %245 = arith.sitofp %244 : vector<1x32xi32> to vector<1x32xf32>
    %cst_68 = arith.constant 1.000000e+00 : f32
    %246 = vector.broadcast %cst_68 : f32 to vector<1x32xf32>
    %247 = arith.subf %246, %245 : vector<1x32xf32>
    %248 = tpu.concatenate %245, %247 in 0 : vector<1x32xf32>, vector<1x32xf32> -> vector<2x32xf32>
    %cst_69 = arith.constant dense<0.000000e+00> : vector<2x17xf32>
    %249 = tpu.matmul %248, %218, %cst_69 {dimension_numbers = #tpu.dot_dimension_numbers<[1], [1], [0], [0], [0, 0, 1, 0], [], []>} : vector<2x32xf32>, vector<17x32xf32>, vector<2x17xf32> -> vector<2x17xf32>
    %250 = arith.addf %229, %249 : vector<2x17xf32>
    %cst_70 = arith.constant dense<0.000000e+00> : vector<2x32xf32>
    %251 = tpu.matmul %225, %216, %cst_70 {dimension_numbers = #tpu.dot_dimension_numbers<[1], [0], [0], [1], [0, 0, 1, 1], [], []>} : vector<2x16xf32>, vector<16x32xf32>, vector<2x32xf32> -> vector<2x32xf32>
    %252 = vector.extract_strided_slice %251 {offsets = [0, 0], sizes = [1, 32], strides = [1, 1]} : vector<2x32xf32> to vector<1x32xf32>
    %cst_71 = arith.constant 2.000000e+00 : f32
    %253 = vector.broadcast %cst_71 : f32 to vector<1x32xf32>
    %254 = arith.mulf %253, %252 : vector<1x32xf32>
    %255 = vector.extract_strided_slice %228 {offsets = [0, 0], sizes = [1, 1], strides = [1, 1]} : vector<2x1xf32> to vector<1x1xf32>
    %256 = vector.broadcast %255 : vector<1x1xf32> to vector<1x32xf32>
    %257 = arith.subf %254, %256 : vector<1x32xf32>
    %258 = vector.extract_strided_slice %251 {offsets = [1, 0], sizes = [1, 32], strides = [1, 1]} : vector<2x32xf32> to vector<1x32xf32>
    %cst_72 = arith.constant 2.000000e+00 : f32
    %259 = vector.broadcast %cst_72 : f32 to vector<1x32xf32>
    %260 = arith.mulf %259, %258 : vector<1x32xf32>
    %261 = vector.extract_strided_slice %228 {offsets = [1, 0], sizes = [1, 1], strides = [1, 1]} : vector<2x1xf32> to vector<1x1xf32>
    %262 = vector.broadcast %261 : vector<1x1xf32> to vector<1x32xf32>
    %263 = arith.subf %260, %262 : vector<1x32xf32>
    %264 = arith.cmpf oge, %257, %263 : vector<1x32xf32>
    %265 = arith.extui %264 : vector<1x32xi1> to vector<1x32xi32>
    %266 = arith.sitofp %265 : vector<1x32xi32> to vector<1x32xf32>
    %cst_73 = arith.constant 1.000000e+00 : f32
    %267 = vector.broadcast %cst_73 : f32 to vector<1x32xf32>
    %268 = arith.subf %267, %266 : vector<1x32xf32>
    %269 = tpu.concatenate %266, %268 in 0 : vector<1x32xf32>, vector<1x32xf32> -> vector<2x32xf32>
    %cst_74 = arith.constant dense<0.000000e+00> : vector<2x17xf32>
    %270 = tpu.matmul %269, %219, %cst_74 {dimension_numbers = #tpu.dot_dimension_numbers<[1], [1], [0], [0], [0, 0, 1, 0], [], []>} : vector<2x32xf32>, vector<17x32xf32>, vector<2x17xf32> -> vector<2x17xf32>
    %271 = arith.addf %250, %270 : vector<2x17xf32>
    %272 = vector.extract_strided_slice %271 {offsets = [0, 16], sizes = [2, 1], strides = [1, 1]} : vector<2x17xf32> to vector<2x1xf32>
    %273 = vector.extract_strided_slice %271 {offsets = [0, 0], sizes = [2, 16], strides = [1, 1]} : vector<2x17xf32> to vector<2x16xf32>
    %cst_75 = arith.constant 1.000000e+00 : f32
    %274 = vector.broadcast %cst_75 : f32 to vector<2x1xf32>
    %275 = arith.maximumf %272, %274 : vector<2x1xf32>
    %276 = vector.broadcast %275 : vector<2x1xf32> to vector<2x16xf32>
    %277 = arith.divf %273, %276 : vector<2x16xf32>
    %cst_76 = arith.constant 0.000000e+00 : f32
    %278 = vector.broadcast %cst_76 : f32 to vector<2x1xf32>
    %279 = arith.cmpf ogt, %272, %278 : vector<2x1xf32>
    %280 = vector.shape_cast %279 : vector<2x1xi1> to vector<2x1xi1>
    %281 = vector.broadcast %280 : vector<2x1xi1> to vector<2x16xi1>
    %282 = arith.select %281, %277, %225 : vector<2x16xi1>, vector<2x16xf32>
    %c1_i32 = arith.constant 1 : i32
    %283 = arith.mulf %282, %282 : vector<2x16xf32>
    %cst_77 = arith.constant dense<0.000000e+00> : vector<2xf32>
    %284 = vector.multi_reduction <add>, %283, %cst_77 [1] : vector<2x16xf32> to vector<2xf32>
    %285 = vector.shape_cast %284 : vector<2xf32> to vector<2x1xf32>
    %cst_78 = arith.constant 0.000000e+00 : f32
    %286 = vector.broadcast %cst_78 : f32 to vector<2x17xf32>
    %cst_79 = arith.constant dense<0.000000e+00> : vector<2x32xf32>
    %287 = tpu.matmul %282, %207, %cst_79 {dimension_numbers = #tpu.dot_dimension_numbers<[1], [0], [0], [1], [0, 0, 1, 1], [], []>} : vector<2x16xf32>, vector<16x32xf32>, vector<2x32xf32> -> vector<2x32xf32>
    %288 = vector.extract_strided_slice %287 {offsets = [0, 0], sizes = [1, 32], strides = [1, 1]} : vector<2x32xf32> to vector<1x32xf32>
    %cst_80 = arith.constant 2.000000e+00 : f32
    %289 = vector.broadcast %cst_80 : f32 to vector<1x32xf32>
    %290 = arith.mulf %289, %288 : vector<1x32xf32>
    %291 = vector.extract_strided_slice %285 {offsets = [0, 0], sizes = [1, 1], strides = [1, 1]} : vector<2x1xf32> to vector<1x1xf32>
    %292 = vector.broadcast %291 : vector<1x1xf32> to vector<1x32xf32>
    %293 = arith.subf %290, %292 : vector<1x32xf32>
    %294 = vector.extract_strided_slice %287 {offsets = [1, 0], sizes = [1, 32], strides = [1, 1]} : vector<2x32xf32> to vector<1x32xf32>
    %cst_81 = arith.constant 2.000000e+00 : f32
    %295 = vector.broadcast %cst_81 : f32 to vector<1x32xf32>
    %296 = arith.mulf %295, %294 : vector<1x32xf32>
    %297 = vector.extract_strided_slice %285 {offsets = [1, 0], sizes = [1, 1], strides = [1, 1]} : vector<2x1xf32> to vector<1x1xf32>
    %298 = vector.broadcast %297 : vector<1x1xf32> to vector<1x32xf32>
    %299 = arith.subf %296, %298 : vector<1x32xf32>
    %300 = arith.cmpf oge, %293, %299 : vector<1x32xf32>
    %301 = arith.extui %300 : vector<1x32xi1> to vector<1x32xi32>
    %302 = arith.sitofp %301 : vector<1x32xi32> to vector<1x32xf32>
    %cst_82 = arith.constant 1.000000e+00 : f32
    %303 = vector.broadcast %cst_82 : f32 to vector<1x32xf32>
    %304 = arith.subf %303, %302 : vector<1x32xf32>
    %305 = tpu.concatenate %302, %304 in 0 : vector<1x32xf32>, vector<1x32xf32> -> vector<2x32xf32>
    %cst_83 = arith.constant dense<0.000000e+00> : vector<2x17xf32>
    %306 = tpu.matmul %305, %218, %cst_83 {dimension_numbers = #tpu.dot_dimension_numbers<[1], [1], [0], [0], [0, 0, 1, 0], [], []>} : vector<2x32xf32>, vector<17x32xf32>, vector<2x17xf32> -> vector<2x17xf32>
    %307 = arith.addf %286, %306 : vector<2x17xf32>
    %cst_84 = arith.constant dense<0.000000e+00> : vector<2x32xf32>
    %308 = tpu.matmul %282, %216, %cst_84 {dimension_numbers = #tpu.dot_dimension_numbers<[1], [0], [0], [1], [0, 0, 1, 1], [], []>} : vector<2x16xf32>, vector<16x32xf32>, vector<2x32xf32> -> vector<2x32xf32>
    %309 = vector.extract_strided_slice %308 {offsets = [0, 0], sizes = [1, 32], strides = [1, 1]} : vector<2x32xf32> to vector<1x32xf32>
    %cst_85 = arith.constant 2.000000e+00 : f32
    %310 = vector.broadcast %cst_85 : f32 to vector<1x32xf32>
    %311 = arith.mulf %310, %309 : vector<1x32xf32>
    %312 = vector.extract_strided_slice %285 {offsets = [0, 0], sizes = [1, 1], strides = [1, 1]} : vector<2x1xf32> to vector<1x1xf32>
    %313 = vector.broadcast %312 : vector<1x1xf32> to vector<1x32xf32>
    %314 = arith.subf %311, %313 : vector<1x32xf32>
    %315 = vector.extract_strided_slice %308 {offsets = [1, 0], sizes = [1, 32], strides = [1, 1]} : vector<2x32xf32> to vector<1x32xf32>
    %cst_86 = arith.constant 2.000000e+00 : f32
    %316 = vector.broadcast %cst_86 : f32 to vector<1x32xf32>
    %317 = arith.mulf %316, %315 : vector<1x32xf32>
    %318 = vector.extract_strided_slice %285 {offsets = [1, 0], sizes = [1, 1], strides = [1, 1]} : vector<2x1xf32> to vector<1x1xf32>
    %319 = vector.broadcast %318 : vector<1x1xf32> to vector<1x32xf32>
    %320 = arith.subf %317, %319 : vector<1x32xf32>
    %321 = arith.cmpf oge, %314, %320 : vector<1x32xf32>
    %322 = arith.extui %321 : vector<1x32xi1> to vector<1x32xi32>
    %323 = arith.sitofp %322 : vector<1x32xi32> to vector<1x32xf32>
    %cst_87 = arith.constant 1.000000e+00 : f32
    %324 = vector.broadcast %cst_87 : f32 to vector<1x32xf32>
    %325 = arith.subf %324, %323 : vector<1x32xf32>
    %326 = tpu.concatenate %323, %325 in 0 : vector<1x32xf32>, vector<1x32xf32> -> vector<2x32xf32>
    %cst_88 = arith.constant dense<0.000000e+00> : vector<2x17xf32>
    %327 = tpu.matmul %326, %219, %cst_88 {dimension_numbers = #tpu.dot_dimension_numbers<[1], [1], [0], [0], [0, 0, 1, 0], [], []>} : vector<2x32xf32>, vector<17x32xf32>, vector<2x17xf32> -> vector<2x17xf32>
    %328 = arith.addf %307, %327 : vector<2x17xf32>
    %329 = vector.extract_strided_slice %328 {offsets = [0, 16], sizes = [2, 1], strides = [1, 1]} : vector<2x17xf32> to vector<2x1xf32>
    %330 = vector.extract_strided_slice %328 {offsets = [0, 0], sizes = [2, 16], strides = [1, 1]} : vector<2x17xf32> to vector<2x16xf32>
    %cst_89 = arith.constant 1.000000e+00 : f32
    %331 = vector.broadcast %cst_89 : f32 to vector<2x1xf32>
    %332 = arith.maximumf %329, %331 : vector<2x1xf32>
    %333 = vector.broadcast %332 : vector<2x1xf32> to vector<2x16xf32>
    %334 = arith.divf %330, %333 : vector<2x16xf32>
    %cst_90 = arith.constant 0.000000e+00 : f32
    %335 = vector.broadcast %cst_90 : f32 to vector<2x1xf32>
    %336 = arith.cmpf ogt, %329, %335 : vector<2x1xf32>
    %337 = vector.shape_cast %336 : vector<2x1xi1> to vector<2x1xi1>
    %338 = vector.broadcast %337 : vector<2x1xi1> to vector<2x16xi1>
    %339 = arith.select %338, %334, %282 : vector<2x16xi1>, vector<2x16xf32>
    %c2_i32_91 = arith.constant 2 : i32
    %340 = arith.mulf %339, %339 : vector<2x16xf32>
    %cst_92 = arith.constant dense<0.000000e+00> : vector<2xf32>
    %341 = vector.multi_reduction <add>, %340, %cst_92 [1] : vector<2x16xf32> to vector<2xf32>
    %342 = vector.shape_cast %341 : vector<2xf32> to vector<2x1xf32>
    %cst_93 = arith.constant 0.000000e+00 : f32
    %343 = vector.broadcast %cst_93 : f32 to vector<2x17xf32>
    %cst_94 = arith.constant dense<0.000000e+00> : vector<2x32xf32>
    %344 = tpu.matmul %339, %207, %cst_94 {dimension_numbers = #tpu.dot_dimension_numbers<[1], [0], [0], [1], [0, 0, 1, 1], [], []>} : vector<2x16xf32>, vector<16x32xf32>, vector<2x32xf32> -> vector<2x32xf32>
    %345 = vector.extract_strided_slice %344 {offsets = [0, 0], sizes = [1, 32], strides = [1, 1]} : vector<2x32xf32> to vector<1x32xf32>
    %cst_95 = arith.constant 2.000000e+00 : f32
    %346 = vector.broadcast %cst_95 : f32 to vector<1x32xf32>
    %347 = arith.mulf %346, %345 : vector<1x32xf32>
    %348 = vector.extract_strided_slice %342 {offsets = [0, 0], sizes = [1, 1], strides = [1, 1]} : vector<2x1xf32> to vector<1x1xf32>
    %349 = vector.broadcast %348 : vector<1x1xf32> to vector<1x32xf32>
    %350 = arith.subf %347, %349 : vector<1x32xf32>
    %351 = vector.extract_strided_slice %344 {offsets = [1, 0], sizes = [1, 32], strides = [1, 1]} : vector<2x32xf32> to vector<1x32xf32>
    %cst_96 = arith.constant 2.000000e+00 : f32
    %352 = vector.broadcast %cst_96 : f32 to vector<1x32xf32>
    %353 = arith.mulf %352, %351 : vector<1x32xf32>
    %354 = vector.extract_strided_slice %342 {offsets = [1, 0], sizes = [1, 1], strides = [1, 1]} : vector<2x1xf32> to vector<1x1xf32>
    %355 = vector.broadcast %354 : vector<1x1xf32> to vector<1x32xf32>
    %356 = arith.subf %353, %355 : vector<1x32xf32>
    %357 = arith.cmpf oge, %350, %356 : vector<1x32xf32>
    %358 = arith.extui %357 : vector<1x32xi1> to vector<1x32xi32>
    %359 = arith.sitofp %358 : vector<1x32xi32> to vector<1x32xf32>
    %cst_97 = arith.constant 1.000000e+00 : f32
    %360 = vector.broadcast %cst_97 : f32 to vector<1x32xf32>
    %361 = arith.subf %360, %359 : vector<1x32xf32>
    %362 = tpu.concatenate %359, %361 in 0 : vector<1x32xf32>, vector<1x32xf32> -> vector<2x32xf32>
    %cst_98 = arith.constant dense<0.000000e+00> : vector<2x17xf32>
    %363 = tpu.matmul %362, %218, %cst_98 {dimension_numbers = #tpu.dot_dimension_numbers<[1], [1], [0], [0], [0, 0, 1, 0], [], []>} : vector<2x32xf32>, vector<17x32xf32>, vector<2x17xf32> -> vector<2x17xf32>
    %364 = arith.addf %343, %363 : vector<2x17xf32>
    %cst_99 = arith.constant dense<0.000000e+00> : vector<2x32xf32>
    %365 = tpu.matmul %339, %216, %cst_99 {dimension_numbers = #tpu.dot_dimension_numbers<[1], [0], [0], [1], [0, 0, 1, 1], [], []>} : vector<2x16xf32>, vector<16x32xf32>, vector<2x32xf32> -> vector<2x32xf32>
    %366 = vector.extract_strided_slice %365 {offsets = [0, 0], sizes = [1, 32], strides = [1, 1]} : vector<2x32xf32> to vector<1x32xf32>
    %cst_100 = arith.constant 2.000000e+00 : f32
    %367 = vector.broadcast %cst_100 : f32 to vector<1x32xf32>
    %368 = arith.mulf %367, %366 : vector<1x32xf32>
    %369 = vector.extract_strided_slice %342 {offsets = [0, 0], sizes = [1, 1], strides = [1, 1]} : vector<2x1xf32> to vector<1x1xf32>
    %370 = vector.broadcast %369 : vector<1x1xf32> to vector<1x32xf32>
    %371 = arith.subf %368, %370 : vector<1x32xf32>
    %372 = vector.extract_strided_slice %365 {offsets = [1, 0], sizes = [1, 32], strides = [1, 1]} : vector<2x32xf32> to vector<1x32xf32>
    %cst_101 = arith.constant 2.000000e+00 : f32
    %373 = vector.broadcast %cst_101 : f32 to vector<1x32xf32>
    %374 = arith.mulf %373, %372 : vector<1x32xf32>
    %375 = vector.extract_strided_slice %342 {offsets = [1, 0], sizes = [1, 1], strides = [1, 1]} : vector<2x1xf32> to vector<1x1xf32>
    %376 = vector.broadcast %375 : vector<1x1xf32> to vector<1x32xf32>
    %377 = arith.subf %374, %376 : vector<1x32xf32>
    %378 = arith.cmpf oge, %371, %377 : vector<1x32xf32>
    %379 = arith.extui %378 : vector<1x32xi1> to vector<1x32xi32>
    %380 = arith.sitofp %379 : vector<1x32xi32> to vector<1x32xf32>
    %cst_102 = arith.constant 1.000000e+00 : f32
    %381 = vector.broadcast %cst_102 : f32 to vector<1x32xf32>
    %382 = arith.subf %381, %380 : vector<1x32xf32>
    %383 = tpu.concatenate %380, %382 in 0 : vector<1x32xf32>, vector<1x32xf32> -> vector<2x32xf32>
    %cst_103 = arith.constant dense<0.000000e+00> : vector<2x17xf32>
    %384 = tpu.matmul %383, %219, %cst_103 {dimension_numbers = #tpu.dot_dimension_numbers<[1], [1], [0], [0], [0, 0, 1, 0], [], []>} : vector<2x32xf32>, vector<17x32xf32>, vector<2x17xf32> -> vector<2x17xf32>
    %385 = arith.addf %364, %384 : vector<2x17xf32>
    %386 = vector.extract_strided_slice %385 {offsets = [0, 16], sizes = [2, 1], strides = [1, 1]} : vector<2x17xf32> to vector<2x1xf32>
    %387 = vector.extract_strided_slice %385 {offsets = [0, 0], sizes = [2, 16], strides = [1, 1]} : vector<2x17xf32> to vector<2x16xf32>
    %cst_104 = arith.constant 1.000000e+00 : f32
    %388 = vector.broadcast %cst_104 : f32 to vector<2x1xf32>
    %389 = arith.maximumf %386, %388 : vector<2x1xf32>
    %390 = vector.broadcast %389 : vector<2x1xf32> to vector<2x16xf32>
    %391 = arith.divf %387, %390 : vector<2x16xf32>
    %cst_105 = arith.constant 0.000000e+00 : f32
    %392 = vector.broadcast %cst_105 : f32 to vector<2x1xf32>
    %393 = arith.cmpf ogt, %386, %392 : vector<2x1xf32>
    %394 = vector.shape_cast %393 : vector<2x1xi1> to vector<2x1xi1>
    %395 = vector.broadcast %394 : vector<2x1xi1> to vector<2x16xi1>
    %396 = arith.select %395, %391, %339 : vector<2x16xi1>, vector<2x16xf32>
    %c3_i32 = arith.constant 3 : i32
    %397 = arith.mulf %396, %396 : vector<2x16xf32>
    %cst_106 = arith.constant dense<0.000000e+00> : vector<2xf32>
    %398 = vector.multi_reduction <add>, %397, %cst_106 [1] : vector<2x16xf32> to vector<2xf32>
    %399 = vector.shape_cast %398 : vector<2xf32> to vector<2x1xf32>
    %cst_107 = arith.constant 0.000000e+00 : f32
    %400 = vector.broadcast %cst_107 : f32 to vector<2x17xf32>
    %cst_108 = arith.constant dense<0.000000e+00> : vector<2x32xf32>
    %401 = tpu.matmul %396, %207, %cst_108 {dimension_numbers = #tpu.dot_dimension_numbers<[1], [0], [0], [1], [0, 0, 1, 1], [], []>} : vector<2x16xf32>, vector<16x32xf32>, vector<2x32xf32> -> vector<2x32xf32>
    %402 = vector.extract_strided_slice %401 {offsets = [0, 0], sizes = [1, 32], strides = [1, 1]} : vector<2x32xf32> to vector<1x32xf32>
    %cst_109 = arith.constant 2.000000e+00 : f32
    %403 = vector.broadcast %cst_109 : f32 to vector<1x32xf32>
    %404 = arith.mulf %403, %402 : vector<1x32xf32>
    %405 = vector.extract_strided_slice %399 {offsets = [0, 0], sizes = [1, 1], strides = [1, 1]} : vector<2x1xf32> to vector<1x1xf32>
    %406 = vector.broadcast %405 : vector<1x1xf32> to vector<1x32xf32>
    %407 = arith.subf %404, %406 : vector<1x32xf32>
    %408 = vector.extract_strided_slice %401 {offsets = [1, 0], sizes = [1, 32], strides = [1, 1]} : vector<2x32xf32> to vector<1x32xf32>
    %cst_110 = arith.constant 2.000000e+00 : f32
    %409 = vector.broadcast %cst_110 : f32 to vector<1x32xf32>
    %410 = arith.mulf %409, %408 : vector<1x32xf32>
    %411 = vector.extract_strided_slice %399 {offsets = [1, 0], sizes = [1, 1], strides = [1, 1]} : vector<2x1xf32> to vector<1x1xf32>
    %412 = vector.broadcast %411 : vector<1x1xf32> to vector<1x32xf32>
    %413 = arith.subf %410, %412 : vector<1x32xf32>
    %414 = arith.cmpf oge, %407, %413 : vector<1x32xf32>
    %415 = arith.extui %414 : vector<1x32xi1> to vector<1x32xi32>
    %416 = arith.sitofp %415 : vector<1x32xi32> to vector<1x32xf32>
    %cst_111 = arith.constant 1.000000e+00 : f32
    %417 = vector.broadcast %cst_111 : f32 to vector<1x32xf32>
    %418 = arith.subf %417, %416 : vector<1x32xf32>
    %419 = tpu.concatenate %416, %418 in 0 : vector<1x32xf32>, vector<1x32xf32> -> vector<2x32xf32>
    %cst_112 = arith.constant dense<0.000000e+00> : vector<2x17xf32>
    %420 = tpu.matmul %419, %218, %cst_112 {dimension_numbers = #tpu.dot_dimension_numbers<[1], [1], [0], [0], [0, 0, 1, 0], [], []>} : vector<2x32xf32>, vector<17x32xf32>, vector<2x17xf32> -> vector<2x17xf32>
    %421 = arith.addf %400, %420 : vector<2x17xf32>
    %cst_113 = arith.constant dense<0.000000e+00> : vector<2x32xf32>
    %422 = tpu.matmul %396, %216, %cst_113 {dimension_numbers = #tpu.dot_dimension_numbers<[1], [0], [0], [1], [0, 0, 1, 1], [], []>} : vector<2x16xf32>, vector<16x32xf32>, vector<2x32xf32> -> vector<2x32xf32>
    %423 = vector.extract_strided_slice %422 {offsets = [0, 0], sizes = [1, 32], strides = [1, 1]} : vector<2x32xf32> to vector<1x32xf32>
    %cst_114 = arith.constant 2.000000e+00 : f32
    %424 = vector.broadcast %cst_114 : f32 to vector<1x32xf32>
    %425 = arith.mulf %424, %423 : vector<1x32xf32>
    %426 = vector.extract_strided_slice %399 {offsets = [0, 0], sizes = [1, 1], strides = [1, 1]} : vector<2x1xf32> to vector<1x1xf32>
    %427 = vector.broadcast %426 : vector<1x1xf32> to vector<1x32xf32>
    %428 = arith.subf %425, %427 : vector<1x32xf32>
    %429 = vector.extract_strided_slice %422 {offsets = [1, 0], sizes = [1, 32], strides = [1, 1]} : vector<2x32xf32> to vector<1x32xf32>
    %cst_115 = arith.constant 2.000000e+00 : f32
    %430 = vector.broadcast %cst_115 : f32 to vector<1x32xf32>
    %431 = arith.mulf %430, %429 : vector<1x32xf32>
    %432 = vector.extract_strided_slice %399 {offsets = [1, 0], sizes = [1, 1], strides = [1, 1]} : vector<2x1xf32> to vector<1x1xf32>
    %433 = vector.broadcast %432 : vector<1x1xf32> to vector<1x32xf32>
    %434 = arith.subf %431, %433 : vector<1x32xf32>
    %435 = arith.cmpf oge, %428, %434 : vector<1x32xf32>
    %436 = arith.extui %435 : vector<1x32xi1> to vector<1x32xi32>
    %437 = arith.sitofp %436 : vector<1x32xi32> to vector<1x32xf32>
    %cst_116 = arith.constant 1.000000e+00 : f32
    %438 = vector.broadcast %cst_116 : f32 to vector<1x32xf32>
    %439 = arith.subf %438, %437 : vector<1x32xf32>
    %440 = tpu.concatenate %437, %439 in 0 : vector<1x32xf32>, vector<1x32xf32> -> vector<2x32xf32>
    %cst_117 = arith.constant dense<0.000000e+00> : vector<2x17xf32>
    %441 = tpu.matmul %440, %219, %cst_117 {dimension_numbers = #tpu.dot_dimension_numbers<[1], [1], [0], [0], [0, 0, 1, 0], [], []>} : vector<2x32xf32>, vector<17x32xf32>, vector<2x17xf32> -> vector<2x17xf32>
    %442 = arith.addf %421, %441 : vector<2x17xf32>
    %443 = vector.extract_strided_slice %442 {offsets = [0, 16], sizes = [2, 1], strides = [1, 1]} : vector<2x17xf32> to vector<2x1xf32>
    %444 = vector.extract_strided_slice %442 {offsets = [0, 0], sizes = [2, 16], strides = [1, 1]} : vector<2x17xf32> to vector<2x16xf32>
    %cst_118 = arith.constant 1.000000e+00 : f32
    %445 = vector.broadcast %cst_118 : f32 to vector<2x1xf32>
    %446 = arith.maximumf %443, %445 : vector<2x1xf32>
    %447 = vector.broadcast %446 : vector<2x1xf32> to vector<2x16xf32>
    %448 = arith.divf %444, %447 : vector<2x16xf32>
    %cst_119 = arith.constant 0.000000e+00 : f32
    %449 = vector.broadcast %cst_119 : f32 to vector<2x1xf32>
    %450 = arith.cmpf ogt, %443, %449 : vector<2x1xf32>
    %451 = vector.shape_cast %450 : vector<2x1xi1> to vector<2x1xi1>
    %452 = vector.broadcast %451 : vector<2x1xi1> to vector<2x16xi1>
    %453 = arith.select %452, %448, %396 : vector<2x16xi1>, vector<2x16xf32>
    %c4_i32_120 = arith.constant 4 : i32
    %454 = arith.mulf %453, %453 : vector<2x16xf32>
    %cst_121 = arith.constant dense<0.000000e+00> : vector<2xf32>
    %455 = vector.multi_reduction <add>, %454, %cst_121 [1] : vector<2x16xf32> to vector<2xf32>
    %456 = vector.shape_cast %455 : vector<2xf32> to vector<2x1xf32>
    %cst_122 = arith.constant 0.000000e+00 : f32
    %457 = vector.broadcast %cst_122 : f32 to vector<2x17xf32>
    %cst_123 = arith.constant dense<0.000000e+00> : vector<2x32xf32>
    %458 = tpu.matmul %453, %207, %cst_123 {dimension_numbers = #tpu.dot_dimension_numbers<[1], [0], [0], [1], [0, 0, 1, 1], [], []>} : vector<2x16xf32>, vector<16x32xf32>, vector<2x32xf32> -> vector<2x32xf32>
    %459 = vector.extract_strided_slice %458 {offsets = [0, 0], sizes = [1, 32], strides = [1, 1]} : vector<2x32xf32> to vector<1x32xf32>
    %cst_124 = arith.constant 2.000000e+00 : f32
    %460 = vector.broadcast %cst_124 : f32 to vector<1x32xf32>
    %461 = arith.mulf %460, %459 : vector<1x32xf32>
    %462 = vector.extract_strided_slice %456 {offsets = [0, 0], sizes = [1, 1], strides = [1, 1]} : vector<2x1xf32> to vector<1x1xf32>
    %463 = vector.broadcast %462 : vector<1x1xf32> to vector<1x32xf32>
    %464 = arith.subf %461, %463 : vector<1x32xf32>
    %465 = vector.extract_strided_slice %458 {offsets = [1, 0], sizes = [1, 32], strides = [1, 1]} : vector<2x32xf32> to vector<1x32xf32>
    %cst_125 = arith.constant 2.000000e+00 : f32
    %466 = vector.broadcast %cst_125 : f32 to vector<1x32xf32>
    %467 = arith.mulf %466, %465 : vector<1x32xf32>
    %468 = vector.extract_strided_slice %456 {offsets = [1, 0], sizes = [1, 1], strides = [1, 1]} : vector<2x1xf32> to vector<1x1xf32>
    %469 = vector.broadcast %468 : vector<1x1xf32> to vector<1x32xf32>
    %470 = arith.subf %467, %469 : vector<1x32xf32>
    %471 = arith.cmpf oge, %464, %470 : vector<1x32xf32>
    %472 = arith.extui %471 : vector<1x32xi1> to vector<1x32xi32>
    %473 = arith.sitofp %472 : vector<1x32xi32> to vector<1x32xf32>
    %cst_126 = arith.constant 1.000000e+00 : f32
    %474 = vector.broadcast %cst_126 : f32 to vector<1x32xf32>
    %475 = arith.subf %474, %473 : vector<1x32xf32>
    %476 = tpu.concatenate %473, %475 in 0 : vector<1x32xf32>, vector<1x32xf32> -> vector<2x32xf32>
    %cst_127 = arith.constant dense<0.000000e+00> : vector<2x17xf32>
    %477 = tpu.matmul %476, %218, %cst_127 {dimension_numbers = #tpu.dot_dimension_numbers<[1], [1], [0], [0], [0, 0, 1, 0], [], []>} : vector<2x32xf32>, vector<17x32xf32>, vector<2x17xf32> -> vector<2x17xf32>
    %478 = arith.addf %457, %477 : vector<2x17xf32>
    %cst_128 = arith.constant dense<0.000000e+00> : vector<2x32xf32>
    %479 = tpu.matmul %453, %216, %cst_128 {dimension_numbers = #tpu.dot_dimension_numbers<[1], [0], [0], [1], [0, 0, 1, 1], [], []>} : vector<2x16xf32>, vector<16x32xf32>, vector<2x32xf32> -> vector<2x32xf32>
    %480 = vector.extract_strided_slice %479 {offsets = [0, 0], sizes = [1, 32], strides = [1, 1]} : vector<2x32xf32> to vector<1x32xf32>
    %cst_129 = arith.constant 2.000000e+00 : f32
    %481 = vector.broadcast %cst_129 : f32 to vector<1x32xf32>
    %482 = arith.mulf %481, %480 : vector<1x32xf32>
    %483 = vector.extract_strided_slice %456 {offsets = [0, 0], sizes = [1, 1], strides = [1, 1]} : vector<2x1xf32> to vector<1x1xf32>
    %484 = vector.broadcast %483 : vector<1x1xf32> to vector<1x32xf32>
    %485 = arith.subf %482, %484 : vector<1x32xf32>
    %486 = vector.extract_strided_slice %479 {offsets = [1, 0], sizes = [1, 32], strides = [1, 1]} : vector<2x32xf32> to vector<1x32xf32>
    %cst_130 = arith.constant 2.000000e+00 : f32
    %487 = vector.broadcast %cst_130 : f32 to vector<1x32xf32>
    %488 = arith.mulf %487, %486 : vector<1x32xf32>
    %489 = vector.extract_strided_slice %456 {offsets = [1, 0], sizes = [1, 1], strides = [1, 1]} : vector<2x1xf32> to vector<1x1xf32>
    %490 = vector.broadcast %489 : vector<1x1xf32> to vector<1x32xf32>
    %491 = arith.subf %488, %490 : vector<1x32xf32>
    %492 = arith.cmpf oge, %485, %491 : vector<1x32xf32>
    %493 = arith.extui %492 : vector<1x32xi1> to vector<1x32xi32>
    %494 = arith.sitofp %493 : vector<1x32xi32> to vector<1x32xf32>
    %cst_131 = arith.constant 1.000000e+00 : f32
    %495 = vector.broadcast %cst_131 : f32 to vector<1x32xf32>
    %496 = arith.subf %495, %494 : vector<1x32xf32>
    %497 = tpu.concatenate %494, %496 in 0 : vector<1x32xf32>, vector<1x32xf32> -> vector<2x32xf32>
    %cst_132 = arith.constant dense<0.000000e+00> : vector<2x17xf32>
    %498 = tpu.matmul %497, %219, %cst_132 {dimension_numbers = #tpu.dot_dimension_numbers<[1], [1], [0], [0], [0, 0, 1, 0], [], []>} : vector<2x32xf32>, vector<17x32xf32>, vector<2x17xf32> -> vector<2x17xf32>
    %499 = arith.addf %478, %498 : vector<2x17xf32>
    %500 = vector.extract_strided_slice %499 {offsets = [0, 16], sizes = [2, 1], strides = [1, 1]} : vector<2x17xf32> to vector<2x1xf32>
    %501 = vector.extract_strided_slice %499 {offsets = [0, 0], sizes = [2, 16], strides = [1, 1]} : vector<2x17xf32> to vector<2x16xf32>
    %cst_133 = arith.constant 1.000000e+00 : f32
    %502 = vector.broadcast %cst_133 : f32 to vector<2x1xf32>
    %503 = arith.maximumf %500, %502 : vector<2x1xf32>
    %504 = vector.broadcast %503 : vector<2x1xf32> to vector<2x16xf32>
    %505 = arith.divf %501, %504 : vector<2x16xf32>
    %cst_134 = arith.constant 0.000000e+00 : f32
    %506 = vector.broadcast %cst_134 : f32 to vector<2x1xf32>
    %507 = arith.cmpf ogt, %500, %506 : vector<2x1xf32>
    %508 = vector.shape_cast %507 : vector<2x1xi1> to vector<2x1xi1>
    %509 = vector.broadcast %508 : vector<2x1xi1> to vector<2x16xi1>
    %510 = arith.select %509, %505, %453 : vector<2x16xi1>, vector<2x16xf32>
    %c5_i32 = arith.constant 5 : i32
    %511 = arith.mulf %510, %510 : vector<2x16xf32>
    %cst_135 = arith.constant dense<0.000000e+00> : vector<2xf32>
    %512 = vector.multi_reduction <add>, %511, %cst_135 [1] : vector<2x16xf32> to vector<2xf32>
    %513 = vector.shape_cast %512 : vector<2xf32> to vector<2x1xf32>
    %cst_136 = arith.constant 0.000000e+00 : f32
    %514 = vector.broadcast %cst_136 : f32 to vector<2x17xf32>
    %cst_137 = arith.constant dense<0.000000e+00> : vector<2x32xf32>
    %515 = tpu.matmul %510, %207, %cst_137 {dimension_numbers = #tpu.dot_dimension_numbers<[1], [0], [0], [1], [0, 0, 1, 1], [], []>} : vector<2x16xf32>, vector<16x32xf32>, vector<2x32xf32> -> vector<2x32xf32>
    %516 = vector.extract_strided_slice %515 {offsets = [0, 0], sizes = [1, 32], strides = [1, 1]} : vector<2x32xf32> to vector<1x32xf32>
    %cst_138 = arith.constant 2.000000e+00 : f32
    %517 = vector.broadcast %cst_138 : f32 to vector<1x32xf32>
    %518 = arith.mulf %517, %516 : vector<1x32xf32>
    %519 = vector.extract_strided_slice %513 {offsets = [0, 0], sizes = [1, 1], strides = [1, 1]} : vector<2x1xf32> to vector<1x1xf32>
    %520 = vector.broadcast %519 : vector<1x1xf32> to vector<1x32xf32>
    %521 = arith.subf %518, %520 : vector<1x32xf32>
    %522 = vector.extract_strided_slice %515 {offsets = [1, 0], sizes = [1, 32], strides = [1, 1]} : vector<2x32xf32> to vector<1x32xf32>
    %cst_139 = arith.constant 2.000000e+00 : f32
    %523 = vector.broadcast %cst_139 : f32 to vector<1x32xf32>
    %524 = arith.mulf %523, %522 : vector<1x32xf32>
    %525 = vector.extract_strided_slice %513 {offsets = [1, 0], sizes = [1, 1], strides = [1, 1]} : vector<2x1xf32> to vector<1x1xf32>
    %526 = vector.broadcast %525 : vector<1x1xf32> to vector<1x32xf32>
    %527 = arith.subf %524, %526 : vector<1x32xf32>
    %528 = arith.cmpf oge, %521, %527 : vector<1x32xf32>
    %529 = arith.extui %528 : vector<1x32xi1> to vector<1x32xi32>
    %530 = arith.sitofp %529 : vector<1x32xi32> to vector<1x32xf32>
    %cst_140 = arith.constant 1.000000e+00 : f32
    %531 = vector.broadcast %cst_140 : f32 to vector<1x32xf32>
    %532 = arith.subf %531, %530 : vector<1x32xf32>
    %533 = tpu.concatenate %530, %532 in 0 : vector<1x32xf32>, vector<1x32xf32> -> vector<2x32xf32>
    %cst_141 = arith.constant dense<0.000000e+00> : vector<2x17xf32>
    %534 = tpu.matmul %533, %218, %cst_141 {dimension_numbers = #tpu.dot_dimension_numbers<[1], [1], [0], [0], [0, 0, 1, 0], [], []>} : vector<2x32xf32>, vector<17x32xf32>, vector<2x17xf32> -> vector<2x17xf32>
    %535 = arith.addf %514, %534 : vector<2x17xf32>
    %cst_142 = arith.constant dense<0.000000e+00> : vector<2x32xf32>
    %536 = tpu.matmul %510, %216, %cst_142 {dimension_numbers = #tpu.dot_dimension_numbers<[1], [0], [0], [1], [0, 0, 1, 1], [], []>} : vector<2x16xf32>, vector<16x32xf32>, vector<2x32xf32> -> vector<2x32xf32>
    %537 = vector.extract_strided_slice %536 {offsets = [0, 0], sizes = [1, 32], strides = [1, 1]} : vector<2x32xf32> to vector<1x32xf32>
    %cst_143 = arith.constant 2.000000e+00 : f32
    %538 = vector.broadcast %cst_143 : f32 to vector<1x32xf32>
    %539 = arith.mulf %538, %537 : vector<1x32xf32>
    %540 = vector.extract_strided_slice %513 {offsets = [0, 0], sizes = [1, 1], strides = [1, 1]} : vector<2x1xf32> to vector<1x1xf32>
    %541 = vector.broadcast %540 : vector<1x1xf32> to vector<1x32xf32>
    %542 = arith.subf %539, %541 : vector<1x32xf32>
    %543 = vector.extract_strided_slice %536 {offsets = [1, 0], sizes = [1, 32], strides = [1, 1]} : vector<2x32xf32> to vector<1x32xf32>
    %cst_144 = arith.constant 2.000000e+00 : f32
    %544 = vector.broadcast %cst_144 : f32 to vector<1x32xf32>
    %545 = arith.mulf %544, %543 : vector<1x32xf32>
    %546 = vector.extract_strided_slice %513 {offsets = [1, 0], sizes = [1, 1], strides = [1, 1]} : vector<2x1xf32> to vector<1x1xf32>
    %547 = vector.broadcast %546 : vector<1x1xf32> to vector<1x32xf32>
    %548 = arith.subf %545, %547 : vector<1x32xf32>
    %549 = arith.cmpf oge, %542, %548 : vector<1x32xf32>
    %550 = arith.extui %549 : vector<1x32xi1> to vector<1x32xi32>
    %551 = arith.sitofp %550 : vector<1x32xi32> to vector<1x32xf32>
    %cst_145 = arith.constant 1.000000e+00 : f32
    %552 = vector.broadcast %cst_145 : f32 to vector<1x32xf32>
    %553 = arith.subf %552, %551 : vector<1x32xf32>
    %554 = tpu.concatenate %551, %553 in 0 : vector<1x32xf32>, vector<1x32xf32> -> vector<2x32xf32>
    %cst_146 = arith.constant dense<0.000000e+00> : vector<2x17xf32>
    %555 = tpu.matmul %554, %219, %cst_146 {dimension_numbers = #tpu.dot_dimension_numbers<[1], [1], [0], [0], [0, 0, 1, 0], [], []>} : vector<2x32xf32>, vector<17x32xf32>, vector<2x17xf32> -> vector<2x17xf32>
    %556 = arith.addf %535, %555 : vector<2x17xf32>
    %557 = vector.extract_strided_slice %556 {offsets = [0, 16], sizes = [2, 1], strides = [1, 1]} : vector<2x17xf32> to vector<2x1xf32>
    %558 = vector.extract_strided_slice %556 {offsets = [0, 0], sizes = [2, 16], strides = [1, 1]} : vector<2x17xf32> to vector<2x16xf32>
    %cst_147 = arith.constant 1.000000e+00 : f32
    %559 = vector.broadcast %cst_147 : f32 to vector<2x1xf32>
    %560 = arith.maximumf %557, %559 : vector<2x1xf32>
    %561 = vector.broadcast %560 : vector<2x1xf32> to vector<2x16xf32>
    %562 = arith.divf %558, %561 : vector<2x16xf32>
    %cst_148 = arith.constant 0.000000e+00 : f32
    %563 = vector.broadcast %cst_148 : f32 to vector<2x1xf32>
    %564 = arith.cmpf ogt, %557, %563 : vector<2x1xf32>
    %565 = vector.shape_cast %564 : vector<2x1xi1> to vector<2x1xi1>
    %566 = vector.broadcast %565 : vector<2x1xi1> to vector<2x16xi1>
    %567 = arith.select %566, %562, %510 : vector<2x16xi1>, vector<2x16xf32>
    %c6_i32 = arith.constant 6 : i32
    %568 = arith.mulf %567, %567 : vector<2x16xf32>
    %cst_149 = arith.constant dense<0.000000e+00> : vector<2xf32>
    %569 = vector.multi_reduction <add>, %568, %cst_149 [1] : vector<2x16xf32> to vector<2xf32>
    %570 = vector.shape_cast %569 : vector<2xf32> to vector<2x1xf32>
    %cst_150 = arith.constant 0.000000e+00 : f32
    %571 = vector.broadcast %cst_150 : f32 to vector<2x17xf32>
    %cst_151 = arith.constant dense<0.000000e+00> : vector<2x32xf32>
    %572 = tpu.matmul %567, %207, %cst_151 {dimension_numbers = #tpu.dot_dimension_numbers<[1], [0], [0], [1], [0, 0, 1, 1], [], []>} : vector<2x16xf32>, vector<16x32xf32>, vector<2x32xf32> -> vector<2x32xf32>
    %573 = vector.extract_strided_slice %572 {offsets = [0, 0], sizes = [1, 32], strides = [1, 1]} : vector<2x32xf32> to vector<1x32xf32>
    %cst_152 = arith.constant 2.000000e+00 : f32
    %574 = vector.broadcast %cst_152 : f32 to vector<1x32xf32>
    %575 = arith.mulf %574, %573 : vector<1x32xf32>
    %576 = vector.extract_strided_slice %570 {offsets = [0, 0], sizes = [1, 1], strides = [1, 1]} : vector<2x1xf32> to vector<1x1xf32>
    %577 = vector.broadcast %576 : vector<1x1xf32> to vector<1x32xf32>
    %578 = arith.subf %575, %577 : vector<1x32xf32>
    %579 = vector.extract_strided_slice %572 {offsets = [1, 0], sizes = [1, 32], strides = [1, 1]} : vector<2x32xf32> to vector<1x32xf32>
    %cst_153 = arith.constant 2.000000e+00 : f32
    %580 = vector.broadcast %cst_153 : f32 to vector<1x32xf32>
    %581 = arith.mulf %580, %579 : vector<1x32xf32>
    %582 = vector.extract_strided_slice %570 {offsets = [1, 0], sizes = [1, 1], strides = [1, 1]} : vector<2x1xf32> to vector<1x1xf32>
    %583 = vector.broadcast %582 : vector<1x1xf32> to vector<1x32xf32>
    %584 = arith.subf %581, %583 : vector<1x32xf32>
    %585 = arith.cmpf oge, %578, %584 : vector<1x32xf32>
    %586 = arith.extui %585 : vector<1x32xi1> to vector<1x32xi32>
    %587 = arith.sitofp %586 : vector<1x32xi32> to vector<1x32xf32>
    %cst_154 = arith.constant 1.000000e+00 : f32
    %588 = vector.broadcast %cst_154 : f32 to vector<1x32xf32>
    %589 = arith.subf %588, %587 : vector<1x32xf32>
    %590 = tpu.concatenate %587, %589 in 0 : vector<1x32xf32>, vector<1x32xf32> -> vector<2x32xf32>
    %cst_155 = arith.constant dense<0.000000e+00> : vector<2x17xf32>
    %591 = tpu.matmul %590, %218, %cst_155 {dimension_numbers = #tpu.dot_dimension_numbers<[1], [1], [0], [0], [0, 0, 1, 0], [], []>} : vector<2x32xf32>, vector<17x32xf32>, vector<2x17xf32> -> vector<2x17xf32>
    %592 = arith.addf %571, %591 : vector<2x17xf32>
    %cst_156 = arith.constant dense<0.000000e+00> : vector<2x32xf32>
    %593 = tpu.matmul %567, %216, %cst_156 {dimension_numbers = #tpu.dot_dimension_numbers<[1], [0], [0], [1], [0, 0, 1, 1], [], []>} : vector<2x16xf32>, vector<16x32xf32>, vector<2x32xf32> -> vector<2x32xf32>
    %594 = vector.extract_strided_slice %593 {offsets = [0, 0], sizes = [1, 32], strides = [1, 1]} : vector<2x32xf32> to vector<1x32xf32>
    %cst_157 = arith.constant 2.000000e+00 : f32
    %595 = vector.broadcast %cst_157 : f32 to vector<1x32xf32>
    %596 = arith.mulf %595, %594 : vector<1x32xf32>
    %597 = vector.extract_strided_slice %570 {offsets = [0, 0], sizes = [1, 1], strides = [1, 1]} : vector<2x1xf32> to vector<1x1xf32>
    %598 = vector.broadcast %597 : vector<1x1xf32> to vector<1x32xf32>
    %599 = arith.subf %596, %598 : vector<1x32xf32>
    %600 = vector.extract_strided_slice %593 {offsets = [1, 0], sizes = [1, 32], strides = [1, 1]} : vector<2x32xf32> to vector<1x32xf32>
    %cst_158 = arith.constant 2.000000e+00 : f32
    %601 = vector.broadcast %cst_158 : f32 to vector<1x32xf32>
    %602 = arith.mulf %601, %600 : vector<1x32xf32>
    %603 = vector.extract_strided_slice %570 {offsets = [1, 0], sizes = [1, 1], strides = [1, 1]} : vector<2x1xf32> to vector<1x1xf32>
    %604 = vector.broadcast %603 : vector<1x1xf32> to vector<1x32xf32>
    %605 = arith.subf %602, %604 : vector<1x32xf32>
    %606 = arith.cmpf oge, %599, %605 : vector<1x32xf32>
    %607 = arith.extui %606 : vector<1x32xi1> to vector<1x32xi32>
    %608 = arith.sitofp %607 : vector<1x32xi32> to vector<1x32xf32>
    %cst_159 = arith.constant 1.000000e+00 : f32
    %609 = vector.broadcast %cst_159 : f32 to vector<1x32xf32>
    %610 = arith.subf %609, %608 : vector<1x32xf32>
    %611 = tpu.concatenate %608, %610 in 0 : vector<1x32xf32>, vector<1x32xf32> -> vector<2x32xf32>
    %cst_160 = arith.constant dense<0.000000e+00> : vector<2x17xf32>
    %612 = tpu.matmul %611, %219, %cst_160 {dimension_numbers = #tpu.dot_dimension_numbers<[1], [1], [0], [0], [0, 0, 1, 0], [], []>} : vector<2x32xf32>, vector<17x32xf32>, vector<2x17xf32> -> vector<2x17xf32>
    %613 = arith.addf %592, %612 : vector<2x17xf32>
    %614 = vector.extract_strided_slice %613 {offsets = [0, 16], sizes = [2, 1], strides = [1, 1]} : vector<2x17xf32> to vector<2x1xf32>
    %615 = vector.extract_strided_slice %613 {offsets = [0, 0], sizes = [2, 16], strides = [1, 1]} : vector<2x17xf32> to vector<2x16xf32>
    %cst_161 = arith.constant 1.000000e+00 : f32
    %616 = vector.broadcast %cst_161 : f32 to vector<2x1xf32>
    %617 = arith.maximumf %614, %616 : vector<2x1xf32>
    %618 = vector.broadcast %617 : vector<2x1xf32> to vector<2x16xf32>
    %619 = arith.divf %615, %618 : vector<2x16xf32>
    %cst_162 = arith.constant 0.000000e+00 : f32
    %620 = vector.broadcast %cst_162 : f32 to vector<2x1xf32>
    %621 = arith.cmpf ogt, %614, %620 : vector<2x1xf32>
    %622 = vector.shape_cast %621 : vector<2x1xi1> to vector<2x1xi1>
    %623 = vector.broadcast %622 : vector<2x1xi1> to vector<2x16xi1>
    %624 = arith.select %623, %619, %567 : vector<2x16xi1>, vector<2x16xf32>
    %c7_i32 = arith.constant 7 : i32
    %625 = arith.mulf %624, %624 : vector<2x16xf32>
    %cst_163 = arith.constant dense<0.000000e+00> : vector<2xf32>
    %626 = vector.multi_reduction <add>, %625, %cst_163 [1] : vector<2x16xf32> to vector<2xf32>
    %627 = vector.shape_cast %626 : vector<2xf32> to vector<2x1xf32>
    %cst_164 = arith.constant 0.000000e+00 : f32
    %628 = vector.broadcast %cst_164 : f32 to vector<2x17xf32>
    %cst_165 = arith.constant dense<0.000000e+00> : vector<2x32xf32>
    %629 = tpu.matmul %624, %207, %cst_165 {dimension_numbers = #tpu.dot_dimension_numbers<[1], [0], [0], [1], [0, 0, 1, 1], [], []>} : vector<2x16xf32>, vector<16x32xf32>, vector<2x32xf32> -> vector<2x32xf32>
    %630 = vector.extract_strided_slice %629 {offsets = [0, 0], sizes = [1, 32], strides = [1, 1]} : vector<2x32xf32> to vector<1x32xf32>
    %cst_166 = arith.constant 2.000000e+00 : f32
    %631 = vector.broadcast %cst_166 : f32 to vector<1x32xf32>
    %632 = arith.mulf %631, %630 : vector<1x32xf32>
    %633 = vector.extract_strided_slice %627 {offsets = [0, 0], sizes = [1, 1], strides = [1, 1]} : vector<2x1xf32> to vector<1x1xf32>
    %634 = vector.broadcast %633 : vector<1x1xf32> to vector<1x32xf32>
    %635 = arith.subf %632, %634 : vector<1x32xf32>
    %636 = vector.extract_strided_slice %629 {offsets = [1, 0], sizes = [1, 32], strides = [1, 1]} : vector<2x32xf32> to vector<1x32xf32>
    %cst_167 = arith.constant 2.000000e+00 : f32
    %637 = vector.broadcast %cst_167 : f32 to vector<1x32xf32>
    %638 = arith.mulf %637, %636 : vector<1x32xf32>
    %639 = vector.extract_strided_slice %627 {offsets = [1, 0], sizes = [1, 1], strides = [1, 1]} : vector<2x1xf32> to vector<1x1xf32>
    %640 = vector.broadcast %639 : vector<1x1xf32> to vector<1x32xf32>
    %641 = arith.subf %638, %640 : vector<1x32xf32>
    %642 = arith.cmpf oge, %635, %641 : vector<1x32xf32>
    %643 = arith.extui %642 : vector<1x32xi1> to vector<1x32xi32>
    %644 = arith.sitofp %643 : vector<1x32xi32> to vector<1x32xf32>
    %cst_168 = arith.constant 1.000000e+00 : f32
    %645 = vector.broadcast %cst_168 : f32 to vector<1x32xf32>
    %646 = arith.subf %645, %644 : vector<1x32xf32>
    %647 = tpu.concatenate %644, %646 in 0 : vector<1x32xf32>, vector<1x32xf32> -> vector<2x32xf32>
    %cst_169 = arith.constant dense<0.000000e+00> : vector<2x17xf32>
    %648 = tpu.matmul %647, %218, %cst_169 {dimension_numbers = #tpu.dot_dimension_numbers<[1], [1], [0], [0], [0, 0, 1, 0], [], []>} : vector<2x32xf32>, vector<17x32xf32>, vector<2x17xf32> -> vector<2x17xf32>
    %649 = arith.addf %628, %648 : vector<2x17xf32>
    %cst_170 = arith.constant dense<0.000000e+00> : vector<2x32xf32>
    %650 = tpu.matmul %624, %216, %cst_170 {dimension_numbers = #tpu.dot_dimension_numbers<[1], [0], [0], [1], [0, 0, 1, 1], [], []>} : vector<2x16xf32>, vector<16x32xf32>, vector<2x32xf32> -> vector<2x32xf32>
    %651 = vector.extract_strided_slice %650 {offsets = [0, 0], sizes = [1, 32], strides = [1, 1]} : vector<2x32xf32> to vector<1x32xf32>
    %cst_171 = arith.constant 2.000000e+00 : f32
    %652 = vector.broadcast %cst_171 : f32 to vector<1x32xf32>
    %653 = arith.mulf %652, %651 : vector<1x32xf32>
    %654 = vector.extract_strided_slice %627 {offsets = [0, 0], sizes = [1, 1], strides = [1, 1]} : vector<2x1xf32> to vector<1x1xf32>
    %655 = vector.broadcast %654 : vector<1x1xf32> to vector<1x32xf32>
    %656 = arith.subf %653, %655 : vector<1x32xf32>
    %657 = vector.extract_strided_slice %650 {offsets = [1, 0], sizes = [1, 32], strides = [1, 1]} : vector<2x32xf32> to vector<1x32xf32>
    %cst_172 = arith.constant 2.000000e+00 : f32
    %658 = vector.broadcast %cst_172 : f32 to vector<1x32xf32>
    %659 = arith.mulf %658, %657 : vector<1x32xf32>
    %660 = vector.extract_strided_slice %627 {offsets = [1, 0], sizes = [1, 1], strides = [1, 1]} : vector<2x1xf32> to vector<1x1xf32>
    %661 = vector.broadcast %660 : vector<1x1xf32> to vector<1x32xf32>
    %662 = arith.subf %659, %661 : vector<1x32xf32>
    %663 = arith.cmpf oge, %656, %662 : vector<1x32xf32>
    %664 = arith.extui %663 : vector<1x32xi1> to vector<1x32xi32>
    %665 = arith.sitofp %664 : vector<1x32xi32> to vector<1x32xf32>
    %cst_173 = arith.constant 1.000000e+00 : f32
    %666 = vector.broadcast %cst_173 : f32 to vector<1x32xf32>
    %667 = arith.subf %666, %665 : vector<1x32xf32>
    %668 = tpu.concatenate %665, %667 in 0 : vector<1x32xf32>, vector<1x32xf32> -> vector<2x32xf32>
    %cst_174 = arith.constant dense<0.000000e+00> : vector<2x17xf32>
    %669 = tpu.matmul %668, %219, %cst_174 {dimension_numbers = #tpu.dot_dimension_numbers<[1], [1], [0], [0], [0, 0, 1, 0], [], []>} : vector<2x32xf32>, vector<17x32xf32>, vector<2x17xf32> -> vector<2x17xf32>
    %670 = arith.addf %649, %669 : vector<2x17xf32>
    %671 = vector.extract_strided_slice %670 {offsets = [0, 16], sizes = [2, 1], strides = [1, 1]} : vector<2x17xf32> to vector<2x1xf32>
    %672 = vector.extract_strided_slice %670 {offsets = [0, 0], sizes = [2, 16], strides = [1, 1]} : vector<2x17xf32> to vector<2x16xf32>
    %cst_175 = arith.constant 1.000000e+00 : f32
    %673 = vector.broadcast %cst_175 : f32 to vector<2x1xf32>
    %674 = arith.maximumf %671, %673 : vector<2x1xf32>
    %675 = vector.broadcast %674 : vector<2x1xf32> to vector<2x16xf32>
    %676 = arith.divf %672, %675 : vector<2x16xf32>
    %cst_176 = arith.constant 0.000000e+00 : f32
    %677 = vector.broadcast %cst_176 : f32 to vector<2x1xf32>
    %678 = arith.cmpf ogt, %671, %677 : vector<2x1xf32>
    %679 = vector.shape_cast %678 : vector<2x1xi1> to vector<2x1xi1>
    %680 = vector.broadcast %679 : vector<2x1xi1> to vector<2x16xi1>
    %681 = arith.select %680, %676, %624 : vector<2x16xi1>, vector<2x16xf32>
    %c8_i32 = arith.constant 8 : i32
    %682 = arith.mulf %681, %681 : vector<2x16xf32>
    %cst_177 = arith.constant dense<0.000000e+00> : vector<2xf32>
    %683 = vector.multi_reduction <add>, %682, %cst_177 [1] : vector<2x16xf32> to vector<2xf32>
    %684 = vector.shape_cast %683 : vector<2xf32> to vector<2x1xf32>
    %cst_178 = arith.constant 0.000000e+00 : f32
    %685 = vector.broadcast %cst_178 : f32 to vector<2x17xf32>
    %cst_179 = arith.constant dense<0.000000e+00> : vector<2x32xf32>
    %686 = tpu.matmul %681, %207, %cst_179 {dimension_numbers = #tpu.dot_dimension_numbers<[1], [0], [0], [1], [0, 0, 1, 1], [], []>} : vector<2x16xf32>, vector<16x32xf32>, vector<2x32xf32> -> vector<2x32xf32>
    %687 = vector.extract_strided_slice %686 {offsets = [0, 0], sizes = [1, 32], strides = [1, 1]} : vector<2x32xf32> to vector<1x32xf32>
    %cst_180 = arith.constant 2.000000e+00 : f32
    %688 = vector.broadcast %cst_180 : f32 to vector<1x32xf32>
    %689 = arith.mulf %688, %687 : vector<1x32xf32>
    %690 = vector.extract_strided_slice %684 {offsets = [0, 0], sizes = [1, 1], strides = [1, 1]} : vector<2x1xf32> to vector<1x1xf32>
    %691 = vector.broadcast %690 : vector<1x1xf32> to vector<1x32xf32>
    %692 = arith.subf %689, %691 : vector<1x32xf32>
    %693 = vector.extract_strided_slice %686 {offsets = [1, 0], sizes = [1, 32], strides = [1, 1]} : vector<2x32xf32> to vector<1x32xf32>
    %cst_181 = arith.constant 2.000000e+00 : f32
    %694 = vector.broadcast %cst_181 : f32 to vector<1x32xf32>
    %695 = arith.mulf %694, %693 : vector<1x32xf32>
    %696 = vector.extract_strided_slice %684 {offsets = [1, 0], sizes = [1, 1], strides = [1, 1]} : vector<2x1xf32> to vector<1x1xf32>
    %697 = vector.broadcast %696 : vector<1x1xf32> to vector<1x32xf32>
    %698 = arith.subf %695, %697 : vector<1x32xf32>
    %699 = arith.cmpf oge, %692, %698 : vector<1x32xf32>
    %700 = arith.extui %699 : vector<1x32xi1> to vector<1x32xi32>
    %701 = arith.sitofp %700 : vector<1x32xi32> to vector<1x32xf32>
    %cst_182 = arith.constant 1.000000e+00 : f32
    %702 = vector.broadcast %cst_182 : f32 to vector<1x32xf32>
    %703 = arith.subf %702, %701 : vector<1x32xf32>
    %704 = tpu.concatenate %701, %703 in 0 : vector<1x32xf32>, vector<1x32xf32> -> vector<2x32xf32>
    %cst_183 = arith.constant dense<0.000000e+00> : vector<2x17xf32>
    %705 = tpu.matmul %704, %218, %cst_183 {dimension_numbers = #tpu.dot_dimension_numbers<[1], [1], [0], [0], [0, 0, 1, 0], [], []>} : vector<2x32xf32>, vector<17x32xf32>, vector<2x17xf32> -> vector<2x17xf32>
    %706 = arith.addf %685, %705 : vector<2x17xf32>
    %cst_184 = arith.constant dense<0.000000e+00> : vector<2x32xf32>
    %707 = tpu.matmul %681, %216, %cst_184 {dimension_numbers = #tpu.dot_dimension_numbers<[1], [0], [0], [1], [0, 0, 1, 1], [], []>} : vector<2x16xf32>, vector<16x32xf32>, vector<2x32xf32> -> vector<2x32xf32>
    %708 = vector.extract_strided_slice %707 {offsets = [0, 0], sizes = [1, 32], strides = [1, 1]} : vector<2x32xf32> to vector<1x32xf32>
    %cst_185 = arith.constant 2.000000e+00 : f32
    %709 = vector.broadcast %cst_185 : f32 to vector<1x32xf32>
    %710 = arith.mulf %709, %708 : vector<1x32xf32>
    %711 = vector.extract_strided_slice %684 {offsets = [0, 0], sizes = [1, 1], strides = [1, 1]} : vector<2x1xf32> to vector<1x1xf32>
    %712 = vector.broadcast %711 : vector<1x1xf32> to vector<1x32xf32>
    %713 = arith.subf %710, %712 : vector<1x32xf32>
    %714 = vector.extract_strided_slice %707 {offsets = [1, 0], sizes = [1, 32], strides = [1, 1]} : vector<2x32xf32> to vector<1x32xf32>
    %cst_186 = arith.constant 2.000000e+00 : f32
    %715 = vector.broadcast %cst_186 : f32 to vector<1x32xf32>
    %716 = arith.mulf %715, %714 : vector<1x32xf32>
    %717 = vector.extract_strided_slice %684 {offsets = [1, 0], sizes = [1, 1], strides = [1, 1]} : vector<2x1xf32> to vector<1x1xf32>
    %718 = vector.broadcast %717 : vector<1x1xf32> to vector<1x32xf32>
    %719 = arith.subf %716, %718 : vector<1x32xf32>
    %720 = arith.cmpf oge, %713, %719 : vector<1x32xf32>
    %721 = arith.extui %720 : vector<1x32xi1> to vector<1x32xi32>
    %722 = arith.sitofp %721 : vector<1x32xi32> to vector<1x32xf32>
    %cst_187 = arith.constant 1.000000e+00 : f32
    %723 = vector.broadcast %cst_187 : f32 to vector<1x32xf32>
    %724 = arith.subf %723, %722 : vector<1x32xf32>
    %725 = tpu.concatenate %722, %724 in 0 : vector<1x32xf32>, vector<1x32xf32> -> vector<2x32xf32>
    %cst_188 = arith.constant dense<0.000000e+00> : vector<2x17xf32>
    %726 = tpu.matmul %725, %219, %cst_188 {dimension_numbers = #tpu.dot_dimension_numbers<[1], [1], [0], [0], [0, 0, 1, 0], [], []>} : vector<2x32xf32>, vector<17x32xf32>, vector<2x17xf32> -> vector<2x17xf32>
    %727 = arith.addf %706, %726 : vector<2x17xf32>
    %728 = vector.extract_strided_slice %727 {offsets = [0, 16], sizes = [2, 1], strides = [1, 1]} : vector<2x17xf32> to vector<2x1xf32>
    %729 = vector.extract_strided_slice %727 {offsets = [0, 0], sizes = [2, 16], strides = [1, 1]} : vector<2x17xf32> to vector<2x16xf32>
    %cst_189 = arith.constant 1.000000e+00 : f32
    %730 = vector.broadcast %cst_189 : f32 to vector<2x1xf32>
    %731 = arith.maximumf %728, %730 : vector<2x1xf32>
    %732 = vector.broadcast %731 : vector<2x1xf32> to vector<2x16xf32>
    %733 = arith.divf %729, %732 : vector<2x16xf32>
    %cst_190 = arith.constant 0.000000e+00 : f32
    %734 = vector.broadcast %cst_190 : f32 to vector<2x1xf32>
    %735 = arith.cmpf ogt, %728, %734 : vector<2x1xf32>
    %736 = vector.shape_cast %735 : vector<2x1xi1> to vector<2x1xi1>
    %737 = vector.broadcast %736 : vector<2x1xi1> to vector<2x16xi1>
    %738 = arith.select %737, %733, %681 : vector<2x16xi1>, vector<2x16xf32>
    %c9_i32 = arith.constant 9 : i32
    %739 = arith.mulf %738, %738 : vector<2x16xf32>
    %cst_191 = arith.constant dense<0.000000e+00> : vector<2xf32>
    %740 = vector.multi_reduction <add>, %739, %cst_191 [1] : vector<2x16xf32> to vector<2xf32>
    %741 = vector.shape_cast %740 : vector<2xf32> to vector<2x1xf32>
    %cst_192 = arith.constant 0.000000e+00 : f32
    %742 = vector.broadcast %cst_192 : f32 to vector<2x17xf32>
    %cst_193 = arith.constant dense<0.000000e+00> : vector<2x32xf32>
    %743 = tpu.matmul %738, %207, %cst_193 {dimension_numbers = #tpu.dot_dimension_numbers<[1], [0], [0], [1], [0, 0, 1, 1], [], []>} : vector<2x16xf32>, vector<16x32xf32>, vector<2x32xf32> -> vector<2x32xf32>
    %744 = vector.extract_strided_slice %743 {offsets = [0, 0], sizes = [1, 32], strides = [1, 1]} : vector<2x32xf32> to vector<1x32xf32>
    %cst_194 = arith.constant 2.000000e+00 : f32
    %745 = vector.broadcast %cst_194 : f32 to vector<1x32xf32>
    %746 = arith.mulf %745, %744 : vector<1x32xf32>
    %747 = vector.extract_strided_slice %741 {offsets = [0, 0], sizes = [1, 1], strides = [1, 1]} : vector<2x1xf32> to vector<1x1xf32>
    %748 = vector.broadcast %747 : vector<1x1xf32> to vector<1x32xf32>
    %749 = arith.subf %746, %748 : vector<1x32xf32>
    %750 = vector.extract_strided_slice %743 {offsets = [1, 0], sizes = [1, 32], strides = [1, 1]} : vector<2x32xf32> to vector<1x32xf32>
    %cst_195 = arith.constant 2.000000e+00 : f32
    %751 = vector.broadcast %cst_195 : f32 to vector<1x32xf32>
    %752 = arith.mulf %751, %750 : vector<1x32xf32>
    %753 = vector.extract_strided_slice %741 {offsets = [1, 0], sizes = [1, 1], strides = [1, 1]} : vector<2x1xf32> to vector<1x1xf32>
    %754 = vector.broadcast %753 : vector<1x1xf32> to vector<1x32xf32>
    %755 = arith.subf %752, %754 : vector<1x32xf32>
    %756 = arith.cmpf oge, %749, %755 : vector<1x32xf32>
    %757 = arith.extui %756 : vector<1x32xi1> to vector<1x32xi32>
    %758 = arith.sitofp %757 : vector<1x32xi32> to vector<1x32xf32>
    %cst_196 = arith.constant 1.000000e+00 : f32
    %759 = vector.broadcast %cst_196 : f32 to vector<1x32xf32>
    %760 = arith.subf %759, %758 : vector<1x32xf32>
    %761 = tpu.concatenate %758, %760 in 0 : vector<1x32xf32>, vector<1x32xf32> -> vector<2x32xf32>
    %cst_197 = arith.constant dense<0.000000e+00> : vector<2x17xf32>
    %762 = tpu.matmul %761, %218, %cst_197 {dimension_numbers = #tpu.dot_dimension_numbers<[1], [1], [0], [0], [0, 0, 1, 0], [], []>} : vector<2x32xf32>, vector<17x32xf32>, vector<2x17xf32> -> vector<2x17xf32>
    %763 = arith.addf %742, %762 : vector<2x17xf32>
    %cst_198 = arith.constant dense<0.000000e+00> : vector<2x32xf32>
    %764 = tpu.matmul %738, %216, %cst_198 {dimension_numbers = #tpu.dot_dimension_numbers<[1], [0], [0], [1], [0, 0, 1, 1], [], []>} : vector<2x16xf32>, vector<16x32xf32>, vector<2x32xf32> -> vector<2x32xf32>
    %765 = vector.extract_strided_slice %764 {offsets = [0, 0], sizes = [1, 32], strides = [1, 1]} : vector<2x32xf32> to vector<1x32xf32>
    %cst_199 = arith.constant 2.000000e+00 : f32
    %766 = vector.broadcast %cst_199 : f32 to vector<1x32xf32>
    %767 = arith.mulf %766, %765 : vector<1x32xf32>
    %768 = vector.extract_strided_slice %741 {offsets = [0, 0], sizes = [1, 1], strides = [1, 1]} : vector<2x1xf32> to vector<1x1xf32>
    %769 = vector.broadcast %768 : vector<1x1xf32> to vector<1x32xf32>
    %770 = arith.subf %767, %769 : vector<1x32xf32>
    %771 = vector.extract_strided_slice %764 {offsets = [1, 0], sizes = [1, 32], strides = [1, 1]} : vector<2x32xf32> to vector<1x32xf32>
    %cst_200 = arith.constant 2.000000e+00 : f32
    %772 = vector.broadcast %cst_200 : f32 to vector<1x32xf32>
    %773 = arith.mulf %772, %771 : vector<1x32xf32>
    %774 = vector.extract_strided_slice %741 {offsets = [1, 0], sizes = [1, 1], strides = [1, 1]} : vector<2x1xf32> to vector<1x1xf32>
    %775 = vector.broadcast %774 : vector<1x1xf32> to vector<1x32xf32>
    %776 = arith.subf %773, %775 : vector<1x32xf32>
    %777 = arith.cmpf oge, %770, %776 : vector<1x32xf32>
    %778 = arith.extui %777 : vector<1x32xi1> to vector<1x32xi32>
    %779 = arith.sitofp %778 : vector<1x32xi32> to vector<1x32xf32>
    %cst_201 = arith.constant 1.000000e+00 : f32
    %780 = vector.broadcast %cst_201 : f32 to vector<1x32xf32>
    %781 = arith.subf %780, %779 : vector<1x32xf32>
    %782 = tpu.concatenate %779, %781 in 0 : vector<1x32xf32>, vector<1x32xf32> -> vector<2x32xf32>
    %cst_202 = arith.constant dense<0.000000e+00> : vector<2x17xf32>
    %783 = tpu.matmul %782, %219, %cst_202 {dimension_numbers = #tpu.dot_dimension_numbers<[1], [1], [0], [0], [0, 0, 1, 0], [], []>} : vector<2x32xf32>, vector<17x32xf32>, vector<2x17xf32> -> vector<2x17xf32>
    %784 = arith.addf %763, %783 : vector<2x17xf32>
    %785 = vector.extract_strided_slice %784 {offsets = [0, 16], sizes = [2, 1], strides = [1, 1]} : vector<2x17xf32> to vector<2x1xf32>
    %786 = vector.extract_strided_slice %784 {offsets = [0, 0], sizes = [2, 16], strides = [1, 1]} : vector<2x17xf32> to vector<2x16xf32>
    %cst_203 = arith.constant 1.000000e+00 : f32
    %787 = vector.broadcast %cst_203 : f32 to vector<2x1xf32>
    %788 = arith.maximumf %785, %787 : vector<2x1xf32>
    %789 = vector.broadcast %788 : vector<2x1xf32> to vector<2x16xf32>
    %790 = arith.divf %786, %789 : vector<2x16xf32>
    %cst_204 = arith.constant 0.000000e+00 : f32
    %791 = vector.broadcast %cst_204 : f32 to vector<2x1xf32>
    %792 = arith.cmpf ogt, %785, %791 : vector<2x1xf32>
    %793 = vector.shape_cast %792 : vector<2x1xi1> to vector<2x1xi1>
    %794 = vector.broadcast %793 : vector<2x1xi1> to vector<2x16xi1>
    %795 = arith.select %794, %790, %738 : vector<2x16xi1>, vector<2x16xf32>
    %c0_205 = arith.constant 0 : index
    %c0_206 = arith.constant 0 : index
    %c0_207 = arith.constant 0 : index
    %796 = vector.load %arg6[%c0_205, %c0_206, %c0_207] : memref<1x2x16xf32, #tpu.memory_space<vmem>>, vector<1x2x16xf32>
    %797 = vector.shape_cast %796 : vector<1x2x16xf32> to vector<2x16xf32>
    %798 = vector.shape_cast %795 : vector<2x16xf32> to vector<1x2x16xf32>
    tpu.vector_store %arg6[%c0_205, %c0_206, %c0_207], %798 {strides = array<i32>} : memref<1x2x16xf32, #tpu.memory_space<vmem>>, vector<1x2x16xf32>,
    return
  }
  func.func @transform_0(%arg0: i32) -> (i32, i32, i32) {
    %c0_i32 = arith.constant 0 : i32
    %c0_i32_0 = arith.constant 0 : i32
    %c0_i32_1 = arith.constant 0 : i32
    return %arg0, %c0_i32, %c0_i32_0 : i32, i32, i32
  }
  func.func @transform_1(%arg0: i32) -> (i32, i32) {
    %c0_i32 = arith.constant 0 : i32
    %c0_i32_0 = arith.constant 0 : i32
    %c0_i32_1 = arith.constant 0 : i32
    return %c0_i32, %c0_i32_0 : i32, i32
  }
  func.func @transform_2(%arg0: i32) -> (i32, i32, i32) {
    %c0_i32 = arith.constant 0 : i32
    %c0_i32_0 = arith.constant 0 : i32
    %c0_i32_1 = arith.constant 0 : i32
    %c0_i32_2 = arith.constant 0 : i32
    return %c0_i32, %c0_i32_0, %c0_i32_1 : i32, i32, i32
  }
  func.func @transform_3(%arg0: i32) -> (i32, i32, i32) {
    %c0_i32 = arith.constant 0 : i32
    %c0_i32_0 = arith.constant 0 : i32
    %c0_i32_1 = arith.constant 0 : i32
    %c0_i32_2 = arith.constant 0 : i32
    return %c0_i32, %c0_i32_0, %c0_i32_1 : i32, i32, i32
  }
  func.func @transform_4(%arg0: i32) -> (i32, i32) {
    %c0_i32 = arith.constant 0 : i32
    %c0_i32_0 = arith.constant 0 : i32
    %c0_i32_1 = arith.constant 0 : i32
    return %c0_i32, %c0_i32_0 : i32, i32
  }
  func.func @transform_5(%arg0: i32) -> (i32, i32, i32) {
    %c0_i32 = arith.constant 0 : i32
    %c0_i32_0 = arith.constant 0 : i32
    %c0_i32_1 = arith.constant 0 : i32
    return %arg0, %c0_i32, %c0_i32_0 : i32, i32, i32
  }
}

module attributes {stable_mosaic.version = 11 : i64} {
  func.func @_sep_stack_kernel(%arg0: i32, %arg1: memref<1x1x36xf32, #tpu.memory_space<vmem>>, %arg2: memref<1x32x1xf32, #tpu.memory_space<vmem>>, %arg3: memref<16x3xf32, #tpu.memory_space<vmem>>, %arg4: memref<3x16x48xf32, #tpu.memory_space<vmem>>, %arg5: memref<4x16x6xf32, #tpu.memory_space<vmem>>, %arg6: memref<128x32xf32, #tpu.memory_space<vmem>>, %arg7: memref<4x2x17xf32, #tpu.memory_space<vmem>>, %arg8: memref<1x8x32xf32, #tpu.memory_space<vmem>>) attributes {dimension_semantics = [#tpu.dimension_semantics<parallel>], iteration_bounds = array<i64: 2>, scalar_prefetch = 0 : i64, scratch_operands = 0 : i64, tpu.core_type = #tpu.core_type<tc>, window_params = [{transform_indices = @transform_0, window_bounds = array<i64: 1, 1, 36>}, {transform_indices = @transform_1, window_bounds = array<i64: 1, 32, 1>}, {pipeline_mode = #tpu.pipeline_mode<synchronous>, transform_indices = @transform_2, window_bounds = array<i64: 16, 3>}, {pipeline_mode = #tpu.pipeline_mode<synchronous>, transform_indices = @transform_3, window_bounds = array<i64: 3, 16, 48>}, {pipeline_mode = #tpu.pipeline_mode<synchronous>, transform_indices = @transform_4, window_bounds = array<i64: 4, 16, 6>}, {pipeline_mode = #tpu.pipeline_mode<synchronous>, transform_indices = @transform_5, window_bounds = array<i64: 128, 32>}, {pipeline_mode = #tpu.pipeline_mode<synchronous>, transform_indices = @transform_6, window_bounds = array<i64: 4, 2, 17>}, {transform_indices = @transform_7, window_bounds = array<i64: 1, 8, 32>}]} {
    %0 = tpu.iota {dimensions = array<i32: 1>} : vector<1x32xi32>
    %c0 = arith.constant 0 : index
    %c0_0 = arith.constant 0 : index
    %c0_1 = arith.constant 0 : index
    %1 = vector.load %arg1[%c0, %c0_0, %c0_1] : memref<1x1x36xf32, #tpu.memory_space<vmem>>, vector<1x1x36xf32>
    %2 = vector.shape_cast %1 : vector<1x1x36xf32> to vector<1x36xf32>
    %c0_2 = arith.constant 0 : index
    %c0_3 = arith.constant 0 : index
    %c0_4 = arith.constant 0 : index
    %3 = vector.load %arg2[%c0_2, %c0_3, %c0_4] : memref<1x32x1xf32, #tpu.memory_space<vmem>>, vector<1x32x1xf32>
    %4 = vector.shape_cast %3 : vector<1x32x1xf32> to vector<32x1xf32>
    %c0_5 = arith.constant 0 : index
    %c0_6 = arith.constant 0 : index
    %5 = vector.load %arg3[%c0_5, %c0_6] : memref<16x3xf32, #tpu.memory_space<vmem>>, vector<16x3xf32>
    %c0_7 = arith.constant 0 : index
    %c0_8 = arith.constant 0 : index
    %6 = vector.load %arg6[%c0_7, %c0_8] : memref<128x32xf32, #tpu.memory_space<vmem>>, vector<128x32xf32>
    %cst = arith.constant dense<0.000000e+00> : vector<128x1xf32>
    %7 = tpu.matmul %6, %4, %cst {dimension_numbers = #tpu.dot_dimension_numbers<[1], [0], [0], [1], [0, 0, 1, 1], [], []>} : vector<128x32xf32>, vector<32x1xf32>, vector<128x1xf32> -> vector<128x1xf32>
    %cst_9 = arith.constant 0.000000e+00 : f32
    %8 = vector.broadcast %cst_9 : f32 to vector<16x32xf32>
    %9 = vector.extract_strided_slice %5 {offsets = [0, 0], sizes = [16, 1], strides = [1, 1]} : vector<16x3xf32> to vector<16x1xf32>
    %10 = vector.extract_strided_slice %2 {offsets = [0, 1], sizes = [1, 32], strides = [1, 1]} : vector<1x36xf32> to vector<1x32xf32>
    %11 = vector.broadcast %9 : vector<16x1xf32> to vector<16x32xf32>
    %12 = vector.broadcast %10 : vector<1x32xf32> to vector<16x32xf32>
    %13 = arith.mulf %11, %12 : vector<16x32xf32>
    %14 = arith.addf %8, %13 : vector<16x32xf32>
    %15 = vector.extract_strided_slice %5 {offsets = [0, 1], sizes = [16, 1], strides = [1, 1]} : vector<16x3xf32> to vector<16x1xf32>
    %16 = vector.extract_strided_slice %2 {offsets = [0, 2], sizes = [1, 32], strides = [1, 1]} : vector<1x36xf32> to vector<1x32xf32>
    %17 = vector.broadcast %15 : vector<16x1xf32> to vector<16x32xf32>
    %18 = vector.broadcast %16 : vector<1x32xf32> to vector<16x32xf32>
    %19 = arith.mulf %17, %18 : vector<16x32xf32>
    %20 = arith.addf %14, %19 : vector<16x32xf32>
    %21 = vector.extract_strided_slice %5 {offsets = [0, 2], sizes = [16, 1], strides = [1, 1]} : vector<16x3xf32> to vector<16x1xf32>
    %22 = vector.extract_strided_slice %2 {offsets = [0, 3], sizes = [1, 32], strides = [1, 1]} : vector<1x36xf32> to vector<1x32xf32>
    %23 = vector.broadcast %21 : vector<16x1xf32> to vector<16x32xf32>
    %24 = vector.broadcast %22 : vector<1x32xf32> to vector<16x32xf32>
    %25 = arith.mulf %23, %24 : vector<16x32xf32>
    %26 = arith.addf %20, %25 : vector<16x32xf32>
    %c0_10 = arith.constant 0 : index
    %c0_11 = arith.constant 0 : index
    %c0_12 = arith.constant 0 : index
    %27 = vector.load %arg5[%c0_10, %c0_11, %c0_12] : memref<4x16x6xf32, #tpu.memory_space<vmem>>, vector<1x16x6xf32>
    %28 = vector.shape_cast %27 : vector<1x16x6xf32> to vector<16x6xf32>
    %29 = vector.extract_strided_slice %7 {offsets = [0, 0], sizes = [16, 1], strides = [1, 1]} : vector<128x1xf32> to vector<16x1xf32>
    %30 = vector.extract_strided_slice %28 {offsets = [0, 1], sizes = [16, 1], strides = [1, 1]} : vector<16x6xf32> to vector<16x1xf32>
    %31 = arith.addf %29, %30 : vector<16x1xf32>
    %32 = vector.extract_strided_slice %7 {offsets = [16, 0], sizes = [16, 1], strides = [1, 1]} : vector<128x1xf32> to vector<16x1xf32>
    %33 = vector.extract_strided_slice %28 {offsets = [0, 2], sizes = [16, 1], strides = [1, 1]} : vector<16x6xf32> to vector<16x1xf32>
    %34 = arith.addf %32, %33 : vector<16x1xf32>
    %35 = vector.extract_strided_slice %28 {offsets = [0, 0], sizes = [16, 1], strides = [1, 1]} : vector<16x6xf32> to vector<16x1xf32>
    %36 = vector.broadcast %35 : vector<16x1xf32> to vector<16x32xf32>
    %37 = arith.addf %26, %36 : vector<16x32xf32>
    %38 = vector.broadcast %31 : vector<16x1xf32> to vector<16x32xf32>
    %39 = arith.mulf %38, %37 : vector<16x32xf32>
    %40 = vector.broadcast %34 : vector<16x1xf32> to vector<16x32xf32>
    %41 = arith.addf %39, %40 : vector<16x32xf32>
    %42 = vector.extract_strided_slice %28 {offsets = [0, 5], sizes = [16, 1], strides = [1, 1]} : vector<16x6xf32> to vector<16x1xf32>
    %cst_13 = arith.constant 0.000000e+00 : f32
    %43 = vector.broadcast %cst_13 : f32 to vector<16x32xf32>
    %44 = arith.maximumf %41, %43 : vector<16x32xf32>
    %cst_14 = arith.constant 0.000000e+00 : f32
    %45 = vector.broadcast %cst_14 : f32 to vector<16x32xf32>
    %46 = arith.minimumf %41, %45 : vector<16x32xf32>
    %47 = vector.broadcast %42 : vector<16x1xf32> to vector<16x32xf32>
    %48 = arith.mulf %47, %46 : vector<16x32xf32>
    %49 = arith.addf %44, %48 : vector<16x32xf32>
    %50 = vector.extract_strided_slice %28 {offsets = [0, 3], sizes = [16, 1], strides = [1, 1]} : vector<16x6xf32> to vector<16x1xf32>
    %51 = vector.extract_strided_slice %28 {offsets = [0, 4], sizes = [16, 1], strides = [1, 1]} : vector<16x6xf32> to vector<16x1xf32>
    %52 = arith.mulf %49, %49 : vector<16x32xf32>
    %53 = tpu.concatenate %49, %52 in 0 : vector<16x32xf32>, vector<16x32xf32> -> vector<32x32xf32>
    %cst_15 = arith.constant dense<0.000000e+00> : vector<32xf32>
    %54 = vector.multi_reduction <add>, %53, %cst_15 [1] : vector<32x32xf32> to vector<32xf32>
    %55 = vector.shape_cast %54 : vector<32xf32> to vector<32x1xf32>
    %56 = vector.extract_strided_slice %55 {offsets = [0, 0], sizes = [16, 1], strides = [1, 1]} : vector<32x1xf32> to vector<16x1xf32>
    %cst_16 = arith.constant dense<0.000000e+00> : vector<1xf32>
    %57 = vector.multi_reduction <add>, %56, %cst_16 [0] : vector<16x1xf32> to vector<1xf32>
    %58 = vector.shape_cast %57 : vector<1xf32> to vector<1x1xf32>
    %cst_17 = arith.constant 5.120000e+02 : f32
    %59 = vector.broadcast %cst_17 : f32 to vector<1x1xf32>
    %60 = arith.divf %58, %59 : vector<1x1xf32>
    %61 = vector.extract_strided_slice %55 {offsets = [16, 0], sizes = [16, 1], strides = [1, 1]} : vector<32x1xf32> to vector<16x1xf32>
    %cst_18 = arith.constant dense<0.000000e+00> : vector<1xf32>
    %62 = vector.multi_reduction <add>, %61, %cst_18 [0] : vector<16x1xf32> to vector<1xf32>
    %63 = vector.shape_cast %62 : vector<1xf32> to vector<1x1xf32>
    %cst_19 = arith.constant 5.120000e+02 : f32
    %64 = vector.broadcast %cst_19 : f32 to vector<1x1xf32>
    %65 = arith.divf %63, %64 : vector<1x1xf32>
    %66 = arith.mulf %60, %60 : vector<1x1xf32>
    %67 = arith.subf %65, %66 : vector<1x1xf32>
    %cst_20 = arith.constant 0.000000e+00 : f32
    %68 = vector.broadcast %cst_20 : f32 to vector<1x1xf32>
    %69 = arith.maximumf %67, %68 : vector<1x1xf32>
    %70 = vector.broadcast %60 : vector<1x1xf32> to vector<16x32xf32>
    %71 = arith.subf %49, %70 : vector<16x32xf32>
    %cst_21 = arith.constant 9.99999993E-9 : f32
    %72 = vector.broadcast %cst_21 : f32 to vector<1x1xf32>
    %73 = arith.addf %69, %72 : vector<1x1xf32>
    %74 = math.rsqrt %73 : vector<1x1xf32>
    %75 = vector.broadcast %74 : vector<1x1xf32> to vector<16x32xf32>
    %76 = arith.mulf %71, %75 : vector<16x32xf32>
    %77 = vector.broadcast %50 : vector<16x1xf32> to vector<16x32xf32>
    %78 = arith.mulf %76, %77 : vector<16x32xf32>
    %79 = vector.broadcast %51 : vector<16x1xf32> to vector<16x32xf32>
    %80 = arith.addf %78, %79 : vector<16x32xf32>
    %c0_22 = arith.constant 0 : index
    %c0_23 = arith.constant 0 : index
    %c0_24 = arith.constant 0 : index
    %81 = vector.load %arg7[%c0_22, %c0_23, %c0_24] : memref<4x2x17xf32, #tpu.memory_space<vmem>>, vector<1x2x17xf32>
    %82 = vector.shape_cast %81 : vector<1x2x17xf32> to vector<2x17xf32>
    %83 = vector.extract_strided_slice %82 {offsets = [0, 0], sizes = [2, 16], strides = [1, 1]} : vector<2x17xf32> to vector<2x16xf32>
    %cst_25 = arith.constant dense<0.000000e+00> : vector<2x32xf32>
    %84 = tpu.matmul %83, %80, %cst_25 {dimension_numbers = #tpu.dot_dimension_numbers<[1], [0], [0], [1], [0, 0, 1, 1], [], []>} : vector<2x16xf32>, vector<16x32xf32>, vector<2x32xf32> -> vector<2x32xf32>
    %85 = vector.extract_strided_slice %82 {offsets = [0, 16], sizes = [2, 1], strides = [1, 1]} : vector<2x17xf32> to vector<2x1xf32>
    %86 = vector.broadcast %85 : vector<2x1xf32> to vector<2x32xf32>
    %87 = arith.addf %84, %86 : vector<2x32xf32>
    %c0_26 = arith.constant 0 : index
    %c0_27 = arith.constant 0 : index
    %c0_28 = arith.constant 0 : index
    %88 = vector.load %arg4[%c0_26, %c0_27, %c0_28] : memref<3x16x48xf32, #tpu.memory_space<vmem>>, vector<1x16x48xf32>
    %89 = vector.shape_cast %88 : vector<1x16x48xf32> to vector<16x48xf32>
    %c2_i32 = arith.constant 2 : i32
    %90 = tpu.dynamic_rotate %80 by %c2_i32 dim 1 : vector<16x32xf32>, i32 -> vector<16x32xf32>
    %c2_i32_29 = arith.constant 2 : i32
    %91 = vector.broadcast %c2_i32_29 : i32 to vector<1x32xi32>
    %92 = arith.cmpi sge, %0, %91 : vector<1x32xi32>
    %cst_30 = arith.constant 0.000000e+00 : f32
    %93 = vector.shape_cast %92 : vector<1x32xi1> to vector<1x32xi1>
    %94 = vector.broadcast %93 : vector<1x32xi1> to vector<16x32xi1>
    %95 = vector.broadcast %cst_30 : f32 to vector<16x32xf32>
    %96 = arith.select %94, %90, %95 : vector<16x32xi1>, vector<16x32xf32>
    %c30_i32 = arith.constant 30 : i32
    %97 = tpu.dynamic_rotate %80 by %c30_i32 dim 1 : vector<16x32xf32>, i32 -> vector<16x32xf32>
    %c30_i32_31 = arith.constant 30 : i32
    %98 = vector.broadcast %c30_i32_31 : i32 to vector<1x32xi32>
    %99 = arith.cmpi slt, %0, %98 : vector<1x32xi32>
    %cst_32 = arith.constant 0.000000e+00 : f32
    %100 = vector.shape_cast %99 : vector<1x32xi1> to vector<1x32xi1>
    %101 = vector.broadcast %100 : vector<1x32xi1> to vector<16x32xi1>
    %102 = vector.broadcast %cst_32 : f32 to vector<16x32xf32>
    %103 = arith.select %101, %97, %102 : vector<16x32xi1>, vector<16x32xf32>
    %104 = tpu.concatenate %96, %80, %103 in 0 : vector<16x32xf32>, vector<16x32xf32>, vector<16x32xf32> -> vector<48x32xf32>
    %cst_33 = arith.constant dense<0.000000e+00> : vector<16x32xf32>
    %105 = tpu.matmul %89, %104, %cst_33 {dimension_numbers = #tpu.dot_dimension_numbers<[1], [0], [0], [1], [0, 0, 1, 1], [], []>} : vector<16x48xf32>, vector<48x32xf32>, vector<16x32xf32> -> vector<16x32xf32>
    %c1 = arith.constant 1 : index
    %c0_34 = arith.constant 0 : index
    %c0_35 = arith.constant 0 : index
    %106 = vector.load %arg5[%c1, %c0_34, %c0_35] : memref<4x16x6xf32, #tpu.memory_space<vmem>>, vector<1x16x6xf32>
    %107 = vector.shape_cast %106 : vector<1x16x6xf32> to vector<16x6xf32>
    %108 = vector.extract_strided_slice %7 {offsets = [32, 0], sizes = [16, 1], strides = [1, 1]} : vector<128x1xf32> to vector<16x1xf32>
    %109 = vector.extract_strided_slice %107 {offsets = [0, 1], sizes = [16, 1], strides = [1, 1]} : vector<16x6xf32> to vector<16x1xf32>
    %110 = arith.addf %108, %109 : vector<16x1xf32>
    %111 = vector.extract_strided_slice %7 {offsets = [48, 0], sizes = [16, 1], strides = [1, 1]} : vector<128x1xf32> to vector<16x1xf32>
    %112 = vector.extract_strided_slice %107 {offsets = [0, 2], sizes = [16, 1], strides = [1, 1]} : vector<16x6xf32> to vector<16x1xf32>
    %113 = arith.addf %111, %112 : vector<16x1xf32>
    %114 = vector.extract_strided_slice %107 {offsets = [0, 0], sizes = [16, 1], strides = [1, 1]} : vector<16x6xf32> to vector<16x1xf32>
    %115 = vector.broadcast %114 : vector<16x1xf32> to vector<16x32xf32>
    %116 = arith.addf %105, %115 : vector<16x32xf32>
    %117 = vector.broadcast %110 : vector<16x1xf32> to vector<16x32xf32>
    %118 = arith.mulf %117, %116 : vector<16x32xf32>
    %119 = vector.broadcast %113 : vector<16x1xf32> to vector<16x32xf32>
    %120 = arith.addf %118, %119 : vector<16x32xf32>
    %121 = vector.extract_strided_slice %107 {offsets = [0, 5], sizes = [16, 1], strides = [1, 1]} : vector<16x6xf32> to vector<16x1xf32>
    %cst_36 = arith.constant 0.000000e+00 : f32
    %122 = vector.broadcast %cst_36 : f32 to vector<16x32xf32>
    %123 = arith.maximumf %120, %122 : vector<16x32xf32>
    %cst_37 = arith.constant 0.000000e+00 : f32
    %124 = vector.broadcast %cst_37 : f32 to vector<16x32xf32>
    %125 = arith.minimumf %120, %124 : vector<16x32xf32>
    %126 = vector.broadcast %121 : vector<16x1xf32> to vector<16x32xf32>
    %127 = arith.mulf %126, %125 : vector<16x32xf32>
    %128 = arith.addf %123, %127 : vector<16x32xf32>
    %129 = vector.extract_strided_slice %107 {offsets = [0, 3], sizes = [16, 1], strides = [1, 1]} : vector<16x6xf32> to vector<16x1xf32>
    %130 = vector.extract_strided_slice %107 {offsets = [0, 4], sizes = [16, 1], strides = [1, 1]} : vector<16x6xf32> to vector<16x1xf32>
    %131 = arith.mulf %128, %128 : vector<16x32xf32>
    %132 = tpu.concatenate %128, %131 in 0 : vector<16x32xf32>, vector<16x32xf32> -> vector<32x32xf32>
    %cst_38 = arith.constant dense<0.000000e+00> : vector<32xf32>
    %133 = vector.multi_reduction <add>, %132, %cst_38 [1] : vector<32x32xf32> to vector<32xf32>
    %134 = vector.shape_cast %133 : vector<32xf32> to vector<32x1xf32>
    %135 = vector.extract_strided_slice %134 {offsets = [0, 0], sizes = [16, 1], strides = [1, 1]} : vector<32x1xf32> to vector<16x1xf32>
    %cst_39 = arith.constant dense<0.000000e+00> : vector<1xf32>
    %136 = vector.multi_reduction <add>, %135, %cst_39 [0] : vector<16x1xf32> to vector<1xf32>
    %137 = vector.shape_cast %136 : vector<1xf32> to vector<1x1xf32>
    %cst_40 = arith.constant 5.120000e+02 : f32
    %138 = vector.broadcast %cst_40 : f32 to vector<1x1xf32>
    %139 = arith.divf %137, %138 : vector<1x1xf32>
    %140 = vector.extract_strided_slice %134 {offsets = [16, 0], sizes = [16, 1], strides = [1, 1]} : vector<32x1xf32> to vector<16x1xf32>
    %cst_41 = arith.constant dense<0.000000e+00> : vector<1xf32>
    %141 = vector.multi_reduction <add>, %140, %cst_41 [0] : vector<16x1xf32> to vector<1xf32>
    %142 = vector.shape_cast %141 : vector<1xf32> to vector<1x1xf32>
    %cst_42 = arith.constant 5.120000e+02 : f32
    %143 = vector.broadcast %cst_42 : f32 to vector<1x1xf32>
    %144 = arith.divf %142, %143 : vector<1x1xf32>
    %145 = arith.mulf %139, %139 : vector<1x1xf32>
    %146 = arith.subf %144, %145 : vector<1x1xf32>
    %cst_43 = arith.constant 0.000000e+00 : f32
    %147 = vector.broadcast %cst_43 : f32 to vector<1x1xf32>
    %148 = arith.maximumf %146, %147 : vector<1x1xf32>
    %149 = vector.broadcast %139 : vector<1x1xf32> to vector<16x32xf32>
    %150 = arith.subf %128, %149 : vector<16x32xf32>
    %cst_44 = arith.constant 9.99999993E-9 : f32
    %151 = vector.broadcast %cst_44 : f32 to vector<1x1xf32>
    %152 = arith.addf %148, %151 : vector<1x1xf32>
    %153 = math.rsqrt %152 : vector<1x1xf32>
    %154 = vector.broadcast %153 : vector<1x1xf32> to vector<16x32xf32>
    %155 = arith.mulf %150, %154 : vector<16x32xf32>
    %156 = vector.broadcast %129 : vector<16x1xf32> to vector<16x32xf32>
    %157 = arith.mulf %155, %156 : vector<16x32xf32>
    %158 = vector.broadcast %130 : vector<16x1xf32> to vector<16x32xf32>
    %159 = arith.addf %157, %158 : vector<16x32xf32>
    %160 = arith.addf %80, %159 : vector<16x32xf32>
    %c1_45 = arith.constant 1 : index
    %c0_46 = arith.constant 0 : index
    %c0_47 = arith.constant 0 : index
    %161 = vector.load %arg7[%c1_45, %c0_46, %c0_47] : memref<4x2x17xf32, #tpu.memory_space<vmem>>, vector<1x2x17xf32>
    %162 = vector.shape_cast %161 : vector<1x2x17xf32> to vector<2x17xf32>
    %163 = vector.extract_strided_slice %162 {offsets = [0, 0], sizes = [2, 16], strides = [1, 1]} : vector<2x17xf32> to vector<2x16xf32>
    %cst_48 = arith.constant dense<0.000000e+00> : vector<2x32xf32>
    %164 = tpu.matmul %163, %160, %cst_48 {dimension_numbers = #tpu.dot_dimension_numbers<[1], [0], [0], [1], [0, 0, 1, 1], [], []>} : vector<2x16xf32>, vector<16x32xf32>, vector<2x32xf32> -> vector<2x32xf32>
    %165 = vector.extract_strided_slice %162 {offsets = [0, 16], sizes = [2, 1], strides = [1, 1]} : vector<2x17xf32> to vector<2x1xf32>
    %166 = vector.broadcast %165 : vector<2x1xf32> to vector<2x32xf32>
    %167 = arith.addf %164, %166 : vector<2x32xf32>
    %c1_49 = arith.constant 1 : index
    %c0_50 = arith.constant 0 : index
    %c0_51 = arith.constant 0 : index
    %168 = vector.load %arg4[%c1_49, %c0_50, %c0_51] : memref<3x16x48xf32, #tpu.memory_space<vmem>>, vector<1x16x48xf32>
    %169 = vector.shape_cast %168 : vector<1x16x48xf32> to vector<16x48xf32>
    %c1_i32 = arith.constant 1 : i32
    %170 = tpu.dynamic_rotate %160 by %c1_i32 dim 1 : vector<16x32xf32>, i32 -> vector<16x32xf32>
    %c1_i32_52 = arith.constant 1 : i32
    %171 = vector.broadcast %c1_i32_52 : i32 to vector<1x32xi32>
    %172 = arith.cmpi sge, %0, %171 : vector<1x32xi32>
    %cst_53 = arith.constant 0.000000e+00 : f32
    %173 = vector.shape_cast %172 : vector<1x32xi1> to vector<1x32xi1>
    %174 = vector.broadcast %173 : vector<1x32xi1> to vector<16x32xi1>
    %175 = vector.broadcast %cst_53 : f32 to vector<16x32xf32>
    %176 = arith.select %174, %170, %175 : vector<16x32xi1>, vector<16x32xf32>
    %c31_i32 = arith.constant 31 : i32
    %177 = tpu.dynamic_rotate %160 by %c31_i32 dim 1 : vector<16x32xf32>, i32 -> vector<16x32xf32>
    %c31_i32_54 = arith.constant 31 : i32
    %178 = vector.broadcast %c31_i32_54 : i32 to vector<1x32xi32>
    %179 = arith.cmpi slt, %0, %178 : vector<1x32xi32>
    %cst_55 = arith.constant 0.000000e+00 : f32
    %180 = vector.shape_cast %179 : vector<1x32xi1> to vector<1x32xi1>
    %181 = vector.broadcast %180 : vector<1x32xi1> to vector<16x32xi1>
    %182 = vector.broadcast %cst_55 : f32 to vector<16x32xf32>
    %183 = arith.select %181, %177, %182 : vector<16x32xi1>, vector<16x32xf32>
    %184 = tpu.concatenate %176, %160, %183 in 0 : vector<16x32xf32>, vector<16x32xf32>, vector<16x32xf32> -> vector<48x32xf32>
    %cst_56 = arith.constant dense<0.000000e+00> : vector<16x32xf32>
    %185 = tpu.matmul %169, %184, %cst_56 {dimension_numbers = #tpu.dot_dimension_numbers<[1], [0], [0], [1], [0, 0, 1, 1], [], []>} : vector<16x48xf32>, vector<48x32xf32>, vector<16x32xf32> -> vector<16x32xf32>
    %c2 = arith.constant 2 : index
    %c0_57 = arith.constant 0 : index
    %c0_58 = arith.constant 0 : index
    %186 = vector.load %arg5[%c2, %c0_57, %c0_58] : memref<4x16x6xf32, #tpu.memory_space<vmem>>, vector<1x16x6xf32>
    %187 = vector.shape_cast %186 : vector<1x16x6xf32> to vector<16x6xf32>
    %188 = vector.extract_strided_slice %7 {offsets = [64, 0], sizes = [16, 1], strides = [1, 1]} : vector<128x1xf32> to vector<16x1xf32>
    %189 = vector.extract_strided_slice %187 {offsets = [0, 1], sizes = [16, 1], strides = [1, 1]} : vector<16x6xf32> to vector<16x1xf32>
    %190 = arith.addf %188, %189 : vector<16x1xf32>
    %191 = vector.extract_strided_slice %7 {offsets = [80, 0], sizes = [16, 1], strides = [1, 1]} : vector<128x1xf32> to vector<16x1xf32>
    %192 = vector.extract_strided_slice %187 {offsets = [0, 2], sizes = [16, 1], strides = [1, 1]} : vector<16x6xf32> to vector<16x1xf32>
    %193 = arith.addf %191, %192 : vector<16x1xf32>
    %194 = vector.extract_strided_slice %187 {offsets = [0, 0], sizes = [16, 1], strides = [1, 1]} : vector<16x6xf32> to vector<16x1xf32>
    %195 = vector.broadcast %194 : vector<16x1xf32> to vector<16x32xf32>
    %196 = arith.addf %185, %195 : vector<16x32xf32>
    %197 = vector.broadcast %190 : vector<16x1xf32> to vector<16x32xf32>
    %198 = arith.mulf %197, %196 : vector<16x32xf32>
    %199 = vector.broadcast %193 : vector<16x1xf32> to vector<16x32xf32>
    %200 = arith.addf %198, %199 : vector<16x32xf32>
    %201 = vector.extract_strided_slice %187 {offsets = [0, 5], sizes = [16, 1], strides = [1, 1]} : vector<16x6xf32> to vector<16x1xf32>
    %cst_59 = arith.constant 0.000000e+00 : f32
    %202 = vector.broadcast %cst_59 : f32 to vector<16x32xf32>
    %203 = arith.maximumf %200, %202 : vector<16x32xf32>
    %cst_60 = arith.constant 0.000000e+00 : f32
    %204 = vector.broadcast %cst_60 : f32 to vector<16x32xf32>
    %205 = arith.minimumf %200, %204 : vector<16x32xf32>
    %206 = vector.broadcast %201 : vector<16x1xf32> to vector<16x32xf32>
    %207 = arith.mulf %206, %205 : vector<16x32xf32>
    %208 = arith.addf %203, %207 : vector<16x32xf32>
    %209 = vector.extract_strided_slice %187 {offsets = [0, 3], sizes = [16, 1], strides = [1, 1]} : vector<16x6xf32> to vector<16x1xf32>
    %210 = vector.extract_strided_slice %187 {offsets = [0, 4], sizes = [16, 1], strides = [1, 1]} : vector<16x6xf32> to vector<16x1xf32>
    %211 = arith.mulf %208, %208 : vector<16x32xf32>
    %212 = tpu.concatenate %208, %211 in 0 : vector<16x32xf32>, vector<16x32xf32> -> vector<32x32xf32>
    %cst_61 = arith.constant dense<0.000000e+00> : vector<32xf32>
    %213 = vector.multi_reduction <add>, %212, %cst_61 [1] : vector<32x32xf32> to vector<32xf32>
    %214 = vector.shape_cast %213 : vector<32xf32> to vector<32x1xf32>
    %215 = vector.extract_strided_slice %214 {offsets = [0, 0], sizes = [16, 1], strides = [1, 1]} : vector<32x1xf32> to vector<16x1xf32>
    %cst_62 = arith.constant dense<0.000000e+00> : vector<1xf32>
    %216 = vector.multi_reduction <add>, %215, %cst_62 [0] : vector<16x1xf32> to vector<1xf32>
    %217 = vector.shape_cast %216 : vector<1xf32> to vector<1x1xf32>
    %cst_63 = arith.constant 5.120000e+02 : f32
    %218 = vector.broadcast %cst_63 : f32 to vector<1x1xf32>
    %219 = arith.divf %217, %218 : vector<1x1xf32>
    %220 = vector.extract_strided_slice %214 {offsets = [16, 0], sizes = [16, 1], strides = [1, 1]} : vector<32x1xf32> to vector<16x1xf32>
    %cst_64 = arith.constant dense<0.000000e+00> : vector<1xf32>
    %221 = vector.multi_reduction <add>, %220, %cst_64 [0] : vector<16x1xf32> to vector<1xf32>
    %222 = vector.shape_cast %221 : vector<1xf32> to vector<1x1xf32>
    %cst_65 = arith.constant 5.120000e+02 : f32
    %223 = vector.broadcast %cst_65 : f32 to vector<1x1xf32>
    %224 = arith.divf %222, %223 : vector<1x1xf32>
    %225 = arith.mulf %219, %219 : vector<1x1xf32>
    %226 = arith.subf %224, %225 : vector<1x1xf32>
    %cst_66 = arith.constant 0.000000e+00 : f32
    %227 = vector.broadcast %cst_66 : f32 to vector<1x1xf32>
    %228 = arith.maximumf %226, %227 : vector<1x1xf32>
    %229 = vector.broadcast %219 : vector<1x1xf32> to vector<16x32xf32>
    %230 = arith.subf %208, %229 : vector<16x32xf32>
    %cst_67 = arith.constant 9.99999993E-9 : f32
    %231 = vector.broadcast %cst_67 : f32 to vector<1x1xf32>
    %232 = arith.addf %228, %231 : vector<1x1xf32>
    %233 = math.rsqrt %232 : vector<1x1xf32>
    %234 = vector.broadcast %233 : vector<1x1xf32> to vector<16x32xf32>
    %235 = arith.mulf %230, %234 : vector<16x32xf32>
    %236 = vector.broadcast %209 : vector<16x1xf32> to vector<16x32xf32>
    %237 = arith.mulf %235, %236 : vector<16x32xf32>
    %238 = vector.broadcast %210 : vector<16x1xf32> to vector<16x32xf32>
    %239 = arith.addf %237, %238 : vector<16x32xf32>
    %240 = arith.addf %160, %239 : vector<16x32xf32>
    %c2_68 = arith.constant 2 : index
    %c0_69 = arith.constant 0 : index
    %c0_70 = arith.constant 0 : index
    %241 = vector.load %arg7[%c2_68, %c0_69, %c0_70] : memref<4x2x17xf32, #tpu.memory_space<vmem>>, vector<1x2x17xf32>
    %242 = vector.shape_cast %241 : vector<1x2x17xf32> to vector<2x17xf32>
    %243 = vector.extract_strided_slice %242 {offsets = [0, 0], sizes = [2, 16], strides = [1, 1]} : vector<2x17xf32> to vector<2x16xf32>
    %cst_71 = arith.constant dense<0.000000e+00> : vector<2x32xf32>
    %244 = tpu.matmul %243, %240, %cst_71 {dimension_numbers = #tpu.dot_dimension_numbers<[1], [0], [0], [1], [0, 0, 1, 1], [], []>} : vector<2x16xf32>, vector<16x32xf32>, vector<2x32xf32> -> vector<2x32xf32>
    %245 = vector.extract_strided_slice %242 {offsets = [0, 16], sizes = [2, 1], strides = [1, 1]} : vector<2x17xf32> to vector<2x1xf32>
    %246 = vector.broadcast %245 : vector<2x1xf32> to vector<2x32xf32>
    %247 = arith.addf %244, %246 : vector<2x32xf32>
    %c2_72 = arith.constant 2 : index
    %c0_73 = arith.constant 0 : index
    %c0_74 = arith.constant 0 : index
    %248 = vector.load %arg4[%c2_72, %c0_73, %c0_74] : memref<3x16x48xf32, #tpu.memory_space<vmem>>, vector<1x16x48xf32>
    %249 = vector.shape_cast %248 : vector<1x16x48xf32> to vector<16x48xf32>
    %c2_i32_75 = arith.constant 2 : i32
    %250 = tpu.dynamic_rotate %240 by %c2_i32_75 dim 1 : vector<16x32xf32>, i32 -> vector<16x32xf32>
    %c2_i32_76 = arith.constant 2 : i32
    %251 = vector.broadcast %c2_i32_76 : i32 to vector<1x32xi32>
    %252 = arith.cmpi sge, %0, %251 : vector<1x32xi32>
    %cst_77 = arith.constant 0.000000e+00 : f32
    %253 = vector.shape_cast %252 : vector<1x32xi1> to vector<1x32xi1>
    %254 = vector.broadcast %253 : vector<1x32xi1> to vector<16x32xi1>
    %255 = vector.broadcast %cst_77 : f32 to vector<16x32xf32>
    %256 = arith.select %254, %250, %255 : vector<16x32xi1>, vector<16x32xf32>
    %c30_i32_78 = arith.constant 30 : i32
    %257 = tpu.dynamic_rotate %240 by %c30_i32_78 dim 1 : vector<16x32xf32>, i32 -> vector<16x32xf32>
    %c30_i32_79 = arith.constant 30 : i32
    %258 = vector.broadcast %c30_i32_79 : i32 to vector<1x32xi32>
    %259 = arith.cmpi slt, %0, %258 : vector<1x32xi32>
    %cst_80 = arith.constant 0.000000e+00 : f32
    %260 = vector.shape_cast %259 : vector<1x32xi1> to vector<1x32xi1>
    %261 = vector.broadcast %260 : vector<1x32xi1> to vector<16x32xi1>
    %262 = vector.broadcast %cst_80 : f32 to vector<16x32xf32>
    %263 = arith.select %261, %257, %262 : vector<16x32xi1>, vector<16x32xf32>
    %264 = tpu.concatenate %256, %240, %263 in 0 : vector<16x32xf32>, vector<16x32xf32>, vector<16x32xf32> -> vector<48x32xf32>
    %cst_81 = arith.constant dense<0.000000e+00> : vector<16x32xf32>
    %265 = tpu.matmul %249, %264, %cst_81 {dimension_numbers = #tpu.dot_dimension_numbers<[1], [0], [0], [1], [0, 0, 1, 1], [], []>} : vector<16x48xf32>, vector<48x32xf32>, vector<16x32xf32> -> vector<16x32xf32>
    %c3 = arith.constant 3 : index
    %c0_82 = arith.constant 0 : index
    %c0_83 = arith.constant 0 : index
    %266 = vector.load %arg5[%c3, %c0_82, %c0_83] : memref<4x16x6xf32, #tpu.memory_space<vmem>>, vector<1x16x6xf32>
    %267 = vector.shape_cast %266 : vector<1x16x6xf32> to vector<16x6xf32>
    %268 = vector.extract_strided_slice %7 {offsets = [96, 0], sizes = [16, 1], strides = [1, 1]} : vector<128x1xf32> to vector<16x1xf32>
    %269 = vector.extract_strided_slice %267 {offsets = [0, 1], sizes = [16, 1], strides = [1, 1]} : vector<16x6xf32> to vector<16x1xf32>
    %270 = arith.addf %268, %269 : vector<16x1xf32>
    %271 = vector.extract_strided_slice %7 {offsets = [112, 0], sizes = [16, 1], strides = [1, 1]} : vector<128x1xf32> to vector<16x1xf32>
    %272 = vector.extract_strided_slice %267 {offsets = [0, 2], sizes = [16, 1], strides = [1, 1]} : vector<16x6xf32> to vector<16x1xf32>
    %273 = arith.addf %271, %272 : vector<16x1xf32>
    %274 = vector.extract_strided_slice %267 {offsets = [0, 0], sizes = [16, 1], strides = [1, 1]} : vector<16x6xf32> to vector<16x1xf32>
    %275 = vector.broadcast %274 : vector<16x1xf32> to vector<16x32xf32>
    %276 = arith.addf %265, %275 : vector<16x32xf32>
    %277 = vector.broadcast %270 : vector<16x1xf32> to vector<16x32xf32>
    %278 = arith.mulf %277, %276 : vector<16x32xf32>
    %279 = vector.broadcast %273 : vector<16x1xf32> to vector<16x32xf32>
    %280 = arith.addf %278, %279 : vector<16x32xf32>
    %281 = vector.extract_strided_slice %267 {offsets = [0, 5], sizes = [16, 1], strides = [1, 1]} : vector<16x6xf32> to vector<16x1xf32>
    %cst_84 = arith.constant 0.000000e+00 : f32
    %282 = vector.broadcast %cst_84 : f32 to vector<16x32xf32>
    %283 = arith.maximumf %280, %282 : vector<16x32xf32>
    %cst_85 = arith.constant 0.000000e+00 : f32
    %284 = vector.broadcast %cst_85 : f32 to vector<16x32xf32>
    %285 = arith.minimumf %280, %284 : vector<16x32xf32>
    %286 = vector.broadcast %281 : vector<16x1xf32> to vector<16x32xf32>
    %287 = arith.mulf %286, %285 : vector<16x32xf32>
    %288 = arith.addf %283, %287 : vector<16x32xf32>
    %289 = vector.extract_strided_slice %267 {offsets = [0, 3], sizes = [16, 1], strides = [1, 1]} : vector<16x6xf32> to vector<16x1xf32>
    %290 = vector.extract_strided_slice %267 {offsets = [0, 4], sizes = [16, 1], strides = [1, 1]} : vector<16x6xf32> to vector<16x1xf32>
    %291 = arith.mulf %288, %288 : vector<16x32xf32>
    %292 = tpu.concatenate %288, %291 in 0 : vector<16x32xf32>, vector<16x32xf32> -> vector<32x32xf32>
    %cst_86 = arith.constant dense<0.000000e+00> : vector<32xf32>
    %293 = vector.multi_reduction <add>, %292, %cst_86 [1] : vector<32x32xf32> to vector<32xf32>
    %294 = vector.shape_cast %293 : vector<32xf32> to vector<32x1xf32>
    %295 = vector.extract_strided_slice %294 {offsets = [0, 0], sizes = [16, 1], strides = [1, 1]} : vector<32x1xf32> to vector<16x1xf32>
    %cst_87 = arith.constant dense<0.000000e+00> : vector<1xf32>
    %296 = vector.multi_reduction <add>, %295, %cst_87 [0] : vector<16x1xf32> to vector<1xf32>
    %297 = vector.shape_cast %296 : vector<1xf32> to vector<1x1xf32>
    %cst_88 = arith.constant 5.120000e+02 : f32
    %298 = vector.broadcast %cst_88 : f32 to vector<1x1xf32>
    %299 = arith.divf %297, %298 : vector<1x1xf32>
    %300 = vector.extract_strided_slice %294 {offsets = [16, 0], sizes = [16, 1], strides = [1, 1]} : vector<32x1xf32> to vector<16x1xf32>
    %cst_89 = arith.constant dense<0.000000e+00> : vector<1xf32>
    %301 = vector.multi_reduction <add>, %300, %cst_89 [0] : vector<16x1xf32> to vector<1xf32>
    %302 = vector.shape_cast %301 : vector<1xf32> to vector<1x1xf32>
    %cst_90 = arith.constant 5.120000e+02 : f32
    %303 = vector.broadcast %cst_90 : f32 to vector<1x1xf32>
    %304 = arith.divf %302, %303 : vector<1x1xf32>
    %305 = arith.mulf %299, %299 : vector<1x1xf32>
    %306 = arith.subf %304, %305 : vector<1x1xf32>
    %cst_91 = arith.constant 0.000000e+00 : f32
    %307 = vector.broadcast %cst_91 : f32 to vector<1x1xf32>
    %308 = arith.maximumf %306, %307 : vector<1x1xf32>
    %309 = vector.broadcast %299 : vector<1x1xf32> to vector<16x32xf32>
    %310 = arith.subf %288, %309 : vector<16x32xf32>
    %cst_92 = arith.constant 9.99999993E-9 : f32
    %311 = vector.broadcast %cst_92 : f32 to vector<1x1xf32>
    %312 = arith.addf %308, %311 : vector<1x1xf32>
    %313 = math.rsqrt %312 : vector<1x1xf32>
    %314 = vector.broadcast %313 : vector<1x1xf32> to vector<16x32xf32>
    %315 = arith.mulf %310, %314 : vector<16x32xf32>
    %316 = vector.broadcast %289 : vector<16x1xf32> to vector<16x32xf32>
    %317 = arith.mulf %315, %316 : vector<16x32xf32>
    %318 = vector.broadcast %290 : vector<16x1xf32> to vector<16x32xf32>
    %319 = arith.addf %317, %318 : vector<16x32xf32>
    %320 = arith.addf %240, %319 : vector<16x32xf32>
    %c3_93 = arith.constant 3 : index
    %c0_94 = arith.constant 0 : index
    %c0_95 = arith.constant 0 : index
    %321 = vector.load %arg7[%c3_93, %c0_94, %c0_95] : memref<4x2x17xf32, #tpu.memory_space<vmem>>, vector<1x2x17xf32>
    %322 = vector.shape_cast %321 : vector<1x2x17xf32> to vector<2x17xf32>
    %323 = vector.extract_strided_slice %322 {offsets = [0, 0], sizes = [2, 16], strides = [1, 1]} : vector<2x17xf32> to vector<2x16xf32>
    %cst_96 = arith.constant dense<0.000000e+00> : vector<2x32xf32>
    %324 = tpu.matmul %323, %320, %cst_96 {dimension_numbers = #tpu.dot_dimension_numbers<[1], [0], [0], [1], [0, 0, 1, 1], [], []>} : vector<2x16xf32>, vector<16x32xf32>, vector<2x32xf32> -> vector<2x32xf32>
    %325 = vector.extract_strided_slice %322 {offsets = [0, 16], sizes = [2, 1], strides = [1, 1]} : vector<2x17xf32> to vector<2x1xf32>
    %326 = vector.broadcast %325 : vector<2x1xf32> to vector<2x32xf32>
    %327 = arith.addf %324, %326 : vector<2x32xf32>
    %328 = tpu.concatenate %87, %167, %247, %327 in 0 : vector<2x32xf32>, vector<2x32xf32>, vector<2x32xf32>, vector<2x32xf32> -> vector<8x32xf32>
    %c0_97 = arith.constant 0 : index
    %c0_98 = arith.constant 0 : index
    %c0_99 = arith.constant 0 : index
    %329 = vector.load %arg8[%c0_97, %c0_98, %c0_99] : memref<1x8x32xf32, #tpu.memory_space<vmem>>, vector<1x8x32xf32>
    %330 = vector.shape_cast %329 : vector<1x8x32xf32> to vector<8x32xf32>
    %331 = vector.shape_cast %328 : vector<8x32xf32> to vector<1x8x32xf32>
    tpu.vector_store %arg8[%c0_97, %c0_98, %c0_99], %331 {strides = array<i32>} : memref<1x8x32xf32, #tpu.memory_space<vmem>>, vector<1x8x32xf32>,
    return
  }
  func.func @transform_0(%arg0: i32) -> (i32, i32, i32) {
    %c0_i32 = arith.constant 0 : i32
    %c0_i32_0 = arith.constant 0 : i32
    %c0_i32_1 = arith.constant 0 : i32
    return %arg0, %c0_i32, %c0_i32_0 : i32, i32, i32
  }
  func.func @transform_1(%arg0: i32) -> (i32, i32, i32) {
    %c0_i32 = arith.constant 0 : i32
    %c0_i32_0 = arith.constant 0 : i32
    %c0_i32_1 = arith.constant 0 : i32
    return %arg0, %c0_i32, %c0_i32_0 : i32, i32, i32
  }
  func.func @transform_2(%arg0: i32) -> (i32, i32) {
    %c0_i32 = arith.constant 0 : i32
    %c0_i32_0 = arith.constant 0 : i32
    %c0_i32_1 = arith.constant 0 : i32
    return %c0_i32, %c0_i32_0 : i32, i32
  }
  func.func @transform_3(%arg0: i32) -> (i32, i32, i32) {
    %c0_i32 = arith.constant 0 : i32
    %c0_i32_0 = arith.constant 0 : i32
    %c0_i32_1 = arith.constant 0 : i32
    %c0_i32_2 = arith.constant 0 : i32
    return %c0_i32, %c0_i32_0, %c0_i32_1 : i32, i32, i32
  }
  func.func @transform_4(%arg0: i32) -> (i32, i32, i32) {
    %c0_i32 = arith.constant 0 : i32
    %c0_i32_0 = arith.constant 0 : i32
    %c0_i32_1 = arith.constant 0 : i32
    %c0_i32_2 = arith.constant 0 : i32
    return %c0_i32, %c0_i32_0, %c0_i32_1 : i32, i32, i32
  }
  func.func @transform_5(%arg0: i32) -> (i32, i32) {
    %c0_i32 = arith.constant 0 : i32
    %c0_i32_0 = arith.constant 0 : i32
    %c0_i32_1 = arith.constant 0 : i32
    return %c0_i32, %c0_i32_0 : i32, i32
  }
  func.func @transform_6(%arg0: i32) -> (i32, i32, i32) {
    %c0_i32 = arith.constant 0 : i32
    %c0_i32_0 = arith.constant 0 : i32
    %c0_i32_1 = arith.constant 0 : i32
    %c0_i32_2 = arith.constant 0 : i32
    return %c0_i32, %c0_i32_0, %c0_i32_1 : i32, i32, i32
  }
  func.func @transform_7(%arg0: i32) -> (i32, i32, i32) {
    %c0_i32 = arith.constant 0 : i32
    %c0_i32_0 = arith.constant 0 : i32
    %c0_i32_1 = arith.constant 0 : i32
    return %arg0, %c0_i32, %c0_i32_0 : i32, i32, i32
  }
}

</mosaic_0001>

<bundles_post_ra>
// kernel: wavesplit_forward.3
= control target key start
LH: loop header
LB: loop body
LE: loop exit
PB: predicated region body
PF: predicated region fallthrough
CT: control target
= control target key end

     0   :  { %s2411_s24 = smov 0   ;;  %s2833_s0 = inlined_call_operand.vmem [shape: f32[2,1,36], index: 0, kind: input, shape index: {}]   ;;  %s2834_s1 = inlined_call_operand.vmem [shape: f32[2,32,1], index: 1, kind: input, shape index: {}]   ;;  %s2835_s2 = inlined_call_operand.vmem [shape: f32[16,3], index: 2, kind: input, shape index: {}]   ;;  %s2836_s3 = inlined_call_operand.vmem [shape: f32[3,16,48], index: 3, kind: input, shape index: {}]   ;;  %s2837_s4 = inlined_call_operand.vmem [shape: f32[4,16,6], index: 4, kind: input, shape index: {}]   ;;  %s2838_s5 = inlined_call_operand.vmem [shape: f32[128,32], index: 5, kind: input, shape index: {}]   ;;  %s2839_s6 = inlined_call_operand.vmem [shape: f32[4,2,17], index: 6, kind: input, shape index: {}]   ;;  %s2840_s7 = inlined_call_operand.vmem [shape: f32[2,8,32], index: 7, kind: output, shape index: {}]  }
   0x1 LB: > { %s1911_s25 = sadd.s32 4294967295, %s2353_s24   ;;  %p1915_p0 = scmp.ge.s32.totalorder %s2353_s24, 1  ;;  %s2353_s24 = sphi %s2411_s24, %s17_s24  }
   0x2   : > { %p245_p1 = scmp.lt.s32.totalorder %s2353_s24, 3 }
   0x4   : > { %p246_p2 = pnand %p1915_p0, %p245_p1 }
   0x5   : > { %p279_p3 = scmp.lt.s32.totalorder (!%p246_p2), %s1911_s25, 1  ;;  %v300_v0 = vld [vmem:[%s2838_s5] sm:$0xff] (!%p246_p2)  ;;  %vm316_vm0 = vcmask (!%p246_p2), 261120   ;;  %v2355_v1 = vmov (!%p246_p2), 1   ;;  %v2356_v3 = vmov (!%p246_p2), 2   ;;  %v299_v4 = vld [vmem:[%s2835_s2 + $0x8] sm:$0xff] (!%p246_p2) }
   0x6   : > { %249 = sbr.rel (%p246_p2) target bundleno = 4093 (0xffd), region = 48  ;;  %2038 = vmatprep.mubr.msk.f32.mxu0 (!%p246_p2), %vm316_vm0, %v300_v0  ;;  %2227 = vset.pattern.permute.xlu0 (!%p246_p2), %v2355_v1  ;;  %v298_v2 = vld [vmem:[%s2835_s2] sm:$0xff] (!%p246_p2)  ;;  %v2443_v12 = vld [vmem:[%s2837_s4 + $0x8] sm:$0xff] (!%p246_p2)  ;;  %s2357_s17 = smov (!%p246_p2), 127   ;;  %v2358_v13 = vmov (!%p246_p2), 0   ;;  %v302_v15 = vld [vmem:[%s2838_s5 + $0x10] sm:$0xff] (!%p246_p2) }
   0x7   : > { %531 = vperm.xlu0 (!%p246_p2), %2227, %v298_v2   ;;  %2228 = vset.pattern.permute.xlu1 (!%p246_p2), %v2356_v3  ;;  %v2438_v10 = vld [vmem:[%s2837_s4] sm:$0xff] (!%p246_p2)  ;;  %v301_v14 = vld [vmem:[%s2838_s5 + $0x8] sm:$0xff] (!%p246_p2)  ;;  %s2359_s20 = smov (!%p246_p2), 126   ;;  %v303_v16 = vld [vmem:[%s2838_s5 + $0x18] sm:$0xff] (!%p246_p2)  ;;  %v2360_v38 = vmov (!%p246_p2), 5   ;;  %s2364_s15 = smov (!%p246_p2), 32  }
   0x8   : > { %551 = vperm.xlu1 (!%p246_p2), %2228, %v298_v2   ;;  %vm805_vm1 = vcmask (!%p246_p2), 1047808   ;;  %vm2365_vm2 = vmmov (!%p246_p2), 0   ;;  %vm730_vm3 = vcmask (!%p246_p2), 130048   ;;  %s2367_s22 = smov (!%p246_p2), 98   ;;  %vm871_vm4 = vcmask (!%p246_p2), 392192   ;;  %s2368_s8 = smov (!%p246_p2), 1  }
   0x9   : > { %s2369_s23 = smov (!%p246_p2), 97   ;;  %vm1842_vm13 = vcmask (!%p246_p2), 1041408   ;;  %vm1844_vm14 = vcmask (!%p246_p2), 1043456   ;;  %vm1846_vm15 = vcmask (!%p246_p2), 1045504  }
   0xb   : > { %535 = vperm.xlu0 (!%p246_p2), %2227, %v299_v4  }
   0xc   : > { %555 = vperm.xlu1 (!%p246_p2), %2228, %v299_v4  }
   0xd   : > { %s2846_s25 = smov (!%p279_p3, %s1911_s25), 1 }
   0xe   : > { %s1973_s9 = sshll.u32 %s2846_s25, 5  ;;  %s281_s29 = scalar_lea.vmem %s2833_s0, %s2846_s25 }
   0xf   : > { %s286_s12 = scalar_lea.vmem %s2834_s1, %s1973_s9  ;;  %574 = vrot.lane.b32.xlu0 %v2438_v10, %s2357_s17  ;;  %v1935_v17 = vld [vmem:[%s281_s29] ss:$0 sm:$0xff] }
  0x10   : > { %v294_v5 = vld [vmem:[%s286_s12] sm:$0xff]  ;;  %v295_v6 = vld [vmem:[%s286_s12 + $0x8] sm:$0xff]  ;;  %v296_v7 = vld [vmem:[%s286_s12 + $0x10] sm:$0xff]  ;;  %576 = vrot.lane.b32.xlu1 %v2443_v12, %s2357_s17  ;;  %2229 = vset.pattern.permute.xlu0 %v2358_v13 }
  0x11   : > { %v2135_v8 = vpack.c.bf16 %v295_v6, %v294_v5  ;;  %v297_v9 = vld [vmem:[%s286_s12 + $0x18] sm:$0xff]  ;;  %2230 = vset.pattern.permute.xlu1 %v2358_v13 }
  0x12   : > { %v2139_v11 = vpack.c.bf16 %v297_v9, %v296_v7 }
  0x13   : > { %2136 = vmatprep.subr.bf16.mxu0 %v2135_v8  ;;  %582 = vrot.lane.b32.xlu0 %v2438_v10, %s2359_s20 }
  0x14   : > { %2138 = vmatpush3.bf16.msra.mxu0 %v2135_v8  ;;  %584 = vrot.lane.b32.xlu1 %v2443_v12, %s2359_s20 }
  0x15   : > { %2140 = vmatprep.subr.bf16.mxu0 %v2139_v11 }
  0x17   : > { %512 = vperm.xlu0 %2229, %v298_v2  }
  0x18   : > { %2142 = vmatpush3.bf16.msra.mxu0 %v2139_v11  ;;  %517 = vperm.xlu1 %2230, %v299_v4   ;;  %v2361_v11 = vmov 3  }
  0x1b   : > { %2039 = vmatmul.mubr.msk.f32.vlgmr.msra.gmra.mrb[0].mxu0 %vm316_vm0, %v301_v14  ;;  %595 = vperm.xlu0 %2229, %v2443_v12  }
  0x1c   : > { %2041 = vmatprep.mubr.msk.f32.mxu0 %vm316_vm0, %v302_v15  ;;  %591 = vperm.xlu1 %2230, %v2438_v10  }
  0x1f   : > { %2042 = vmatmul.mubr.msk.f32.gmra.mrb[2].mxu0 %vm316_vm0, %v303_v16 }
  0x86   : > { %v532_v18 = vpop.permute.xlu0 %531 }
  0x87   : > { %v538_v19 = vmul.f32 %v1935_v17, %v532_v18  ;;  %v552_v20 = vpop.permute.xlu1 %551 }
  0x88   : > { %v558_v21 = vmul.f32 %v1935_v17, %v552_v20 }
  0x89   : > { %542 = vrot.lane.b32.xlu1 %v538_v19, %s2357_s17 }
  0x8a   : > { %v536_v22 = vpop.permute.xlu0 %535 }
  0x8b   : > { %v539_v23 = vmul.f32 %v1935_v17, %v536_v22  ;;  %v556_v24 = vpop.permute.xlu1 %555 }
  0x8c   : > { %v559_v25 = vmul.f32 %v1935_v17, %v556_v24 }
  0x8d   : > { %544 = vrot.lane.b32.xlu0 %v539_v23, %s2357_s17  ;;  %562 = vrot.lane.b32.xlu1 %v558_v21, %s2359_s20  ;;  %v2362_v23 = vmov 4  }
  0x8e   : > { %v575_v27 = vpop.permute.xlu0 %574 }
  0x8f   : > { %v577_v26 = vpop.permute.xlu1 %576 }
  0x91   : > { %564 = vrot.lane.b32.xlu0 %v559_v25, %s2359_s20 }
  0x92   : > { %v583_v33 = vpop.permute.xlu0 %582 }
  0x93   : > { %v585_v32 = vpop.permute.xlu1 %584 }
  0x96   : > { %v513_v39 = vpop.permute.xlu0 %512 }
  0x97   : > { %v518_v40 = vpop.permute.xlu1 %517  ;;  %v526_v46 = vmul.f32 %v1935_v17, %v513_v39 }
  0x98   : > { %v527_v44 = vmul.f32 %v1935_v17, %v518_v40 }
  0x9a   : > { %v596_v41 = vpop.permute.xlu0 %595 }
  0x9b   : > { %v592_v42 = vpop.permute.xlu1 %591 }
  0xee   : > { %v2040_v28 = vpop.f32.mrb[0].mxu0 }
  0xef   : > { %v581_v29 = vadd.f32 %v2040_v28, %v577_v26  ;;  %v431_v30 = vpop.f32.mrb[1].mxu0 }
  0xf0   : > { %v580_v31 = vadd.f32 %v575_v27, %v431_v30 }
  0xf1   : > { %607 = vperm.xlu0 %2229, %v581_v29  }
  0xf2   : > { %v2043_v34 = vpop.f32.mrb[2].mxu0  ;;  %602 = vperm.xlu1 %2230, %v580_v31  }
  0xf3   : > { %v589_v35 = vadd.f32 %v2043_v34, %v585_v32  ;;  %v441_v36 = vpop.f32.mrb[3].mxu0 }
  0xf4   : > { %v588_v37 = vadd.f32 %v583_v33, %v441_v36 }
  0xf5   : > { %619 = vperm.xlu0 %2229, %v589_v35  }
  0xf6   : > { %614 = vperm.xlu1 %2230, %v588_v37  }
  0xf9   : > { %2232 = vset.pattern.permute.xlu0 %v2360_v38 }
  0xfa   : > { %633 = vperm.xlu0 %2232, %v2443_v12   ;;  %2231 = vset.pattern.permute.xlu1 %v2360_v38 }
  0xfb   : > { %629 = vperm.xlu1 %2231, %v2438_v10   ;;  %v543_v45 = vpop.permute.xlu1 %542 }
  0xfc   : > { %v548_v48 = vadd.f32 %v543_v45, %v526_v46 }
  0xfe   : > { %2234 = vset.pattern.permute.xlu0 %v2361_v11 }
  0xff   : > { %v545_v43 = vpop.permute.xlu0 %544  ;;  %v563_v50 = vpop.permute.xlu1 %562  ;;  %2233 = vset.pattern.permute.xlu1 %v2361_v11 }
 0x100   : > { %v549_v47 = vadd.f32 %v545_v43, %v527_v44  ;;  %v568_v52 = vadd.f32 %v563_v50, %v548_v48  ;;  %v2363_v48 = vmov 0.0|0.0  }
 0x101   : > { %2143 = vmatprep.subr.bf16.mxu1 %v2363_v48 }
 0x102   : > { %v598_v56 = vadd.f32 %v592_v42, %v568_v52 }
 0x103   : > { %v565_v49 = vpop.permute.xlu0 %564 }
 0x104   : > { %v569_v51 = vadd.f32 %v565_v49, %v549_v47 }
 0x106   : > { %v599_v54 = vadd.f32 %v596_v41, %v569_v51 }
 0x170   : > { %v608_v53 = vpop.permute.xlu0 %607 }
 0x171   : > { %v603_v55 = vpop.permute.xlu1 %602  ;;  %v611_v57 = vmul.f32 %v608_v53, %v599_v54 }
 0x172   : > { %v610_v58 = vmul.f32 %v603_v55, %v598_v56 }
 0x174   : > { %v620_v59 = vpop.permute.xlu0 %619 }
 0x175   : > { %v623_v60 = vadd.f32 %v620_v59, %v611_v57  ;;  %v615_v61 = vpop.permute.xlu1 %614 }
 0x176   : > { %v622_v62 = vadd.f32 %v615_v61, %v610_v58 }
 0x177   : > { %v627_v63 = vmin.f32 %v623_v60, 0.0  ;;  %v625_v2 = vmax.f32 %v623_v60, 0.0 }
 0x178   : > { %v626_v0 = vmin.f32 %v622_v62, 0.0  ;;  %v624_v5 = vmax.f32 %v622_v62, 0.0  ;;  %v304_v62 = vld [vmem:[%s2838_s5 + $0x20] sm:$0xff] }
 0x179   : > { %v634_v1 = vpop.permute.xlu0 %633  ;;  %2044 = vmatprep.mubr.msk.f32.mxu0 %vm316_vm0, %v304_v62 }
 0x17a   : > { %v637_v3 = vmul.f32 %v634_v1, %v627_v63  ;;  %v630_v4 = vpop.permute.xlu1 %629  ;;  %v305_v63 = vld [vmem:[%s2838_s5 + $0x28] sm:$0xff] }
 0x17b   : > { %v636_v6 = vmul.f32 %v630_v4, %v626_v0  ;;  %v306_v0 = vld [vmem:[%s2838_s5 + $0x30] sm:$0xff]  ;;  %2045 = vmatmul.mubr.msk.f32.gmra.mrb[4].mxu0 %vm316_vm0, %v305_v63 }
 0x17c   : > { %v2481_v7 = vadd.f32 %v637_v3, %v625_v2  ;;  %2047 = vmatprep.mubr.msk.f32.mxu0 %vm316_vm0, %v306_v0  ;;  %v307_v2 = vld [vmem:[%s2838_s5 + $0x38] sm:$0xff] }
 0x17d   : > { %v2483_v8 = vadd.f32 %v636_v6, %v624_v5 }
 0x17e   : > { %648 = vrot.lane.b32.xlu1 %v2481_v7, %s2357_s17  ;;  %v641_v14 = vmul.f32 %v2481_v7, %v2481_v7 }
 0x17f   : > { %v640_v9 = vmul.f32 %v2483_v8, %v2483_v8  ;;  %2048 = vmatmul.mubr.msk.f32.gmra.mrb[6].mxu0 %vm316_vm0, %v307_v2 }
 0x181   : > { %650 = vrot.lane.b32.xlu0 %v640_v9, %s2357_s17 }
 0x182   : > { %646 = vrot.lane.b32.xlu1 %v2483_v8, %s2357_s17 }
 0x186   : > { %652 = vrot.lane.b32.xlu1 %v641_v14, %s2357_s17 }
 0x1f0   : > { %v649_v15 = vpop.permute.xlu1 %648 }
 0x1f1   : > { %v661_v16 = vsel %vm316_vm0, %v649_v15, 0.0 }
 0x1f2   : > { %662 = vadd.xlane.f32.xlu1 %v661_v16  ;;  %v2544_v16 = vld [vmem:[%s2837_s4 + $0x18] sm:$0xff] }
 0x1f3   : > { %v651_v19 = vpop.permute.xlu0 %650 }
 0x1f4   : > { %v647_v17 = vpop.permute.xlu1 %646  ;;  %v664_v20 = vsel %vm316_vm0, %v651_v19, 0.0 }
 0x1f5   : > { %v658_v18 = vsel %vm316_vm0, %v647_v17, 0.0  ;;  %v2366_v17 = vmov 0.0  }
 0x1f6   : > { %659 = vadd.xlane.f32.xlu0 %v658_v18  ;;  %2066 = vmatprep.mubr.msk.f32.mxu1 %vm2365_vm2, %v2366_v17  ;;  %v2556_v18 = vld [vmem:[%s2839_s6] sm:$0x3] }
 0x1f8   : > { %v653_v21 = vpop.permute.xlu1 %652 }
 0x1f9   : > { %v667_v22 = vsel %vm316_vm0, %v653_v21, 0.0 }
 0x1fa   : > { %665 = vadd.xlane.f32.xlu0 %v664_v20 }
 0x1fe   : > { %668 = vadd.xlane.f32.xlu0 %v667_v22 }
 0x203   : > { %697 = vperm.xlu1 %2233, %v2438_v10  }
 0x207   : > { %2235 = vset.pattern.permute.xlu1 %v2362_v23 }
 0x208   : > { %707 = vperm.xlu1 %2235, %v2438_v10  }
 0x20c   : > { %711 = vperm.xlu1 %2235, %v2443_v12  }
 0x210   : > { %2261 = vset.pattern.permute.xlu1 %v2358_v13 }
 0x214   : > { %701 = vperm.xlu0 %2234, %v2443_v12  }
 0x218   : > { %2262 = vset.pattern.permute.xlu0 %v2358_v13 }
 0x219   : > { %849 = vrot.lane.b32.xlu0 %v2544_v16, %s2357_s17 }
 0x21d   : > { %857 = vrot.lane.b32.xlu0 %v2544_v16, %s2359_s20 }
 0x221   : > { %868 = vperm.xlu0 %2262, %v2544_v16  }
 0x27f   : > { %v663_v24 = vpop.xlane.xlu1 %662 }
 0x283   : > { %v660_v25 = vpop.xlane.xlu0 %659  ;;  %v698_v47 = vpop.permute.xlu1 %697 }
 0x284   : > { %v670_v26 = vadd.f32 %v663_v24, %v660_v25 }
 0x286   : > { %v671_v27 = vrot.slane %v670_v26, 4 }
 0x287   : > { %v666_v28 = vpop.xlane.xlu0 %665  ;;  %v708_v49 = vpop.permute.xlu1 %707 }
 0x288   : > { %v672_v29 = vadd.f32 %v671_v27, %v670_v26  ;;  %v803_v26 = vld [vmem:[%s2836_s3] sm:$0xff]  ;;  %v2046_v27 = vpop.f32.mrb[4].mxu0 }
 0x28a   : > { %v673_v30 = vrot.slane %v672_v29, 2 }
 0x28b   : > { %v669_v31 = vpop.xlane.xlu0 %668  ;;  %v712_v58 = vpop.permute.xlu1 %711 }
 0x28c   : > { %v674_v32 = vadd.f32 %v673_v30, %v672_v29  ;;  %v679_v33 = vadd.f32 %v669_v31, %v666_v28  ;;  %v451_v28 = vpop.f32.mrb[5].mxu0  ;;  %v2571_v29 = vld [vmem:[%s2837_s4 + $0x10] sm:$0xff] }
 0x28d   : > { %v2049_v30 = vpop.f32.mrb[6].mxu0 }
 0x28e   : > { %v675_v34 = vrot.slane %v674_v32, 1  ;;  %v680_v10 = vrot.slane %v679_v33, 4  ;;  %v461_v31 = vpop.f32.mrb[7].mxu0 }
 0x290   : > { %v681_v35 = vadd.f32 %v680_v10, %v679_v33  ;;  %v676_v36 = vadd.f32 %v675_v34, %v674_v32  ;;  %v291_v32 = vlaneseq }
 0x292   : > { %v682_v37 = vrot.slane %v681_v35, 2  ;;  %v678_v40 = vmul.f32 0.001953125, %v676_v36  ;;  %v2578_v33 = vand.u32 127, %v291_v32  ;;  %v1960_v36 = vld [vmem:[%s2836_s3 + $0x28] sm:$0xff] }
 0x293   : > { %v702_v53 = vpop.permute.xlu0 %701 }
 0x294   : > { %v683_v39 = vadd.f32 %v682_v37, %v681_v35  ;;  %v687_v42 = vmul.f32 %v678_v40, %v678_v40  ;;  %v690_v50 = vsub.f32 %v2483_v8, %v678_v40  ;;  %v691_v51 = vsub.f32 %v2481_v7, %v678_v40 }
 0x295   : > { %vm818_vm5 = vcmp.ge.s32.totalorder %v2578_v33, 2  ;;  %vm831_vm7 = vcmp.lt.s32.totalorder %v2578_v33, 30  ;;  %vm1164_vm9 = vcmp.ge.s32.totalorder %v2578_v33, 1  ;;  %vm1177_vm11 = vcmp.lt.s32.totalorder %v2578_v33, 31  ;;  %v1948_v33 = vld [vmem:[%s2836_s3 + $0x18] sm:$0xff] }
 0x296   : > { %v684_v12 = vrot.slane %v683_v39, 1  ;;  %vm2581_vm6 = vmpackc.low %vm818_vm5, %vm818_vm5 }
 0x297   : > { %vm2591_vm8 = vmpackc.low %vm831_vm7, %vm831_vm7 }
 0x298   : > { %v685_v41 = vadd.f32 %v684_v12, %v683_v39  ;;  %vm2166_vm10 = vmpackc.low %vm1164_vm9, %vm1164_vm9 }
 0x299   : > { %vm2176_vm12 = vmpackc.low %vm1177_vm11, %vm1177_vm11 }
 0x29a   : > { %v686_v43 = vmul.f32 0.001953125, %v685_v41  ;;  %v850_v41 = vpop.permute.xlu0 %849 }
 0x29c   : > { %v688_v44 = vsub.f32 %v686_v43, %v687_v42 }
 0x29e   : > { %v689_v45 = vmax.f32 %v688_v44, 0.0 }
 0x2a0   : > { %v692_v46 = vadd.f32 1e-08, %v689_v45 }
 0x2a2   : > { %2339 = vrsqrt.f32 %v692_v46  ;;  %v854_v46 = vadd.f32 %v2046_v27, %v850_v41 }
 0x2ac   : > { %v2340_v52 = vpop.eup %2339 }
 0x2ad   : > { %v694_v54 = vmul.f32 %v2340_v52, %v690_v50  ;;  %v695_v55 = vmul.f32 %v2340_v52, %v691_v51  ;;  %v804_v51 = vld [vmem:[%s2836_s3 + $0x8] sm:$0xff] }
 0x2af   : > { %v704_v56 = vmul.f32 %v698_v47, %v694_v54  ;;  %v705_v57 = vmul.f32 %v702_v53, %v695_v55  ;;  %v858_v47 = vpop.permute.xlu0 %857 }
 0x2b0   : > { %v862_v52 = vadd.f32 %v2049_v30, %v858_v47 }
 0x2b1   : > { %v2511_v59 = vadd.f32 %v708_v49, %v704_v56  ;;  %v2513_v60 = vadd.f32 %v712_v58, %v705_v57 }
 0x2b3   : > { %v2236_v61 = vpack.i.bf16 %v2513_v60, %v2511_v59  ;;  %v869_v58 = vpop.permute.xlu0 %868 }
 0x2b5   : > { %2237 = vrot.lane.b32.xlu1 %v2236_v61, %s2357_s17 }
 0x327   : > { %v2238_v1 = vpop.permute.xlu1 %2237 }
 0x328   : > { %v2240_v3 = vunpack.i.h.bf16 %v2238_v1  ;;  %v2239_v4 = vunpack.i.l.bf16 %v2238_v1  ;;  %2242 = vrot.lane.b32.xlu1 %v2238_v1, %s2364_s15 }
 0x32a   : > { %v2533_v5 = vpack.c.bf16 %v2240_v3, %v2239_v4 }
 0x32c   : > { %2145 = vmatpush3.bf16.msra.mxu1 %v2533_v5 }
 0x32f   : > { %2067 = vmatmul.mubr.msk.f32.vlgmr.msra.gmra.mrb[0].mxu1 %vm730_vm3, %v2556_v18 }
 0x330   : > { %2081 = vmatprep.mubr.msk.f32.mxu1 %vm871_vm4, %v803_v26 }
 0x39a   : > { %v2243_v6 = vpop.permute.xlu1 %2242 }
 0x39b   : > { %v2245_v7 = vunpack.i.h.bf16 %v2243_v6  ;;  %v2244_v8 = vunpack.i.l.bf16 %v2243_v6 }
 0x39d   : > { %v808_v9 = vsel %vm805_vm1, %v2244_v8, %v2239_v4  ;;  %v811_v14 = vsel %vm805_vm1, %v2245_v7, %v2240_v3 }
 0x39e   : > { %v2246_v15 = vpack.i.bf16 %v811_v14, %v808_v9 }
 0x3a0   : > { %2247 = vrot.lane.b32.xlu1 %v2246_v15, %s2364_s15 }
 0x402   : > { %v2613_v53 = vpop.f32.mrb[0].mxu1 }
 0x403   : > { %v2068_v54 = vpop.f32.mrb[1].mxu1 }
 0x412   : > { %v2248_v19 = vpop.permute.xlu1 %2247 }
 0x413   : > { %v2250_v20 = vunpack.i.h.bf16 %v2248_v19  ;;  %v2249_v21 = vunpack.i.l.bf16 %v2248_v19 }
 0x415   : > { %v816_v22 = vsel %vm805_vm1, %v2249_v21, %v2239_v4  ;;  %v817_v24 = vsel %vm805_vm1, %v2250_v20, %v2240_v3 }
 0x416   : > { %v2251_v25 = vpack.i.bf16 %v817_v24, %v816_v22 }
 0x418   : > { %2252 = vrot.lane.b32.xlu1 %v2251_v25, %s2367_s22 }
 0x41c   : > { %2257 = vrot.lane.b32.xlu1 %v2251_v25, %s2359_s20 }
 0x420   : > { %847 = vrot.lane.b32.xlu1 %v2571_v29, %s2357_s17 }
 0x424   : > { %855 = vrot.lane.b32.xlu1 %v2571_v29, %s2359_s20 }
 0x428   : > { %864 = vperm.xlu1 %2261, %v2571_v29  }
 0x48a   : > { %v2253_v34 = vpop.permute.xlu1 %2252 }
 0x48b   : > { %v2255_v10 = vunpack.i.h.bf16 %v2253_v34  ;;  %v2254_v35 = vunpack.i.l.bf16 %v2253_v34 }
 0x48d   : > { %v2146_v37 = vpack.c.bf16 %v2255_v10, %v2254_v35 }
 0x48e   : > { %v2258_v39 = vpop.permute.xlu1 %2257 }
 0x48f   : > { %v2260_v40 = vunpack.i.h.bf16 %v2258_v39  ;;  %v2259_v12 = vunpack.i.l.bf16 %v2258_v39  ;;  %2148 = vmatprep.subr.msk.bf16.mxu1 %vm2581_vm6, %v2146_v37 }
 0x490   : > { %2151 = vmatpush3.bf16.msk.msra.mxu1 %vm2581_vm6, %v2146_v37 }
 0x491   : > { %2153 = vmatprep.subr.bf16.mxu1 %v2533_v5  ;;  %v2156_v44 = vpack.c.bf16 %v2260_v40, %v2259_v12 }
 0x492   : > { %v848_v43 = vpop.permute.xlu1 %847 }
 0x493   : > { %v853_v45 = vadd.f32 %v848_v43, %v451_v28 }
 0x494   : > { %2155 = vmatpush3.bf16.msra.mxu1 %v2533_v5 }
 0x495   : > { %2158 = vmatprep.subr.msk.bf16.mxu1 %vm2591_vm8, %v2156_v44  ;;  %955 = vperm.xlu1 %2261, %v853_v45  }
 0x496   : > { %v856_v49 = vpop.permute.xlu1 %855 }
 0x497   : > { %v861_v50 = vadd.f32 %v856_v49, %v461_v31 }
 0x498   : > { %2161 = vmatpush3.bf16.msk.msra.mxu1 %vm2591_vm8, %v2156_v44 }
 0x499   : > { %960 = vperm.xlu1 %2261, %v854_v46   ;;  %967 = vperm.xlu0 %2262, %v861_v50  }
 0x49a   : > { %2162 = vmatprep.subr.bf16.mxu1 %v2363_v48 }
 0x49b   : > { %2082 = vmatmul.mubr.msk.f32.vlgmr.msra.gmra.mrb[2].mxu1 %vm871_vm4, %v804_v51 }
 0x49c   : > { %2088 = vmatprep.mubr.msk.f32.mxu1 %vm2365_vm2, %v2366_v17 }
 0x49d   : > { %972 = vperm.xlu1 %2261, %v862_v52   ;;  %2263 = vset.pattern.permute.xlu0 %v2360_v38 }
 0x49e   : > { %982 = vperm.xlu0 %2263, %v2571_v29  }
 0x4a1   : > { %2264 = vset.pattern.permute.xlu1 %v2360_v38 }
 0x4a2   : > { %986 = vperm.xlu1 %2264, %v2544_v16   ;;  %2265 = vset.pattern.permute.xlu0 %v2361_v11 }
 0x4a6   : > { %2266 = vset.pattern.permute.xlu1 %v2361_v11 }
 0x4a7   : > { %v865_v55 = vpop.permute.xlu1 %864 }
 0x514   : > { %v956_v56 = vpop.permute.xlu1 %955 }
 0x518   : > { %v961_v57 = vpop.permute.xlu1 %960  ;;  %v968_v3 = vpop.permute.xlu0 %967 }
 0x51c   : > { %v973_v0 = vpop.permute.xlu1 %972 }
 0x51d   : > { %v983_v9 = vpop.permute.xlu0 %982 }
 0x521   : > { %v987_v6 = vpop.permute.xlu1 %986 }
 0x56e   : > { %v2083_v61 = vpop.f32.mrb[2].mxu1 }
 0x56f   : > { %v950_v62 = vadd.f32 %v2083_v61, %v869_v58  ;;  %v944_v63 = vpop.f32.mrb[3].mxu1 }
 0x570   : > { %v945_v1 = vadd.f32 %v944_v63, %v865_v55 }
 0x571   : > { %v964_v2 = vmul.f32 %v961_v57, %v950_v62 }
 0x572   : > { %v963_v4 = vmul.f32 %v956_v56, %v945_v1 }
 0x573   : > { %v976_v5 = vadd.f32 %v973_v0, %v964_v2 }
 0x574   : > { %v975_v7 = vadd.f32 %v968_v3, %v963_v4 }
 0x575   : > { %v980_v8 = vmin.f32 %v976_v5, 0.0  ;;  %v978_v15 = vmax.f32 %v976_v5, 0.0 }
 0x576   : > { %v979_v14 = vmin.f32 %v975_v7, 0.0  ;;  %v977_v20 = vmax.f32 %v975_v7, 0.0 }
 0x577   : > { %v990_v19 = vmul.f32 %v987_v6, %v980_v8 }
 0x578   : > { %v989_v21 = vmul.f32 %v983_v9, %v979_v14 }
 0x579   : > { %v992_v22 = vadd.f32 %v990_v19, %v978_v15 }
 0x57a   : > { %v991_v24 = vadd.f32 %v989_v21, %v977_v20  ;;  %v308_v21 = vld [vmem:[%s2838_s5 + $0x40] sm:$0xff] }
 0x57b   : > { %v998_v25 = vsel %vm316_vm0, %v992_v22, 0.0  ;;  %v994_v28 = vmul.f32 %v992_v22, %v992_v22  ;;  %2050 = vmatprep.mubr.msk.f32.mxu0 %vm316_vm0, %v308_v21 }
 0x57c   : > { %999 = vadd.xlane.f32.xlu0 %v998_v25  ;;  %v995_v26 = vsel %vm316_vm0, %v991_v24, 0.0  ;;  %v993_v27 = vmul.f32 %v991_v24, %v991_v24 }
 0x57d   : > { %996 = vadd.xlane.f32.xlu1 %v995_v26  ;;  %v1004_v31 = vsel %vm316_vm0, %v994_v28, 0.0 }
 0x57e   : > { %v1001_v30 = vsel %vm316_vm0, %v993_v27, 0.0 }
 0x580   : > { %1002 = vadd.xlane.f32.xlu0 %v1001_v30 }
 0x581   : > { %1005 = vadd.xlane.f32.xlu1 %v1004_v31 }
 0x592   : > { %1037 = vperm.xlu1 %2266, %v2544_v16  }
 0x596   : > { %2267 = vset.pattern.permute.xlu1 %v2362_v23  ;;  %1033 = vperm.xlu0 %2265, %v2571_v29  }
 0x597   : > { %1043 = vperm.xlu1 %2267, %v2571_v29  }
 0x59a   : > { %2294 = vset.pattern.permute.xlu0 %v2358_v13 }
 0x59b   : > { %1047 = vperm.xlu1 %2267, %v2544_v16  }
 0x59f   : > { %2293 = vset.pattern.permute.xlu1 %v2358_v13 }
 0x609   : > { %v1000_v32 = vpop.xlane.xlu0 %999 }
 0x60a   : > { %v997_v34 = vpop.xlane.xlu1 %996 }
 0x60b   : > { %v1007_v10 = vadd.f32 %v1000_v32, %v997_v34 }
 0x60d   : > { %v1008_v35 = vrot.slane %v1007_v10, 4  ;;  %v1003_v37 = vpop.xlane.xlu0 %1002 }
 0x60e   : > { %v1006_v39 = vpop.xlane.xlu1 %1005 }
 0x60f   : > { %v1009_v40 = vadd.f32 %v1008_v35, %v1007_v10  ;;  %v1015_v12 = vadd.f32 %v1006_v39, %v1003_v37  ;;  %v2660_v35 = vld [vmem:[%s2839_s6 + $0x2] sm:$0x3] }
 0x611   : > { %v1010_v41 = vrot.slane %v1009_v40, 2  ;;  %v1016_v43 = vrot.slane %v1015_v12, 4 }
 0x612   : > { %v1038_v58 = vpop.permute.xlu1 %1037 }
 0x613   : > { %v1011_v44 = vadd.f32 %v1010_v41, %v1009_v40  ;;  %v1017_v45 = vadd.f32 %v1016_v43, %v1015_v12 }
 0x615   : > { %v1012_v46 = vrot.slane %v1011_v44, 1  ;;  %v1018_v29 = vrot.slane %v1017_v45, 2  ;;  %v1034_v1 = vpop.permute.xlu0 %1033 }
 0x616   : > { %v1044_v0 = vpop.permute.xlu1 %1043 }
 0x617   : > { %v1013_v47 = vadd.f32 %v1012_v46, %v1011_v44  ;;  %v1019_v49 = vadd.f32 %v1018_v29, %v1017_v45  ;;  %v1947_v44 = vld [vmem:[%s2836_s3 + $0x10] sm:$0xff]  ;;  %v2673_v45 = vld [vmem:[%s2837_s4 + $0x20] sm:$0xff]  ;;  %v2678_v46 = vld [vmem:[%s2837_s4 + $0x28] sm:$0xff] }
 0x619   : > { %v1014_v50 = vmul.f32 0.001953125, %v1013_v47  ;;  %v1020_v16 = vrot.slane %v1019_v49, 1 }
 0x61a   : > { %v1048_v7 = vpop.permute.xlu1 %1047 }
 0x61b   : > { %v1021_v51 = vadd.f32 %v1020_v16, %v1019_v49  ;;  %v1023_v54 = vmul.f32 %v1014_v50, %v1014_v50  ;;  %v1027_v61 = vsub.f32 %v992_v22, %v1014_v50  ;;  %v1026_v62 = vsub.f32 %v991_v24, %v1014_v50  ;;  %v309_v22 = vld [vmem:[%s2838_s5 + $0x48] sm:$0xff]  ;;  %v311_v24 = vld [vmem:[%s2838_s5 + $0x58] sm:$0xff] }
 0x61c   : > { %2051 = vmatmul.mubr.msk.f32.gmra.mrb[8].mxu0 %vm316_vm0, %v309_v22 }
 0x61d   : > { %v1022_v52 = vmul.f32 0.001953125, %v1021_v51 }
 0x61f   : > { %v1024_v55 = vsub.f32 %v1022_v52, %v1023_v54 }
 0x621   : > { %v1025_v56 = vmax.f32 %v1024_v55, 0.0 }
 0x623   : > { %v1028_v57 = vadd.f32 1e-08, %v1025_v56 }
 0x625   : > { %2341 = vrsqrt.f32 %v1028_v57 }
 0x62f   : > { %v2342_v63 = vpop.eup %2341 }
 0x630   : > { %v1031_v2 = vmul.f32 %v2342_v63, %v1027_v61  ;;  %v1030_v3 = vmul.f32 %v2342_v63, %v1026_v62 }
 0x632   : > { %v1040_v4 = vmul.f32 %v1034_v1, %v1030_v3  ;;  %v1041_v5 = vmul.f32 %v1038_v58, %v1031_v2 }
 0x634   : > { %v1050_v6 = vadd.f32 %v1044_v0, %v1040_v4  ;;  %v1051_v8 = vadd.f32 %v1048_v7, %v1041_v5 }
 0x636   : > { %1054 = vrot.lane.b32.xlu1 %v1050_v6, %s2368_s8 }
 0x63a   : > { %1056 = vrot.lane.b32.xlu1 %v1051_v8, %s2368_s8 }
 0x6a8   : > { %v1055_v9 = vpop.permute.xlu1 %1054 }
 0x6a9   : > { %v2629_v15 = vadd.f32 %v1055_v9, %v2511_v59  ;;  %v310_v59 = vld [vmem:[%s2838_s5 + $0x50] sm:$0xff] }
 0x6aa   : > { %2053 = vmatprep.mubr.msk.f32.mxu0 %vm316_vm0, %v310_v59 }
 0x6ab   : > { %2054 = vmatmul.mubr.msk.f32.gmra.mrb[10].mxu0 %vm316_vm0, %v311_v24 }
 0x6ac   : > { %v1057_v14 = vpop.permute.xlu1 %1056 }
 0x6ad   : > { %v2632_v19 = vadd.f32 %v1057_v14, %v2513_v60 }
 0x6af   : > { %v2268_v20 = vpack.i.bf16 %v2632_v19, %v2629_v15 }
 0x6b1   : > { %2269 = vrot.lane.b32.xlu1 %v2268_v20, %s2357_s17 }
 0x6ef   : > { %v2052_v29 = vpop.f32.mrb[8].mxu0 }
 0x6f0   : > { %v471_v47 = vpop.f32.mrb[9].mxu0 }
 0x723   : > { %v2270_v60 = vpop.permute.xlu1 %2269 }
 0x724   : > { %v2272_v25 = vunpack.i.h.bf16 %v2270_v60  ;;  %v2271_v26 = vunpack.i.l.bf16 %v2270_v60  ;;  %2274 = vrot.lane.b32.xlu1 %v2270_v60, %s2364_s15 }
 0x726   : > { %v2163_v27 = vpack.c.bf16 %v2272_v25, %v2271_v26 }
 0x728   : > { %2164 = vmatpush3.bf16.msra.mxu1 %v2163_v27 }
 0x72b   : > { %2089 = vmatmul.mubr.msk.f32.vlgmr.msra.gmra.mrb[4].mxu1 %vm730_vm3, %v2660_v35 }
 0x72c   : > { %2103 = vmatprep.mubr.msk.f32.mxu1 %vm871_vm4, %v1947_v44 }
 0x77e   : > { %v2055_v49 = vpop.f32.mrb[10].mxu0 }
 0x77f   : > { %v481_v50 = vpop.f32.mrb[11].mxu0 }
 0x796   : > { %v2275_v28 = vpop.permute.xlu1 %2274 }
 0x797   : > { %v2277_v30 = vunpack.i.h.bf16 %v2275_v28  ;;  %v2276_v31 = vunpack.i.l.bf16 %v2275_v28 }
 0x799   : > { %v1154_v32 = vsel %vm805_vm1, %v2276_v31, %v2271_v26  ;;  %v1157_v34 = vsel %vm805_vm1, %v2277_v30, %v2272_v25 }
 0x79a   : > { %v2278_v10 = vpack.i.bf16 %v1157_v34, %v1154_v32 }
 0x79c   : > { %2279 = vrot.lane.b32.xlu0 %v2278_v10, %s2364_s15 }
 0x7fe   : > { %v2706_v5 = vpop.f32.mrb[4].mxu1 }
 0x7ff   : > { %v2090_v6 = vpop.f32.mrb[5].mxu1 }
 0x80e   : > { %v2280_v37 = vpop.permute.xlu0 %2279 }
 0x80f   : > { %v2282_v39 = vunpack.i.h.bf16 %v2280_v37  ;;  %v2281_v40 = vunpack.i.l.bf16 %v2280_v37 }
 0x811   : > { %v1162_v12 = vsel %vm805_vm1, %v2281_v40, %v2271_v26  ;;  %v1163_v41 = vsel %vm805_vm1, %v2282_v39, %v2272_v25 }
 0x812   : > { %v2288_v43 = vpack.i.bf16 %v1163_v41, %v1162_v12 }
 0x814   : > { %2289 = vrot.lane.b32.xlu0 %v2288_v43, %s2357_s17  ;;  %2284 = vrot.lane.b32.xlu1 %v2288_v43, %s2369_s23 }
 0x818   : > { %1193 = vrot.lane.b32.xlu1 %v2673_v45, %s2357_s17  ;;  %1195 = vrot.lane.b32.xlu0 %v2678_v46, %s2357_s17 }
 0x81c   : > { %1203 = vrot.lane.b32.xlu0 %v2678_v46, %s2359_s20  ;;  %1201 = vrot.lane.b32.xlu1 %v2673_v45, %s2359_s20 }
 0x820   : > { %1210 = vperm.xlu1 %2293, %v2673_v45   ;;  %1214 = vperm.xlu0 %2294, %v2678_v46  }
 0x886   : > { %v2290_v16 = vpop.permute.xlu0 %2289  ;;  %v2285_v51 = vpop.permute.xlu1 %2284 }
 0x887   : > { %v2287_v52 = vunpack.i.h.bf16 %v2285_v51  ;;  %v2286_v54 = vunpack.i.l.bf16 %v2285_v51  ;;  %v2292_v58 = vunpack.i.h.bf16 %v2290_v16  ;;  %v2291_v61 = vunpack.i.l.bf16 %v2290_v16 }
 0x889   : > { %v2165_v55 = vpack.c.bf16 %v2287_v52, %v2286_v54  ;;  %v2175_v2 = vpack.c.bf16 %v2292_v58, %v2291_v61 }
 0x88a   : > { %v1194_v56 = vpop.permute.xlu1 %1193  ;;  %v1196_v57 = vpop.permute.xlu0 %1195 }
 0x88b   : > { %2167 = vmatprep.subr.msk.bf16.mxu1 %vm2166_vm10, %v2165_v55  ;;  %v1199_v62 = vadd.f32 %v1194_v56, %v471_v47  ;;  %v1200_v63 = vadd.f32 %v2052_v29, %v1196_v57 }
 0x88c   : > { %2170 = vmatpush3.bf16.msk.msra.mxu1 %vm2166_vm10, %v2165_v55 }
 0x88d   : > { %2172 = vmatprep.subr.bf16.mxu1 %v2163_v27  ;;  %1300 = vperm.xlu1 %2293, %v1199_v62  }
 0x88e   : > { %v1204_v0 = vpop.permute.xlu0 %1203  ;;  %v1202_v1 = vpop.permute.xlu1 %1201 }
 0x88f   : > { %v1207_v3 = vadd.f32 %v1202_v1, %v481_v50  ;;  %v1208_v4 = vadd.f32 %v2055_v49, %v1204_v0 }
 0x890   : > { %2174 = vmatpush3.bf16.msra.mxu1 %v2163_v27 }
 0x891   : > { %2177 = vmatprep.subr.msk.bf16.mxu1 %vm2176_vm12, %v2175_v2  ;;  %1305 = vperm.xlu1 %2293, %v1200_v63  }
 0x892   : > { %1312 = vperm.xlu0 %2294, %v1207_v3  }
 0x894   : > { %2180 = vmatpush3.bf16.msk.msra.mxu1 %vm2176_vm12, %v2175_v2 }
 0x895   : > { %1317 = vperm.xlu1 %2293, %v1208_v4   ;;  %2181 = vmatprep.subr.bf16.mxu1 %v2363_v48 }
 0x896   : > { %2295 = vset.pattern.permute.xlu0 %v2360_v38 }
 0x897   : > { %2104 = vmatmul.mubr.msk.f32.vlgmr.msra.gmra.mrb[6].mxu1 %vm871_vm4, %v1948_v33  ;;  %1327 = vperm.xlu0 %2295, %v2673_v45  }
 0x898   : > { %2110 = vmatprep.mubr.msk.f32.mxu1 %vm2365_vm2, %v2366_v17 }
 0x899   : > { %2296 = vset.pattern.permute.xlu1 %v2360_v38 }
 0x89a   : > { %1331 = vperm.xlu1 %2296, %v2678_v46  }
 0x89b   : > { %2297 = vset.pattern.permute.xlu0 %v2361_v11 }
 0x89e   : > { %2298 = vset.pattern.permute.xlu1 %v2361_v11 }
 0x89f   : > { %v1211_v7 = vpop.permute.xlu1 %1210  ;;  %v1215_v14 = vpop.permute.xlu0 %1214 }
 0x90c   : > { %v1301_v8 = vpop.permute.xlu1 %1300 }
 0x910   : > { %v1306_v9 = vpop.permute.xlu1 %1305 }
 0x911   : > { %v1313_v24 = vpop.permute.xlu0 %1312 }
 0x914   : > { %v1318_v59 = vpop.permute.xlu1 %1317 }
 0x916   : > { %v1328_v32 = vpop.permute.xlu0 %1327 }
 0x919   : > { %v1332_v28 = vpop.permute.xlu1 %1331 }
 0x96a   : > { %v2105_v20 = vpop.f32.mrb[6].mxu1 }
 0x96b   : > { %v1295_v21 = vadd.f32 %v2105_v20, %v1215_v14  ;;  %v1289_v22 = vpop.f32.mrb[7].mxu1 }
 0x96c   : > { %v1290_v60 = vadd.f32 %v1289_v22, %v1211_v7 }
 0x96d   : > { %v1309_v25 = vmul.f32 %v1306_v9, %v1295_v21 }
 0x96e   : > { %v1308_v26 = vmul.f32 %v1301_v8, %v1290_v60 }
 0x96f   : > { %v1321_v27 = vadd.f32 %v1318_v59, %v1309_v25 }
 0x970   : > { %v1320_v30 = vadd.f32 %v1313_v24, %v1308_v26 }
 0x971   : > { %v1325_v31 = vmin.f32 %v1321_v27, 0.0  ;;  %v1323_v10 = vmax.f32 %v1321_v27, 0.0 }
 0x972   : > { %v1324_v34 = vmin.f32 %v1320_v30, 0.0  ;;  %v1322_v39 = vmax.f32 %v1320_v30, 0.0 }
 0x973   : > { %v1335_v37 = vmul.f32 %v1332_v28, %v1325_v31 }
 0x974   : > { %v1334_v40 = vmul.f32 %v1328_v32, %v1324_v34 }
 0x975   : > { %v1337_v12 = vadd.f32 %v1335_v37, %v1323_v10 }
 0x976   : > { %v1336_v41 = vadd.f32 %v1334_v40, %v1322_v39 }
 0x977   : > { %v1343_v43 = vsel %vm316_vm0, %v1337_v12, 0.0  ;;  %v1339_v47 = vmul.f32 %v1337_v12, %v1337_v12 }
 0x978   : > { %1344 = vadd.xlane.f32.xlu0 %v1343_v43  ;;  %v1340_v44 = vsel %vm316_vm0, %v1336_v41, 0.0  ;;  %v1338_v29 = vmul.f32 %v1336_v41, %v1336_v41 }
 0x979   : > { %1341 = vadd.xlane.f32.xlu1 %v1340_v44  ;;  %v1349_v50 = vsel %vm316_vm0, %v1339_v47, 0.0  ;;  %v314_v44 = vld [vmem:[%s2838_s5 + $0x70] sm:$0xff] }
 0x97a   : > { %v1346_v49 = vsel %vm316_vm0, %v1338_v29, 0.0 }
 0x97c   : > { %1347 = vadd.xlane.f32.xlu0 %v1346_v49 }
 0x97d   : > { %1350 = vadd.xlane.f32.xlu1 %v1349_v50 }
 0x98e   : > { %1382 = vperm.xlu1 %2298, %v2678_v46  }
 0x992   : > { %2299 = vset.pattern.permute.xlu1 %v2362_v23  ;;  %1378 = vperm.xlu0 %2297, %v2673_v45  }
 0x993   : > { %1388 = vperm.xlu1 %2299, %v2673_v45  }
 0x996   : > { %2325 = vset.pattern.permute.xlu0 %v2358_v13 }
 0x997   : > { %1392 = vperm.xlu1 %2299, %v2678_v46  }
 0x99b   : > { %2326 = vset.pattern.permute.xlu1 %v2358_v13 }
 0xa05   : > { %v1345_v16 = vpop.xlane.xlu0 %1344 }
 0xa06   : > { %v1342_v51 = vpop.xlane.xlu1 %1341 }
 0xa07   : > { %v1352_v52 = vadd.f32 %v1345_v16, %v1342_v51 }
 0xa09   : > { %v1353_v54 = vrot.slane %v1352_v52, 4  ;;  %v1348_v55 = vpop.xlane.xlu0 %1347 }
 0xa0a   : > { %v1351_v56 = vpop.xlane.xlu1 %1350 }
 0xa0b   : > { %v1354_v57 = vadd.f32 %v1353_v54, %v1352_v52  ;;  %v1360_v58 = vadd.f32 %v1351_v56, %v1348_v55 }
 0xa0d   : > { %v1355_v61 = vrot.slane %v1354_v57, 2  ;;  %v1361_v62 = vrot.slane %v1360_v58, 4 }
 0xa0e   : > { %v1383_v14 = vpop.permute.xlu1 %1382 }
 0xa0f   : > { %v1356_v63 = vadd.f32 %v1355_v61, %v1354_v57  ;;  %v1362_v0 = vadd.f32 %v1361_v62, %v1360_v58  ;;  %v1959_v61 = vld [vmem:[%s2836_s3 + $0x20] sm:$0xff]  ;;  %v2761_v62 = vld [vmem:[%s2837_s4 + $0x38] sm:$0xff] }
 0xa11   : > { %v1357_v1 = vrot.slane %v1356_v63, 1  ;;  %v1363_v45 = vrot.slane %v1362_v0, 2  ;;  %v1379_v60 = vpop.permute.xlu0 %1378 }
 0xa12   : > { %v1389_v59 = vpop.permute.xlu1 %1388 }
 0xa13   : > { %v1358_v2 = vadd.f32 %v1357_v1, %v1356_v63  ;;  %v1364_v3 = vadd.f32 %v1363_v45, %v1362_v0  ;;  %v2766_v63 = vld [vmem:[%s2837_s4 + $0x30] sm:$0xff] }
 0xa15   : > { %v1359_v4 = vmul.f32 0.001953125, %v1358_v2  ;;  %v1365_v46 = vrot.slane %v1364_v3, 1 }
 0xa16   : > { %v1393_v30 = vpop.permute.xlu1 %1392 }
 0xa17   : > { %v1366_v33 = vadd.f32 %v1365_v46, %v1364_v3  ;;  %v1368_v13 = vmul.f32 %v1359_v4, %v1359_v4  ;;  %v1372_v20 = vsub.f32 %v1337_v12, %v1359_v4  ;;  %v1371_v21 = vsub.f32 %v1336_v41, %v1359_v4 }
 0xa19   : > { %v1367_v6 = vmul.f32 0.001953125, %v1366_v33 }
 0xa1b   : > { %v1369_v7 = vsub.f32 %v1367_v6, %v1368_v13 }
 0xa1d   : > { %v1370_v8 = vmax.f32 %v1369_v7, 0.0 }
 0xa1f   : > { %v1373_v9 = vadd.f32 1e-08, %v1370_v8 }
 0xa21   : > { %2343 = vrsqrt.f32 %v1373_v9 }
 0xa2b   : > { %v2344_v22 = vpop.eup %2343 }
 0xa2c   : > { %v1376_v24 = vmul.f32 %v2344_v22, %v1372_v20  ;;  %v1375_v25 = vmul.f32 %v2344_v22, %v1371_v21 }
 0xa2e   : > { %v1385_v26 = vmul.f32 %v1379_v60, %v1375_v25  ;;  %v1386_v27 = vmul.f32 %v1383_v14, %v1376_v24 }
 0xa30   : > { %v1395_v28 = vadd.f32 %v1389_v59, %v1385_v26  ;;  %v1396_v31 = vadd.f32 %v1393_v30, %v1386_v27 }
 0xa32   : > { %1399 = vrot.lane.b32.xlu1 %v1395_v28, %s2368_s8 }
 0xa36   : > { %1401 = vrot.lane.b32.xlu1 %v1396_v31, %s2368_s8 }
 0xaa4   : > { %v1400_v32 = vpop.permute.xlu1 %1399 }
 0xaa5   : > { %v2722_v10 = vadd.f32 %v1400_v32, %v2629_v15  ;;  %v312_v15 = vld [vmem:[%s2838_s5 + $0x60] sm:$0xff] }
 0xaa6   : > { %2056 = vmatprep.mubr.msk.f32.mxu0 %vm316_vm0, %v312_v15 }
 0xaa8   : > { %v1402_v34 = vpop.permute.xlu1 %1401 }
 0xaa9   : > { %v2725_v37 = vadd.f32 %v1402_v34, %v2632_v19  ;;  %v313_v19 = vld [vmem:[%s2838_s5 + $0x68] sm:$0xff] }
 0xaaa   : > { %2057 = vmatmul.mubr.msk.f32.gmra.mrb[12].mxu0 %vm316_vm0, %v313_v19 }
 0xaab   : > { %v2300_v39 = vpack.i.bf16 %v2725_v37, %v2722_v10  ;;  %2059 = vmatprep.mubr.msk.f32.mxu0 %vm316_vm0, %v314_v44 }
 0xaad   : > { %2301 = vrot.lane.b32.xlu1 %v2300_v39, %s2357_s17 }
 0xb1f   : > { %v2302_v40 = vpop.permute.xlu1 %2301 }
 0xb20   : > { %v2304_v12 = vunpack.i.h.bf16 %v2302_v40  ;;  %v2303_v41 = vunpack.i.l.bf16 %v2302_v40  ;;  %2306 = vrot.lane.b32.xlu1 %v2302_v40, %s2364_s15 }
 0xb22   : > { %v2182_v43 = vpack.c.bf16 %v2304_v12, %v2303_v41 }
 0xb24   : > { %2183 = vmatpush3.bf16.msra.mxu1 %v2182_v43 }
 0xb25   : > { %2200 = vmatprep.subr.bf16.mxu1 %v2363_v48  ;;  %v315_v48 = vld [vmem:[%s2838_s5 + $0x78] sm:$0xff] }
 0xb26   : > { %2060 = vmatmul.mubr.msk.f32.gmra.mrb[14].mxu0 %vm316_vm0, %v315_v48 }
 0xb27   : > { %2125 = vmatprep.mubr.msk.f32.mxu0 %vm871_vm4, %v1959_v61 }
 0xb7d   : > { %v2058_v0 = vpop.f32.mrb[12].mxu0 }
 0xb7e   : > { %v491_v1 = vpop.f32.mrb[13].mxu0 }
 0xb92   : > { %v2307_v29 = vpop.permute.xlu1 %2306 }
 0xb93   : > { %v2309_v47 = vunpack.i.h.bf16 %v2307_v29  ;;  %v2308_v49 = vunpack.i.l.bf16 %v2307_v29 }
 0xb95   : > { %v1502_v50 = vsel %vm805_vm1, %v2309_v47, %v2304_v12  ;;  %v1499_v16 = vsel %vm805_vm1, %v2308_v49, %v2303_v41 }
 0xb96   : > { %v2310_v51 = vpack.i.bf16 %v1502_v50, %v1499_v16 }
 0xb98   : > { %2311 = vrot.lane.b32.xlu1 %v2310_v51, %s2364_s15 }
 0xbf9   : > { %v2061_v45 = vpop.f32.mrb[14].mxu0 }
 0xbfa   : > { %v501_v2 = vpop.f32.mrb[15].mxu0 }
 0xc0a   : > { %v2312_v52 = vpop.permute.xlu1 %2311 }
 0xc0b   : > { %v2314_v54 = vunpack.i.h.bf16 %v2312_v52  ;;  %v2313_v55 = vunpack.i.l.bf16 %v2312_v52 }
 0xc0d   : > { %v1508_v56 = vsel %vm805_vm1, %v2314_v54, %v2304_v12  ;;  %v1507_v57 = vsel %vm805_vm1, %v2313_v55, %v2303_v41 }
 0xc0e   : > { %v2320_v58 = vpack.i.bf16 %v1508_v56, %v1507_v57  ;;  %v2370_v57 = vmov 16  }
 0xc10   : > { %2321 = vrot.lane.b32.xlu1 %v2320_v58, %s2359_s20  ;;  %2316 = vrot.lane.b32.xlu0 %v2320_v58, %s2367_s22  ;;  %v1957_v58 = vld [vmem:[%s2839_s6 + $0x4] sm:$0x3] }
 0xc11   : > { %2111 = vmatmul.mubr.msk.f32.vlgmr.msra.gmra.mrb[8].mxu1 %vm730_vm3, %v1957_v58 }
 0xc12   : > { %2132 = vmatprep.mubr.msk.f32.mxu1 %vm2365_vm2, %v2366_v17 }
 0xc14   : > { %1534 = vrot.lane.b32.xlu1 %v2761_v62, %s2357_s17  ;;  %1532 = vrot.lane.b32.xlu0 %v2766_v63, %s2357_s17 }
 0xc18   : > { %1542 = vrot.lane.b32.xlu1 %v2761_v62, %s2359_s20  ;;  %1540 = vrot.lane.b32.xlu0 %v2766_v63, %s2359_s20 }
 0xc1c   : > { %1549 = vperm.xlu0 %2325, %v2766_v63   ;;  %1553 = vperm.xlu1 %2326, %v2761_v62  }
 0xc82   : > { %v2322_v3 = vpop.permute.xlu1 %2321  ;;  %v2317_v4 = vpop.permute.xlu0 %2316 }
 0xc83   : > { %v2319_v46 = vunpack.i.h.bf16 %v2317_v4  ;;  %v2318_v33 = vunpack.i.l.bf16 %v2317_v4  ;;  %v2324_v8 = vunpack.i.h.bf16 %v2322_v3  ;;  %v2323_v9 = vunpack.i.l.bf16 %v2322_v3 }
 0xc85   : > { %v2184_v13 = vpack.c.bf16 %v2319_v46, %v2318_v33  ;;  %v2194_v59 = vpack.c.bf16 %v2324_v8, %v2323_v9 }
 0xc86   : > { %v1535_v6 = vpop.permute.xlu1 %1534  ;;  %v1533_v7 = vpop.permute.xlu0 %1532 }
 0xc87   : > { %2186 = vmatprep.subr.msk.bf16.mxu0 %vm2581_vm6, %v2184_v13  ;;  %v1539_v14 = vadd.f32 %v2058_v0, %v1535_v6  ;;  %v1538_v20 = vadd.f32 %v1533_v7, %v491_v1 }
 0xc88   : > { %2189 = vmatpush3.bf16.msk.msra.mxu0 %vm2581_vm6, %v2184_v13 }
 0xc89   : > { %2191 = vmatprep.subr.bf16.mxu0 %v2182_v43  ;;  %1644 = vperm.xlu0 %2325, %v1539_v14  }
 0xc8a   : > { %v1543_v21 = vpop.permute.xlu1 %1542  ;;  %1639 = vperm.xlu1 %2326, %v1538_v20   ;;  %v1541_v22 = vpop.permute.xlu0 %1540 }
 0xc8b   : > { %v1547_v60 = vadd.f32 %v2061_v45, %v1543_v21  ;;  %v1546_v24 = vadd.f32 %v1541_v22, %v501_v2 }
 0xc8c   : > { %2193 = vmatpush3.bf16.msra.mxu0 %v2182_v43 }
 0xc8d   : > { %2196 = vmatprep.subr.msk.bf16.mxu0 %vm2591_vm8, %v2194_v59  ;;  %1656 = vperm.xlu0 %2325, %v1547_v60  }
 0xc8e   : > { %1651 = vperm.xlu1 %2326, %v1546_v24  }
 0xc90   : > { %2199 = vmatpush3.bf16.msk.msra.mxu0 %vm2591_vm8, %v2194_v59 }
 0xc91   : > { %2328 = vset.pattern.permute.xlu0 %v2360_v38 }
 0xc92   : > { %1670 = vperm.xlu0 %2328, %v2761_v62   ;;  %2327 = vset.pattern.permute.xlu1 %v2360_v38 }
 0xc93   : > { %2126 = vmatmul.mubr.msk.f32.vlgmr.msra.gmra.mrb[16].mxu0 %vm871_vm4, %v1960_v36  ;;  %1666 = vperm.xlu1 %2327, %v2766_v63  }
 0xc96   : > { %2330 = vset.pattern.permute.xlu0 %v2361_v11 }
 0xc97   : > { %2329 = vset.pattern.permute.xlu1 %v2361_v11 }
 0xc9b   : > { %v1550_v42 = vpop.permute.xlu0 %1549  ;;  %v1554_v25 = vpop.permute.xlu1 %1553 }
 0xd08   : > { %v1645_v26 = vpop.permute.xlu0 %1644 }
 0xd09   : > { %v1640_v27 = vpop.permute.xlu1 %1639 }
 0xd0c   : > { %v1657_v34 = vpop.permute.xlu0 %1656 }
 0xd0d   : > { %v1652_v40 = vpop.permute.xlu1 %1651 }
 0xd11   : > { %v1671_v43 = vpop.permute.xlu0 %1670 }
 0xd12   : > { %v1667_v19 = vpop.permute.xlu1 %1666 }
 0xd66   : > { %v2127_v28 = vpop.f32.mrb[16].mxu0 }
 0xd67   : > { %v1634_v30 = vadd.f32 %v2127_v28, %v1554_v25  ;;  %v1628_v31 = vpop.f32.mrb[17].mxu0 }
 0xd68   : > { %v1629_v32 = vadd.f32 %v1628_v31, %v1550_v42 }
 0xd69   : > { %v1648_v39 = vmul.f32 %v1645_v26, %v1634_v30 }
 0xd6a   : > { %v1647_v38 = vmul.f32 %v1640_v27, %v1629_v32 }
 0xd6b   : > { %v1660_v12 = vadd.f32 %v1657_v34, %v1648_v39 }
 0xd6c   : > { %v1659_v41 = vadd.f32 %v1652_v40, %v1647_v38 }
 0xd6d   : > { %v1664_v15 = vmin.f32 %v1660_v12, 0.0  ;;  %v1662_v48 = vmax.f32 %v1660_v12, 0.0 }
 0xd6e   : > { %v1663_v44 = vmin.f32 %v1659_v41, 0.0  ;;  %v1661_v29 = vmax.f32 %v1659_v41, 0.0 }
 0xd6f   : > { %v1674_v11 = vmul.f32 %v1671_v43, %v1664_v15  ;;  %v1490_v15 = vpop.f32.mrb[8].mxu1 }
 0xd70   : > { %v1673_v47 = vmul.f32 %v1667_v19, %v1663_v44  ;;  %v2112_v19 = vpop.f32.mrb[9].mxu1  ;;  %v1969_v44 = vld [vmem:[%s2839_s6 + $0x6] sm:$0x3] }
 0xd71   : > { %v1676_v49 = vadd.f32 %v1674_v11, %v1662_v48 }
 0xd72   : > { %v1675_v50 = vadd.f32 %v1673_v47, %v1661_v29 }
 0xd73   : > { %v1682_v16 = vsel %vm316_vm0, %v1676_v49, 0.0  ;;  %v1678_v51 = vmul.f32 %v1676_v49, %v1676_v49 }
 0xd74   : > { %1683 = vadd.xlane.f32.xlu0 %v1682_v16  ;;  %v1679_v52 = vsel %vm316_vm0, %v1675_v50, 0.0  ;;  %v1677_v54 = vmul.f32 %v1675_v50, %v1675_v50 }
 0xd75   : > { %1680 = vadd.xlane.f32.xlu1 %v1679_v52  ;;  %v1688_v55 = vsel %vm316_vm0, %v1678_v51, 0.0 }
 0xd76   : > { %v1685_v56 = vsel %vm316_vm0, %v1677_v54, 0.0 }
 0xd78   : > { %1689 = vadd.xlane.f32.xlu0 %v1688_v55 }
 0xd79   : > { %1686 = vadd.xlane.f32.xlu1 %v1685_v56 }
 0xd8a   : > { %1717 = vperm.xlu1 %2329, %v2766_v63  }
 0xd8e   : > { %1721 = vperm.xlu0 %2330, %v2761_v62   ;;  %2331 = vset.pattern.permute.xlu1 %v2362_v23 }
 0xd8f   : > { %1727 = vperm.xlu1 %2331, %v2766_v63  }
 0xd92   : > { %2338 = vset.pattern.permute.xlu0 %v2370_v57 }
 0xd93   : > { %719 = vperm.xlu0 %2338, %v2556_v18   ;;  %1731 = vperm.xlu1 %2331, %v2761_v62  }
 0xd97   : > { %2337 = vset.pattern.permute.xlu1 %v2370_v57 }
 0xe01   : > { %v1684_v61 = vpop.xlane.xlu0 %1683 }
 0xe02   : > { %v1681_v23 = vpop.xlane.xlu1 %1680 }
 0xe03   : > { %v1691_v0 = vadd.f32 %v1684_v61, %v1681_v23 }
 0xe05   : > { %v1692_v63 = vrot.slane %v1691_v0, 4  ;;  %v1690_v1 = vpop.xlane.xlu0 %1689 }
 0xe06   : > { %v1687_v45 = vpop.xlane.xlu1 %1686 }
 0xe07   : > { %v1693_v2 = vadd.f32 %v1692_v63, %v1691_v0  ;;  %v1699_v18 = vadd.f32 %v1690_v1, %v1687_v45 }
 0xe09   : > { %v1694_v3 = vrot.slane %v1693_v2, 2  ;;  %v1700_v62 = vrot.slane %v1699_v18, 4 }
 0xe0a   : > { %v1718_v60 = vpop.permute.xlu1 %1717 }
 0xe0b   : > { %v1695_v4 = vadd.f32 %v1694_v3, %v1693_v2  ;;  %v1701_v46 = vadd.f32 %v1700_v62, %v1699_v18 }
 0xe0d   : > { %v1696_v33 = vrot.slane %v1695_v4, 1  ;;  %v1702_v13 = vrot.slane %v1701_v46, 2  ;;  %v1722_v30 = vpop.permute.xlu0 %1721 }
 0xe0e   : > { %v1728_v25 = vpop.permute.xlu1 %1727 }
 0xe0f   : > { %v1697_v6 = vadd.f32 %v1696_v33, %v1695_v4  ;;  %v1703_v7 = vadd.f32 %v1702_v13, %v1701_v46 }
 0xe11   : > { %v1698_v8 = vmul.f32 0.001953125, %v1697_v6  ;;  %v1704_v9 = vrot.slane %v1703_v7, 1 }
 0xe12   : > { %v1732_v34 = vpop.permute.xlu1 %1731 }
 0xe13   : > { %v1705_v14 = vadd.f32 %v1704_v9, %v1703_v7  ;;  %v1707_v17 = vmul.f32 %v1698_v8, %v1698_v8  ;;  %v1711_v24 = vsub.f32 %v1676_v49, %v1698_v8  ;;  %v1710_v36 = vsub.f32 %v1675_v50, %v1698_v8 }
 0xe15   : > { %v1706_v20 = vmul.f32 0.001953125, %v1705_v14 }
 0xe17   : > { %v1708_v21 = vsub.f32 %v1706_v20, %v1707_v17 }
 0xe19   : > { %v1709_v22 = vmax.f32 %v1708_v21, 0.0 }
 0xe1b   : > { %v1712_v59 = vadd.f32 1e-08, %v1709_v22 }
 0xe1d   : > { %2345 = vrsqrt.f32 %v1712_v59 }
 0xe27   : > { %v2346_v42 = vpop.eup %2345 }
 0xe28   : > { %v1715_v26 = vmul.f32 %v2346_v42, %v1711_v24  ;;  %v1714_v27 = vmul.f32 %v2346_v42, %v1710_v36 }
 0xe2a   : > { %v1724_v28 = vmul.f32 %v1718_v60, %v1714_v27  ;;  %v1725_v31 = vmul.f32 %v1722_v30, %v1715_v26 }
 0xe2c   : > { %v1734_v32 = vadd.f32 %v1728_v25, %v1724_v28  ;;  %v1735_v39 = vadd.f32 %v1732_v34, %v1725_v31 }
 0xe2e   : > { %1738 = vrot.lane.b32.xlu1 %v1734_v32, %s2368_s8 }
 0xe32   : > { %1740 = vrot.lane.b32.xlu1 %v1735_v39, %s2368_s8 }
 0xea0   : > { %v1739_v40 = vpop.permute.xlu1 %1738 }
 0xea1   : > { %v1744_v12 = vadd.f32 %v1739_v40, %v2722_v10  ;;  %v720_v10 = vpop.permute.xlu0 %719 }
 0xea2   : > { %v800_v49 = vadd.f32 %v2613_v53, %v720_v10 }
 0xea4   : > { %v1741_v38 = vpop.permute.xlu1 %1740 }
 0xea5   : > { %v1745_v41 = vadd.f32 %v1741_v38, %v2725_v37 }
 0xea7   : > { %v2332_v43 = vpack.i.bf16 %v1745_v41, %v1744_v12 }
 0xea9   : > { %2333 = vrot.lane.b32.xlu1 %v2332_v43, %s2357_s17  ;;  %s1918_s17 = sshll.u32 %s2846_s25, 3 }
 0xeaa   : > { %s290_s14 = scalar_lea.vmem %s2840_s7, %s1918_s17 }
 0xead   : > { %1066 = vperm.xlu1 %2337, %v2660_v35  }
 0xeb1   : > { %1411 = vperm.xlu1 %2337, %v1957_v58  }
 0xeb5   : > { %1750 = vperm.xlu1 %2337, %v1969_v44  }
 0xf1b   : > { %v2334_v48 = vpop.permute.xlu1 %2333 }
 0xf1c   : > { %v2336_v11 = vunpack.i.h.bf16 %v2334_v48  ;;  %v2335_v29 = vunpack.i.l.bf16 %v2334_v48 }
 0xf1e   : > { %v2201_v47 = vpack.c.bf16 %v2336_v11, %v2335_v29 }
 0xf20   : > { %2202 = vmatpush3.bf16.msra.mxu1 %v2201_v47 }
 0xf23   : > { %2133 = vmatmul.mubr.msk.f32.vlgmr.msra.gmra.mrb[10].mxu1 %vm730_vm3, %v1969_v44 }
 0xf2c   : > { %v1067_v37 = vpop.permute.xlu1 %1066 }
 0xf2d   : > { %v1146_v35 = vadd.f32 %v2706_v5, %v1067_v37 }
 0xf2f   : > { %v1834_v50 = vrot.slane %v1146_v35, 6 }
 0xf30   : > { %v1412_v16 = vpop.permute.xlu1 %1411 }
 0xf31   : > { %v1843_v51 = vsel %vm1842_vm13, %v800_v49, %v1834_v50  ;;  %v1491_v52 = vadd.f32 %v1490_v15, %v1412_v16 }
 0xf33   : > { %v1837_v54 = vrot.slane %v1491_v52, 4 }
 0xf34   : > { %v1751_v56 = vpop.permute.xlu1 %1750 }
 0xf35   : > { %v1845_v55 = vsel %vm1844_vm14, %v1843_v51, %v1837_v54 }
 0xff6   : > { %v1829_v57 = vpop.f32.mrb[10].mxu1 }
 0xff7   : > { %v1830_v58 = vadd.f32 %v1829_v57, %v1751_v56  ;;  %v2134_v61 = vpop.f32.mrb[11].mxu1 }
 0xff9   : > { %v1840_v5 = vrot.slane %v1830_v58, 2 }
 0xffb   : > { %v1847_v23 = vsel %vm1846_vm15, %v1845_v55, %v1840_v5 }
 0xffc   : > { %1848 = vst.msk [vmem:[%s290_s14] sm:$0xff] %vm316_vm0, %v1847_v23 }
 0xffd PF: > { %s17_s24 = sadd.s32 1, %s2353_s24  }
 0xffe   : > { %p14_p4 = scmp.ge.s32.totalorder %s17_s24, 4  }
0x1000   :  { %16 = sbr.rel (!%p14_p4) target bundleno = 1 (0x1), region = 89 }

// kernel: wavesplit_forward.2
= control target key start
LH: loop header
LB: loop body
LE: loop exit
PB: predicated region body
PF: predicated region fallthrough
CT: control target
= control target key end

     0   :  { %s5560_s18 = smov 0   ;;  %s6140_s0 = inlined_call_operand.vmem [shape: f32[2,1,40], index: 0, kind: input, shape index: {}]   ;;  %s6141_s1 = inlined_call_operand.vmem [shape: f32[16,3], index: 1, kind: input, shape index: {}]   ;;  %s6142_s2 = inlined_call_operand.vmem [shape: f32[2,16,48], index: 2, kind: input, shape index: {}]   ;;  %s6143_s3 = inlined_call_operand.vmem [shape: f32[3,16,4], index: 3, kind: input, shape index: {}]   ;;  %s6144_s4 = inlined_call_operand.vmem [shape: f32[32,17], index: 4, kind: input, shape index: {}]   ;;  %s6145_s5 = inlined_call_operand.vmem [shape: f32[2,2,16], index: 5, kind: output, shape index: {}]  }
   0x1 LB: > { %s4484_s19 = sadd.s32 4294967295, %s5511_s18   ;;  %p4488_p0 = scmp.ge.s32.totalorder %s5511_s18, 1  ;;  %s5511_s18 = sphi %s5560_s18, %s15_s18  }
   0x2   : > { %p185_p1 = scmp.lt.s32.totalorder %s5511_s18, 3 }
   0x4   : > { %p186_p2 = pnand %p4488_p0, %p185_p1 }
   0x5   : > { %v220_v0 = vld [vmem:[%s6141_s1] sm:$0xff] (!%p186_p2)  ;;  %v5513_v1 = vmov (!%p186_p2), 1   ;;  %v5514_v2 = vmov (!%p186_p2), 2   ;;  %v221_v3 = vld [vmem:[%s6141_s1 + $0x8] sm:$0xff] (!%p186_p2)  ;;  %v5515_v4 = vmov (!%p186_p2), 0   ;;  %v5516_v7 = vmov (!%p186_p2), 3  }
   0x6   : > { %189 = sbr.rel (%p186_p2) target bundleno = 9174 (0x23d6), region = 40  ;;  %5396 = vset.pattern.permute.xlu0 (!%p186_p2), %v5513_v1  ;;  %5397 = vset.pattern.permute.xlu1 (!%p186_p2), %v5514_v2  ;;  %v5581_v5 = vld [vmem:[%s6143_s3] sm:$0xff] (!%p186_p2)  ;;  %v5586_v6 = vld [vmem:[%s6143_s3 + $0x8] sm:$0xff] (!%p186_p2)  ;;  %p210_p3 = scmp.lt.s32.totalorder (!%p186_p2), %s4484_s19, 1  ;;  %vm330_vm0 = vcmask (!%p186_p2), 261120   ;;  %vm399_vm1 = vcmask (!%p186_p2), 1047808  }
   0x7   : > { %243 = vperm.xlu0 (!%p186_p2), %5396, %v220_v0   ;;  %263 = vperm.xlu1 (!%p186_p2), %5397, %v220_v0   ;;  %s5517_s6 = smov (!%p186_p2), 127   ;;  %s5518_s7 = smov (!%p186_p2), 126   ;;  %vm449_vm2 = vcmask (!%p186_p2), 392192   ;;  %vm874_vm11 = vcmask (!%p186_p2), 130048   ;;  %vm5527_vm12 = vmmov (!%p186_p2), 0   ;;  %vm5753_vm13 = vmpackc.low (!%p186_p2), %vm330_vm0, %vm330_vm0  ;;  %vm1083_vm15 = vcmask (!%p186_p2), 123904  }
   0x8   : > { %s5519_s8 = smov (!%p186_p2), 125   ;;  %s5520_s9 = smov (!%p186_p2), 32  }
   0x9   : > { %s5521_s10 = smov (!%p186_p2), 98   ;;  %s5522_s21 = smov (!%p186_p2), 3  }
   0xa   : > { %s5523_s22 = smov (!%p186_p2), 124   ;;  %s5524_s23 = smov (!%p186_p2), 100  }
   0xb   : > { %247 = vperm.xlu0 (!%p186_p2), %5396, %v221_v3   ;;  %267 = vperm.xlu1 (!%p186_p2), %5397, %v221_v3  }
   0xd   : > { %s6149_s19 = smov (!%p210_p3, %s4484_s19), 1 }
   0xe   : > { %s212_s30 = scalar_lea.vmem %s6140_s0, %s6149_s19 }
   0xf   : > { %5399 = vset.pattern.permute.xlu1 %v5515_v4  ;;  %5398 = vset.pattern.permute.xlu0 %v5515_v4  ;;  %v4490_v8 = vld [vmem:[%s212_s30] ss:$0 sm:$0xff] }
  0x10   : > { %229 = vperm.xlu1 %5399, %v221_v3   ;;  %224 = vperm.xlu0 %5398, %v220_v0  }
  0x14   : > { %286 = vperm.xlu1 %5399, %v5581_v5   ;;  %291 = vperm.xlu0 %5398, %v5586_v6  }
  0x18   : > { %5400 = vset.pattern.permute.xlu1 %v5516_v7  ;;  %5401 = vset.pattern.permute.xlu0 %v5516_v7 }
  0x19   : > { %301 = vperm.xlu1 %5400, %v5581_v5  }
  0x1d   : > { %5402 = vset.pattern.permute.xlu1 %v5513_v1 }
  0x86   : > { %v244_v9 = vpop.permute.xlu0 %243  ;;  %v264_v10 = vpop.permute.xlu1 %263 }
  0x87   : > { %v250_v11 = vmul.f32 %v4490_v8, %v244_v9  ;;  %v270_v12 = vmul.f32 %v4490_v8, %v264_v10 }
  0x89   : > { %254 = vrot.lane.b32.xlu1 %v250_v11, %s5517_s6 }
  0x8a   : > { %v248_v13 = vpop.permute.xlu0 %247  ;;  %v268_v14 = vpop.permute.xlu1 %267 }
  0x8b   : > { %v251_v15 = vmul.f32 %v4490_v8, %v248_v13  ;;  %v271_v16 = vmul.f32 %v4490_v8, %v268_v14 }
  0x8d   : > { %256 = vrot.lane.b32.xlu0 %v251_v15, %s5517_s6  ;;  %274 = vrot.lane.b32.xlu1 %v270_v12, %s5518_s7 }
  0x8f   : > { %v230_v17 = vpop.permute.xlu1 %229  ;;  %v225_v20 = vpop.permute.xlu0 %224 }
  0x90   : > { %v238_v21 = vmul.f32 %v4490_v8, %v225_v20  ;;  %v239_v29 = vmul.f32 %v4490_v8, %v230_v17 }
  0x91   : > { %305 = vperm.xlu0 %5401, %v5586_v6   ;;  %276 = vrot.lane.b32.xlu1 %v271_v16, %s5518_s7 }
  0x93   : > { %v287_v18 = vpop.permute.xlu1 %286  ;;  %v292_v23 = vpop.permute.xlu0 %291 }
  0x95   : > { %5403 = vset.pattern.permute.xlu0 %v5513_v1 }
  0x98   : > { %v302_v19 = vpop.permute.xlu1 %301 }
  0xfb   : > { %v255_v22 = vpop.permute.xlu1 %254 }
  0xfc   : > { %v260_v24 = vadd.f32 %v255_v22, %v238_v21 }
  0xff   : > { %v275_v25 = vpop.permute.xlu1 %274  ;;  %v257_v27 = vpop.permute.xlu0 %256 }
 0x100   : > { %v280_v26 = vadd.f32 %v275_v25, %v260_v24  ;;  %v261_v32 = vadd.f32 %v257_v27, %v239_v29 }
 0x102   : > { %v294_v28 = vadd.f32 %v287_v18, %v280_v26 }
 0x103   : > { %v277_v31 = vpop.permute.xlu1 %276 }
 0x104   : > { %v298_v30 = vmin.f32 %v294_v28, 0.0  ;;  %v296_v33 = vmax.f32 %v294_v28, 0.0  ;;  %v281_v35 = vadd.f32 %v277_v31, %v261_v32 }
 0x106   : > { %v308_v34 = vmul.f32 %v302_v19, %v298_v30  ;;  %v295_v37 = vadd.f32 %v292_v23, %v281_v35 }
 0x108   : > { %v5608_v36 = vadd.f32 %v308_v34, %v296_v33  ;;  %v299_v39 = vmin.f32 %v295_v37, 0.0  ;;  %v297_v41 = vmax.f32 %v295_v37, 0.0 }
 0x10a   : > { %318 = vrot.lane.b32.xlu0 %v5608_v36, %s5519_s8  ;;  %v312_v38 = vmul.f32 %v5608_v36, %v5608_v36 }
 0x10e   : > { %322 = vrot.lane.b32.xlu0 %v312_v38, %s5519_s8 }
 0x110   : > { %v306_v40 = vpop.permute.xlu0 %305 }
 0x111   : > { %v309_v42 = vmul.f32 %v306_v40, %v299_v39 }
 0x113   : > { %v311_v43 = vadd.f32 %v309_v42, %v297_v41 }
 0x115   : > { %320 = vrot.lane.b32.xlu1 %v311_v43, %s5519_s8  ;;  %v313_v44 = vmul.f32 %v311_v43, %v311_v43 }
 0x119   : > { %324 = vrot.lane.b32.xlu1 %v313_v44, %s5519_s8 }
 0x17c   : > { %v319_v45 = vpop.permute.xlu0 %318 }
 0x17d   : > { %v331_v46 = vsel %vm330_vm0, %v319_v45, 0.0 }
 0x17e   : > { %332 = vadd.xlane.f32.xlu0 %v331_v46  ;;  %v389_v46 = vld [vmem:[%s6142_s2] sm:$0xff] }
 0x17f   : > { %4816 = vmatprep.mubr.msk.f32.mxu0 %vm449_vm2, %v389_v46 }
 0x180   : > { %v323_v47 = vpop.permute.xlu0 %322 }
 0x181   : > { %v337_v48 = vsel %vm330_vm0, %v323_v47, 0.0  ;;  %v5649_v47 = vld [vmem:[%s6143_s3 + $0x18] sm:$0xff] }
 0x182   : > { %338 = vadd.xlane.f32.xlu0 %v337_v48  ;;  %v4491_v48 = vld [vmem:[%s6143_s3 + $0x10] sm:$0xff] }
 0x187   : > { %v321_v49 = vpop.permute.xlu1 %320 }
 0x188   : > { %v334_v50 = vsel %vm330_vm0, %v321_v49, 0.0  ;;  %v217_v49 = vlaneseq }
 0x189   : > { %335 = vadd.xlane.f32.xlu1 %v334_v50 }
 0x18a   : > { %v5661_v50 = vand.u32 127, %v217_v49 }
 0x18b   : > { %v325_v51 = vpop.permute.xlu1 %324 }
 0x18c   : > { %v340_v52 = vsel %vm330_vm0, %v325_v51, 0.0  ;;  %vm412_vm3 = vcmp.ge.s32.totalorder %v5661_v50, 2  ;;  %vm425_vm5 = vcmp.lt.s32.totalorder %v5661_v50, 30  ;;  %vm639_vm7 = vcmp.ge.s32.totalorder %v5661_v50, 4 }
 0x18d   : > { %341 = vadd.xlane.f32.xlu0 %v340_v52  ;;  %vm5172_vm4 = vmpackc.low %vm412_vm3, %vm412_vm3  ;;  %vm652_vm9 = vcmp.lt.s32.totalorder %v5661_v50, 28 }
 0x18e   : > { %vm5182_vm6 = vmpackc.low %vm425_vm5, %vm425_vm5 }
 0x18f   : > { %vm5188_vm8 = vmpackc.low %vm639_vm7, %vm639_vm7 }
 0x190   : > { %vm5198_vm10 = vmpackc.low %vm652_vm9, %vm652_vm9 }
 0x19a   : > { %370 = vperm.xlu1 %5402, %v5581_v5  }
 0x19e   : > { %5404 = vset.pattern.permute.xlu1 %v5514_v2 }
 0x19f   : > { %380 = vperm.xlu1 %5404, %v5581_v5  }
 0x1a3   : > { %384 = vperm.xlu1 %5404, %v5586_v6   ;;  %374 = vperm.xlu0 %5403, %v5586_v6  }
 0x1a7   : > { %5430 = vset.pattern.permute.xlu1 %v5515_v4  ;;  %5431 = vset.pattern.permute.xlu0 %v5515_v4 }
 0x1a8   : > { %446 = vperm.xlu0 %5431, %v5649_v47  }
 0x1ac   : > { %5434 = vset.pattern.permute.xlu0 %v5513_v1 }
 0x20b   : > { %v333_v53 = vpop.xlane.xlu0 %332 }
 0x20f   : > { %v339_v54 = vpop.xlane.xlu0 %338 }
 0x216   : > { %v336_v55 = vpop.xlane.xlu1 %335 }
 0x217   : > { %v343_v56 = vadd.f32 %v336_v55, %v333_v53 }
 0x219   : > { %v344_v57 = vrot.slane %v343_v56, 4 }
 0x21a   : > { %v342_v58 = vpop.xlane.xlu0 %341  ;;  %v371_v17 = vpop.permute.xlu1 %370 }
 0x21b   : > { %v345_v59 = vadd.f32 %v344_v57, %v343_v56  ;;  %v352_v60 = vadd.f32 %v342_v58, %v339_v54 }
 0x21d   : > { %v346_v61 = vrot.slane %v345_v59, 2  ;;  %v353_v62 = vrot.slane %v352_v60, 4 }
 0x21e   : > { %v381_v18 = vpop.permute.xlu1 %380 }
 0x21f   : > { %v347_v63 = vadd.f32 %v346_v61, %v345_v59  ;;  %v354_v0 = vadd.f32 %v353_v62, %v352_v60  ;;  %v390_v60 = vld [vmem:[%s6142_s2 + $0x8] sm:$0xff] }
 0x221   : > { %v348_v3 = vrot.slane %v347_v63, 1  ;;  %v355_v5 = vrot.slane %v354_v0, 2 }
 0x222   : > { %v375_v22 = vpop.permute.xlu0 %374  ;;  %v385_v27 = vpop.permute.xlu1 %384 }
 0x223   : > { %v349_v8 = vadd.f32 %v348_v3, %v347_v63  ;;  %v356_v6 = vadd.f32 %v355_v5, %v354_v0 }
 0x225   : > { %v351_v9 = vmul.f32 0.001953125, %v349_v8  ;;  %v357_v10 = vrot.slane %v356_v6, 1 }
 0x227   : > { %v358_v11 = vadd.f32 %v357_v10, %v356_v6  ;;  %v360_v12 = vmul.f32 %v351_v9, %v351_v9  ;;  %v363_v19 = vsub.f32 %v5608_v36, %v351_v9  ;;  %v364_v20 = vsub.f32 %v311_v43, %v351_v9  ;;  %v447_v63 = vpop.permute.xlu0 %446 }
 0x229   : > { %v359_v13 = vmul.f32 0.001953125, %v358_v11 }
 0x22b   : > { %v361_v14 = vsub.f32 %v359_v13, %v360_v12 }
 0x22d   : > { %v362_v15 = vmax.f32 %v361_v14, 0.0 }
 0x22f   : > { %v365_v16 = vadd.f32 1e-08, %v362_v15 }
 0x231   : > { %5475 = vrsqrt.f32 %v365_v16 }
 0x23b   : > { %v5476_v21 = vpop.eup %5475 }
 0x23c   : > { %v367_v23 = vmul.f32 %v5476_v21, %v363_v19  ;;  %v368_v24 = vmul.f32 %v5476_v21, %v364_v20 }
 0x23e   : > { %v377_v25 = vmul.f32 %v371_v17, %v367_v23  ;;  %v378_v26 = vmul.f32 %v375_v22, %v368_v24 }
 0x240   : > { %v5629_v28 = vadd.f32 %v381_v18, %v377_v25  ;;  %v5631_v29 = vadd.f32 %v385_v27, %v378_v26 }
 0x242   : > { %v5405_v30 = vpack.i.bf16 %v5631_v29, %v5629_v28 }
 0x244   : > { %5406 = vrot.lane.b32.xlu1 %v5405_v30, %s5519_s8 }
 0x2b6   : > { %v5407_v31 = vpop.permute.xlu1 %5406 }
 0x2b7   : > { %v5409_v32 = vunpack.i.h.bf16 %v5407_v31  ;;  %v5408_v33 = vunpack.i.l.bf16 %v5407_v31  ;;  %5411 = vrot.lane.b32.xlu1 %v5407_v31, %s5520_s9 }
 0x2b9   : > { %v5177_v58 = vpack.c.bf16 %v5409_v32, %v5408_v33 }
 0x329   : > { %v5412_v34 = vpop.permute.xlu1 %5411 }
 0x32a   : > { %v5414_v35 = vunpack.i.h.bf16 %v5412_v34  ;;  %v5413_v36 = vunpack.i.l.bf16 %v5412_v34 }
 0x32c   : > { %v402_v37 = vsel %vm399_vm1, %v5413_v36, %v5408_v33  ;;  %v405_v38 = vsel %vm399_vm1, %v5414_v35, %v5409_v32 }
 0x32d   : > { %v5415_v39 = vpack.i.bf16 %v405_v38, %v402_v37 }
 0x32f   : > { %5416 = vrot.lane.b32.xlu1 %v5415_v39, %s5520_s9 }
 0x3a1   : > { %v5417_v40 = vpop.permute.xlu1 %5416 }
 0x3a2   : > { %v5419_v41 = vunpack.i.h.bf16 %v5417_v40  ;;  %v5418_v42 = vunpack.i.l.bf16 %v5417_v40 }
 0x3a4   : > { %v410_v43 = vsel %vm399_vm1, %v5418_v42, %v5408_v33  ;;  %v411_v44 = vsel %vm399_vm1, %v5419_v41, %v5409_v32 }
 0x3a5   : > { %v5420_v45 = vpack.i.bf16 %v411_v44, %v410_v43 }
 0x3a7   : > { %5421 = vrot.lane.b32.xlu1 %v5420_v45, %s5521_s10 }
 0x3ab   : > { %5426 = vrot.lane.b32.xlu1 %v5420_v45, %s5518_s7 }
 0x3af   : > { %441 = vperm.xlu1 %5430, %v4491_v48  }
 0x3b3   : > { %5432 = vset.pattern.permute.xlu1 %v5516_v7 }
 0x3b4   : > { %536 = vperm.xlu1 %5432, %v4491_v48  }
 0x3b8   : > { %540 = vperm.xlu1 %5432, %v5649_v47  }
 0x3bc   : > { %5433 = vset.pattern.permute.xlu1 %v5513_v1 }
 0x419   : > { %v5422_v51 = vpop.permute.xlu1 %5421 }
 0x41a   : > { %v5424_v52 = vunpack.i.h.bf16 %v5422_v51  ;;  %v5423_v53 = vunpack.i.l.bf16 %v5422_v51 }
 0x41c   : > { %v5171_v54 = vpack.c.bf16 %v5424_v52, %v5423_v53 }
 0x41d   : > { %v5427_v55 = vpop.permute.xlu1 %5426 }
 0x41e   : > { %v5429_v56 = vunpack.i.h.bf16 %v5427_v55  ;;  %v5428_v57 = vunpack.i.l.bf16 %v5427_v55  ;;  %5173 = vmatprep.subr.msk.bf16.mxu0 %vm5172_vm4, %v5171_v54 }
 0x41f   : > { %5176 = vmatpush3.bf16.msk.msra.mxu0 %vm5172_vm4, %v5171_v54 }
 0x420   : > { %5178 = vmatprep.subr.bf16.mxu0 %v5177_v58  ;;  %v5181_v59 = vpack.c.bf16 %v5429_v56, %v5428_v57 }
 0x423   : > { %5180 = vmatpush3.bf16.msra.mxu0 %v5177_v58 }
 0x424   : > { %5183 = vmatprep.subr.msk.bf16.mxu0 %vm5182_vm6, %v5181_v59 }
 0x427   : > { %5186 = vmatpush3.bf16.msk.msra.mxu0 %vm5182_vm6, %v5181_v59 }
 0x42a   : > { %4817 = vmatmul.mubr.msk.f32.vlgmr.msra.gmra.mrb[0].mxu0 %vm449_vm2, %v390_v60 }
 0x42e   : > { %v442_v61 = vpop.permute.xlu1 %441 }
 0x433   : > { %v537_v62 = vpop.permute.xlu1 %536 }
 0x437   : > { %v541_v6 = vpop.permute.xlu1 %540 }
 0x4fd   : > { %v4818_v0 = vpop.f32.mrb[0].mxu0 }
 0x4fe   : > { %v528_v3 = vadd.f32 %v4818_v0, %v447_v63  ;;  %v522_v5 = vpop.f32.mrb[1].mxu0 }
 0x4ff   : > { %v523_v8 = vadd.f32 %v522_v5, %v442_v61 }
 0x500   : > { %v534_v9 = vmin.f32 %v528_v3, 0.0  ;;  %v532_v11 = vmax.f32 %v528_v3, 0.0 }
 0x501   : > { %v533_v10 = vmin.f32 %v523_v8, 0.0  ;;  %v531_v13 = vmax.f32 %v523_v8, 0.0 }
 0x502   : > { %v544_v12 = vmul.f32 %v541_v6, %v534_v9 }
 0x503   : > { %v543_v14 = vmul.f32 %v537_v62, %v533_v10 }
 0x504   : > { %v546_v15 = vadd.f32 %v544_v12, %v532_v11 }
 0x505   : > { %v545_v16 = vadd.f32 %v543_v14, %v531_v13 }
 0x506   : > { %v552_v17 = vsel %vm330_vm0, %v546_v15, 0.0  ;;  %v548_v21 = vmul.f32 %v546_v15, %v546_v15 }
 0x507   : > { %553 = vadd.xlane.f32.xlu1 %v552_v17  ;;  %v549_v18 = vsel %vm330_vm0, %v545_v16, 0.0  ;;  %v547_v19 = vmul.f32 %v545_v16, %v545_v16 }
 0x508   : > { %550 = vadd.xlane.f32.xlu0 %v549_v18  ;;  %v558_v22 = vsel %vm330_vm0, %v548_v21, 0.0 }
 0x509   : > { %v555_v20 = vsel %vm330_vm0, %v547_v19, 0.0 }
 0x50c   : > { %556 = vadd.xlane.f32.xlu0 %v555_v20 }
 0x510   : > { %559 = vadd.xlane.f32.xlu0 %v558_v22  ;;  %v4499_v22 = vld [vmem:[%s6142_s2 + $0x10] sm:$0xff] }
 0x511   : > { %4831 = vmatprep.mubr.msk.f32.mxu1 %vm449_vm2, %v4499_v22 }
 0x518   : > { %587 = vperm.xlu1 %5433, %v4491_v48  }
 0x51c   : > { %5435 = vset.pattern.permute.xlu1 %v5514_v2 }
 0x51d   : > { %597 = vperm.xlu1 %5435, %v4491_v48  }
 0x521   : > { %601 = vperm.xlu1 %5435, %v5649_v47  }
 0x525   : > { %5462 = vset.pattern.permute.xlu1 %v5515_v4 }
 0x526   : > { %591 = vperm.xlu0 %5434, %v5649_v47  }
 0x52a   : > { %5461 = vset.pattern.permute.xlu0 %v5515_v4 }
 0x594   : > { %v554_v23 = vpop.xlane.xlu1 %553 }
 0x595   : > { %v551_v24 = vpop.xlane.xlu0 %550 }
 0x596   : > { %v561_v25 = vadd.f32 %v554_v23, %v551_v24  ;;  %v4501_v23 = vld [vmem:[%s6143_s3 + $0x20] sm:$0xff]  ;;  %v4502_v24 = vld [vmem:[%s6143_s3 + $0x28] sm:$0xff] }
 0x598   : > { %v562_v26 = vrot.slane %v561_v25, 4  ;;  %v588_v51 = vpop.permute.xlu1 %587 }
 0x599   : > { %v557_v27 = vpop.xlane.xlu0 %556 }
 0x59a   : > { %v563_v30 = vadd.f32 %v562_v26, %v561_v25 }
 0x59c   : > { %v564_v31 = vrot.slane %v563_v30, 2  ;;  %v598_v55 = vpop.permute.xlu1 %597 }
 0x59d   : > { %v560_v32 = vpop.xlane.xlu0 %559 }
 0x59e   : > { %v565_v33 = vadd.f32 %v564_v31, %v563_v30  ;;  %v569_v34 = vadd.f32 %v560_v32, %v557_v27 }
 0x5a0   : > { %v566_v35 = vrot.slane %v565_v33, 1  ;;  %v570_v36 = vrot.slane %v569_v34, 4  ;;  %v602_v62 = vpop.permute.xlu1 %601 }
 0x5a2   : > { %v571_v37 = vadd.f32 %v570_v36, %v569_v34  ;;  %v567_v38 = vadd.f32 %v566_v35, %v565_v33 }
 0x5a4   : > { %v572_v39 = vrot.slane %v571_v37, 2  ;;  %v568_v41 = vmul.f32 0.001953125, %v567_v38 }
 0x5a5   : > { %v592_v58 = vpop.permute.xlu0 %591 }
 0x5a6   : > { %v573_v40 = vadd.f32 %v572_v39, %v571_v37  ;;  %v577_v44 = vmul.f32 %v568_v41, %v568_v41  ;;  %v580_v52 = vsub.f32 %v545_v16, %v568_v41  ;;  %v581_v53 = vsub.f32 %v546_v15, %v568_v41 }
 0x5a8   : > { %v574_v42 = vrot.slane %v573_v40, 1 }
 0x5aa   : > { %v575_v43 = vadd.f32 %v574_v42, %v573_v40 }
 0x5ac   : > { %v576_v45 = vmul.f32 0.001953125, %v575_v43 }
 0x5ae   : > { %v578_v46 = vsub.f32 %v576_v45, %v577_v44 }
 0x5b0   : > { %v579_v47 = vmax.f32 %v578_v46, 0.0 }
 0x5b2   : > { %v582_v48 = vadd.f32 1e-08, %v579_v47 }
 0x5b4   : > { %5477 = vrsqrt.f32 %v582_v48 }
 0x5be   : > { %v5478_v54 = vpop.eup %5477 }
 0x5bf   : > { %v584_v56 = vmul.f32 %v5478_v54, %v580_v52  ;;  %v585_v57 = vmul.f32 %v5478_v54, %v581_v53 }
 0x5c1   : > { %v594_v59 = vmul.f32 %v588_v51, %v584_v56  ;;  %v595_v61 = vmul.f32 %v592_v58, %v585_v57 }
 0x5c3   : > { %v604_v60 = vadd.f32 %v598_v55, %v594_v59  ;;  %v605_v63 = vadd.f32 %v602_v62, %v595_v61 }
 0x5c5   : > { %608 = vrot.lane.b32.xlu1 %v604_v60, %s5522_s21 }
 0x5c9   : > { %610 = vrot.lane.b32.xlu1 %v605_v63, %s5522_s21 }
 0x637   : > { %v609_v0 = vpop.permute.xlu1 %608 }
 0x638   : > { %v5681_v5 = vadd.f32 %v609_v0, %v5629_v28 }
 0x63b   : > { %v611_v3 = vpop.permute.xlu1 %610 }
 0x63c   : > { %v5684_v8 = vadd.f32 %v611_v3, %v5631_v29 }
 0x63e   : > { %v5436_v6 = vpack.i.bf16 %v5684_v8, %v5681_v5 }
 0x640   : > { %5437 = vrot.lane.b32.xlu1 %v5436_v6, %s5519_s8 }
 0x6b2   : > { %v5438_v9 = vpop.permute.xlu1 %5437 }
 0x6b3   : > { %v5440_v10 = vunpack.i.h.bf16 %v5438_v9  ;;  %v5439_v11 = vunpack.i.l.bf16 %v5438_v9  ;;  %5442 = vrot.lane.b32.xlu1 %v5438_v9, %s5520_s9 }
 0x6b5   : > { %v5193_v34 = vpack.c.bf16 %v5440_v10, %v5439_v11 }
 0x725   : > { %v5443_v12 = vpop.permute.xlu1 %5442 }
 0x726   : > { %v5445_v13 = vunpack.i.h.bf16 %v5443_v12  ;;  %v5444_v14 = vunpack.i.l.bf16 %v5443_v12 }
 0x728   : > { %v629_v15 = vsel %vm399_vm1, %v5444_v14, %v5439_v11  ;;  %v632_v28 = vsel %vm399_vm1, %v5445_v13, %v5440_v10 }
 0x729   : > { %v5446_v16 = vpack.i.bf16 %v632_v28, %v629_v15 }
 0x72b   : > { %5447 = vrot.lane.b32.xlu1 %v5446_v16, %s5520_s9 }
 0x79d   : > { %v5448_v29 = vpop.permute.xlu1 %5447 }
 0x79e   : > { %v5450_v17 = vunpack.i.h.bf16 %v5448_v29  ;;  %v5449_v18 = vunpack.i.l.bf16 %v5448_v29 }
 0x7a0   : > { %v637_v19 = vsel %vm399_vm1, %v5449_v18, %v5439_v11  ;;  %v638_v20 = vsel %vm399_vm1, %v5450_v17, %v5440_v10 }
 0x7a1   : > { %v5456_v21 = vpack.i.bf16 %v638_v20, %v637_v19 }
 0x7a3   : > { %5457 = vrot.lane.b32.xlu1 %v5456_v21, %s5523_s22  ;;  %5452 = vrot.lane.b32.xlu0 %v5456_v21, %s5524_s23 }
 0x7a7   : > { %668 = vperm.xlu0 %5461, %v4501_v23   ;;  %673 = vperm.xlu1 %5462, %v4502_v24  }
 0x7ab   : > { %5464 = vset.pattern.permute.xlu0 %v5516_v7  ;;  %5463 = vset.pattern.permute.xlu1 %v5516_v7 }
 0x7ac   : > { %766 = vperm.xlu0 %5464, %v4502_v24   ;;  %762 = vperm.xlu1 %5463, %v4501_v23  }
 0x7b0   : > { %5465 = vset.pattern.permute.xlu1 %v5513_v1  ;;  %5466 = vset.pattern.permute.xlu0 %v5513_v1  ;;  %v4500_v1 = vld [vmem:[%s6142_s2 + $0x18] sm:$0xff] }
 0x815   : > { %v5453_v25 = vpop.permute.xlu0 %5452  ;;  %v5458_v30 = vpop.permute.xlu1 %5457 }
 0x816   : > { %v5455_v26 = vunpack.i.h.bf16 %v5453_v25  ;;  %v5454_v27 = vunpack.i.l.bf16 %v5453_v25  ;;  %v5460_v32 = vunpack.i.h.bf16 %v5458_v30  ;;  %v5459_v33 = vunpack.i.l.bf16 %v5458_v30 }
 0x818   : > { %v5187_v31 = vpack.c.bf16 %v5455_v26, %v5454_v27  ;;  %v5197_v7 = vpack.c.bf16 %v5460_v32, %v5459_v33 }
 0x81a   : > { %5189 = vmatprep.subr.msk.bf16.mxu1 %vm5188_vm8, %v5187_v31 }
 0x81b   : > { %5192 = vmatpush3.bf16.msk.msra.mxu1 %vm5188_vm8, %v5187_v31 }
 0x81c   : > { %5194 = vmatprep.subr.bf16.mxu1 %v5193_v34 }
 0x81f   : > { %5196 = vmatpush3.bf16.msra.mxu1 %v5193_v34 }
 0x820   : > { %5199 = vmatprep.subr.msk.bf16.mxu1 %vm5198_vm10, %v5197_v7 }
 0x823   : > { %5202 = vmatpush3.bf16.msk.msra.mxu1 %vm5198_vm10, %v5197_v7 }
 0x826   : > { %4832 = vmatmul.mubr.msk.f32.vlgmr.msra.gmra.mrb[0].mxu1 %vm449_vm2, %v4500_v1  ;;  %v669_v35 = vpop.permute.xlu0 %668  ;;  %v674_v36 = vpop.permute.xlu1 %673  ;;  %vm1172_vm2 = vcmask 1040384  }
 0x82b   : > { %v767_v41 = vpop.permute.xlu0 %766  ;;  %v763_v43 = vpop.permute.xlu1 %762 }
 0x8f9   : > { %v4833_v37 = vpop.f32.mrb[0].mxu1 }
 0x8fa   : > { %v754_v38 = vadd.f32 %v4833_v37, %v674_v36  ;;  %v748_v39 = vpop.f32.mrb[1].mxu1  ;;  %v842_v36 = vld [vmem:[%s6144_s4] sm:$0xff] }
 0x8fb   : > { %v749_v40 = vadd.f32 %v748_v39, %v669_v35  ;;  %4838 = vmatprep.mubr.msk.f32.mxu0 %vm874_vm11, %v842_v36 }
 0x8fc   : > { %v760_v42 = vmin.f32 %v754_v38, 0.0  ;;  %v758_v45 = vmax.f32 %v754_v38, 0.0 }
 0x8fd   : > { %v759_v44 = vmin.f32 %v749_v40, 0.0  ;;  %v757_v47 = vmax.f32 %v749_v40, 0.0 }
 0x8fe   : > { %v770_v46 = vmul.f32 %v767_v41, %v760_v42  ;;  %v845_v41 = vld [vmem:[%s6144_s4 + $0x18] sm:$0xff]  ;;  %v5525_v42 = vmov 16  }
 0x8ff   : > { %v769_v48 = vmul.f32 %v763_v43, %v759_v44  ;;  %v843_v43 = vld [vmem:[%s6144_s4 + $0x8] sm:$0xff] }
 0x900   : > { %v772_v51 = vadd.f32 %v770_v46, %v758_v45 }
 0x901   : > { %v771_v52 = vadd.f32 %v769_v48, %v757_v47  ;;  %v5526_v47 = vmov 0.0|0.0   ;;  %v5528_v48 = vmov 0.0  }
 0x902   : > { %v778_v53 = vsel %vm330_vm0, %v772_v51, 0.0  ;;  %v774_v54 = vmul.f32 %v772_v51, %v772_v51  ;;  %5214 = vmatprep.subr.bf16.mxu1 %v5526_v47  ;;  %4862 = vmatprep.mubr.msk.f32.mxu1 %vm5527_vm12, %v5528_v48 }
 0x903   : > { %779 = vadd.xlane.f32.xlu0 %v778_v53  ;;  %v775_v55 = vsel %vm330_vm0, %v771_v52, 0.0  ;;  %v773_v56 = vmul.f32 %v771_v52, %v771_v52 }
 0x904   : > { %776 = vadd.xlane.f32.xlu1 %v775_v55  ;;  %v784_v57 = vsel %vm330_vm0, %v774_v54, 0.0 }
 0x905   : > { %v781_v58 = vsel %vm330_vm0, %v773_v56, 0.0 }
 0x907   : > { %785 = vadd.xlane.f32.xlu0 %v784_v57 }
 0x908   : > { %782 = vadd.xlane.f32.xlu1 %v781_v58 }
 0x919   : > { %813 = vperm.xlu1 %5465, %v4501_v23  }
 0x91d   : > { %5467 = vset.pattern.permute.xlu1 %v5514_v2  ;;  %817 = vperm.xlu0 %5466, %v4502_v24  }
 0x91e   : > { %823 = vperm.xlu1 %5467, %v4501_v23  }
 0x921   : > { %5474 = vset.pattern.permute.xlu0 %v5525_v42 }
 0x922   : > { %827 = vperm.xlu1 %5467, %v4502_v24   ;;  %863 = vperm.xlu0 %5474, %v845_v41  }
 0x926   : > { %5473 = vset.pattern.permute.xlu1 %v5525_v42 }
 0x990   : > { %v780_v59 = vpop.xlane.xlu0 %779 }
 0x991   : > { %v777_v60 = vpop.xlane.xlu1 %776 }
 0x992   : > { %v787_v61 = vadd.f32 %v780_v59, %v777_v60 }
 0x994   : > { %v788_v62 = vrot.slane %v787_v61, 4  ;;  %v786_v63 = vpop.xlane.xlu0 %785 }
 0x995   : > { %v783_v0 = vpop.xlane.xlu1 %782 }
 0x996   : > { %v789_v3 = vadd.f32 %v788_v62, %v787_v61  ;;  %v795_v6 = vadd.f32 %v786_v63, %v783_v0 }
 0x998   : > { %v790_v9 = vrot.slane %v789_v3, 2  ;;  %v796_v10 = vrot.slane %v795_v6, 4 }
 0x999   : > { %v814_v22 = vpop.permute.xlu1 %813 }
 0x99a   : > { %v791_v11 = vadd.f32 %v790_v9, %v789_v3  ;;  %v797_v12 = vadd.f32 %v796_v10, %v795_v6 }
 0x99c   : > { %v792_v13 = vrot.slane %v791_v11, 1  ;;  %v798_v14 = vrot.slane %v797_v12, 2  ;;  %v818_v31 = vpop.permute.xlu0 %817 }
 0x99d   : > { %v824_v26 = vpop.permute.xlu1 %823 }
 0x99e   : > { %v793_v15 = vadd.f32 %v792_v13, %v791_v11  ;;  %v799_v28 = vadd.f32 %v798_v14, %v797_v12 }
 0x9a0   : > { %v794_v2 = vmul.f32 0.001953125, %v793_v15  ;;  %v800_v16 = vrot.slane %v799_v28, 1 }
 0x9a1   : > { %v828_v7 = vpop.permute.xlu1 %827  ;;  %v864_v57 = vpop.permute.xlu0 %863 }
 0x9a2   : > { %v801_v29 = vadd.f32 %v800_v16, %v799_v28  ;;  %v803_v17 = vmul.f32 %v794_v2, %v794_v2  ;;  %v806_v23 = vsub.f32 %v771_v52, %v794_v2  ;;  %v807_v24 = vsub.f32 %v772_v51, %v794_v2 }
 0x9a4   : > { %v802_v18 = vmul.f32 0.001953125, %v801_v29 }
 0x9a6   : > { %v804_v19 = vsub.f32 %v802_v18, %v803_v17 }
 0x9a8   : > { %v805_v20 = vmax.f32 %v804_v19, 0.0 }
 0x9aa   : > { %v808_v21 = vadd.f32 1e-08, %v805_v20 }
 0x9ac   : > { %5479 = vrsqrt.f32 %v808_v21 }
 0x9b6   : > { %v5480_v25 = vpop.eup %5479 }
 0x9b7   : > { %v810_v27 = vmul.f32 %v5480_v25, %v806_v23  ;;  %v811_v30 = vmul.f32 %v5480_v25, %v807_v24 }
 0x9b9   : > { %v820_v32 = vmul.f32 %v814_v22, %v810_v27  ;;  %v821_v34 = vmul.f32 %v818_v31, %v811_v30 }
 0x9bb   : > { %v830_v33 = vadd.f32 %v824_v26, %v820_v32  ;;  %v831_v1 = vadd.f32 %v828_v7, %v821_v34  ;;  %v999_v32 = vshrl.u32 %v217_v49, 7 }
 0x9bd   : > { %834 = vrot.lane.b32.xlu1 %v830_v33, %s5522_s21  ;;  %vm1000_vm14 = vcmp.eq.s32.totalorder %v999_v32, %v5661_v50 }
 0x9c1   : > { %836 = vrot.lane.b32.xlu1 %v831_v1, %s5522_s21 }
 0xa2f   : > { %v835_v35 = vpop.permute.xlu1 %834 }
 0xa30   : > { %v840_v38 = vadd.f32 %v835_v35, %v5681_v5  ;;  %v844_v5 = vld [vmem:[%s6144_s4 + $0x10] sm:$0xff] }
 0xa33   : > { %v837_v37 = vpop.permute.xlu1 %836 }
 0xa34   : > { %v841_v39 = vadd.f32 %v837_v37, %v5684_v8 }
 0xa36   : > { %v5468_v40 = vpack.i.bf16 %v841_v39, %v840_v38  ;;  %v5529_v39 = vmov 1.0  }
 0xa38   : > { %5469 = vrot.lane.b32.xlu1 %v5468_v40, %s5519_s8  ;;  %s4489_s8 = sshll.u32 %s6149_s19, 1 }
 0xa39   : > { %s216_s20 = scalar_lea.vmem %s6145_s5, %s4489_s8 }
 0xa3c   : > { %848 = vperm.xlu1 %5473, %v842_v36   ;;  %v4513_v36 = vsel %vm1000_vm14, 1.0, %v5528_v48 }
 0xa40   : > { %853 = vperm.xlu1 %5473, %v843_v43  }
 0xa44   : > { %858 = vperm.xlu1 %5473, %v844_v5  }
 0xaaa   : > { %v5470_v8 = vpop.permute.xlu1 %5469 }
 0xaab   : > { %v5472_v44 = vunpack.i.h.bf16 %v5470_v8  ;;  %v5471_v45 = vunpack.i.l.bf16 %v5470_v8 }
 0xaad   : > { %v5203_v46 = vpack.c.bf16 %v5472_v44, %v5471_v45 }
 0xaaf   : > { %5204 = vmatprep.subr.bf16.mxu0 %v5203_v46 }
 0xab0   : > { %5206 = vmatpush3.bf16.msra.mxu0 %v5203_v46 }
 0xab1   : > { %5207 = vmatprep.subr.bf16.mxu0 %v5526_v47 }
 0xab3   : > { %4839 = vmatmul.mubr.msk.f32.vlgmr.msra.gmra.mrb[2].mxu0 %vm874_vm11, %v843_v43 }
 0xab4   : > { %4841 = vmatprep.mubr.msk.f32.mxu0 %vm874_vm11, %v844_v5 }
 0xab7   : > { %4842 = vmatmul.mubr.msk.f32.gmra.mrb[4].mxu0 %vm874_vm11, %v845_v41 }
 0xab8   : > { %4848 = vmatprep.mubr.msk.f32.mxu0 %vm5527_vm12, %v5528_v48 }
 0xabb   : > { %v849_v51 = vpop.permute.xlu1 %848 }
 0xabf   : > { %v854_v52 = vpop.permute.xlu1 %853 }
 0xac3   : > { %v859_v61 = vpop.permute.xlu1 %858 }
 0xb86   : > { %v4840_v53 = vpop.f32.mrb[2].mxu0 }
 0xb87   : > { %v955_v54 = vadd.f32 %v4840_v53, %v854_v52  ;;  %v949_v55 = vpop.f32.mrb[3].mxu0 }
 0xb88   : > { %v950_v56 = vadd.f32 %v949_v55, %v849_v51 }
 0xb89   : > { %v969_v58 = vmul.f32 %v955_v54, %v955_v54 }
 0xb8a   : > { %v968_v59 = vmul.f32 %v950_v56, %v950_v56  ;;  %v4843_v60 = vpop.f32.mrb[4].mxu0 }
 0xb8b   : > { %v971_v62 = vsel %vm330_vm0, %v969_v58, 0.0  ;;  %v965_v63 = vadd.f32 %v4843_v60, %v864_v57  ;;  %v959_v0 = vpop.f32.mrb[5].mxu0 }
 0xb8c   : > { %v970_v3 = vsel %vm330_vm0, %v968_v59, 0.0  ;;  %v960_v6 = vadd.f32 %v959_v0, %v859_v61 }
 0xb8d   : > { %v972_v9 = vadd.f32 %v971_v62, %v970_v3  ;;  %v984_v10 = vmul.f32 %v965_v63, %v965_v63 }
 0xb8e   : > { %v983_v11 = vmul.f32 %v960_v6, %v960_v6 }
 0xb8f   : > { %v973_v12 = vrot.slane %v972_v9, 4  ;;  %v986_v13 = vsel %vm330_vm0, %v984_v10, 0.0 }
 0xb90   : > { %v985_v14 = vsel %vm330_vm0, %v983_v11, 0.0 }
 0xb91   : > { %v974_v15 = vadd.f32 %v973_v12, %v972_v9  ;;  %v987_v28 = vadd.f32 %v986_v13, %v985_v14 }
 0xb93   : > { %v975_v2 = vrot.slane %v974_v15, 2  ;;  %v988_v16 = vrot.slane %v987_v28, 4 }
 0xb95   : > { %v976_v29 = vadd.f32 %v975_v2, %v974_v15  ;;  %v989_v17 = vadd.f32 %v988_v16, %v987_v28 }
 0xb97   : > { %v977_v18 = vrot.slane %v976_v29, 1  ;;  %v990_v19 = vrot.slane %v989_v17, 2 }
 0xb99   : > { %v978_v20 = vadd.f32 %v977_v18, %v976_v29  ;;  %v991_v21 = vadd.f32 %v990_v19, %v989_v17 }
 0xb9b   : > { %v979_v22 = vadd.f32 1e-12, %v978_v20  ;;  %v992_v23 = vrot.slane %v991_v21, 1 }
 0xb9d   : > { %5481 = vrsqrt.f32 %v979_v22  ;;  %v993_v24 = vadd.f32 %v992_v23, %v991_v21 }
 0xb9f   : > { %v994_v25 = vadd.f32 1e-12, %v993_v24 }
 0xba1   : > { %5483 = vrsqrt.f32 %v994_v25 }
 0xba7   : > { %v5482_v26 = vpop.eup %5481 }
 0xba8   : > { %v981_v27 = vmul.f32 %v5482_v26, %v950_v56  ;;  %v982_v30 = vmul.f32 %v5482_v26, %v955_v54 }
 0xbaa   : > { %v5758_v33 = vpack.c.bf16 %v982_v30, %v981_v27 }
 0xbab   : > { %v5484_v34 = vpop.eup %5483 }
 0xbac   : > { %v996_v7 = vmul.f32 %v5484_v34, %v960_v6  ;;  %v997_v1 = vmul.f32 %v5484_v34, %v965_v63  ;;  %5210 = vmatpush3.bf16.xpose.msk.msra.mxu0 %vm5753_vm13, %v5758_v33 }
 0xbad   : > { %5211 = vmatprep.subr.bf16.mxu0 %v5526_v47 }
 0xbae   : > { %v5765_v35 = vpack.c.bf16 %v997_v1, %v996_v7 }
 0xbb0   : > { %5216 = vmatpush3.bf16.msra.mxu1 %v5765_v35 }
 0xbb1   : > { %5225 = vmatprep.subr.bf16.mxu1 %v5526_v47 }
 0xbb3   : > { %4849 = vmatmul.mubr.msk.f32.vlgmr.msra.gmra.mrb[6].mxu0 %vm330_vm0, %v4513_v36 }
 0xbb4   : > { %5213 = vmatpush3.bf16.msra.mxu0 %v5758_v33  ;;  %4855 = vmatprep.mubr.msk.f32.mxu0 %vm5527_vm12, %v5528_v48 }
 0xbb5   : > { %5217 = vmatprep.subr.bf16.mxu0 %v5526_v47 }
 0xc86   : > { %v5775_v49 = vpop.f32.mrb[6].mxu0 }
 0xc87   : > { %v4850_v50 = vpop.f32.mrb[7].mxu0  ;;  %4856 = vmatmul.mubr.msk.f32.vlgmr.msra.gmra.mrb[8].mxu0 %vm874_vm11, %v5775_v49  ;;  %4863 = vmatmul.mubr.msk.f32.vlgmr.msra.gmra.mrb[2].mxu1 %vm874_vm11, %v5775_v49  ;;  %v1082_v37 = vmul.f32 %v5775_v49, %v5775_v49 }
 0xc88   : > { %5220 = vmatpush3.bf16.xpose.msk.msra.mxu0 %vm5753_vm13, %v5765_v35  ;;  %5227 = vmatpush3.bf16.msra.mxu1 %v5758_v33 }
 0xc89   : > { %v1084_v38 = vsel %vm1083_vm15, %v1082_v37, 0.0  ;;  %4869 = vmatprep.subr.mxu0 %v5528_v48  ;;  %4871 = vmatprep.mubr.msk.f32.mxu0 %vm5527_vm12, %v5528_v48 }
 0xc8a   : > { %1085 = vadd.xlane.f32.xlu1 %v1084_v38  ;;  %4887 = vmatprep.mubr.msk.f32.mxu1 %vm5527_vm12, %v5528_v48 }
 0xc8b   : > { %5228 = vmatprep.subr.bf16.mxu1 %v5526_v47 }
 0xc90   : > { %4870 = vmatpush3.xpose.msk.msra.mxu0 %vm330_vm0, %v5529_v39 }
 0xc91   : > { %5221 = vmatprep.subr.bf16.mxu0 %v5526_v47 }
 0xd17   : > { %v1086_v44 = vpop.xlane.xlu1 %1085 }
 0xd5a   : > { %v1156_v40 = vpop.f32.mrb[8].mxu0  ;;  %v1240_v41 = vpop.f32.mrb[2].mxu1 }
 0xd5b   : > { %v1160_v42 = vmul.f32 2.0, %v1156_v40  ;;  %v1244_v43 = vmul.f32 2.0, %v1240_v41  ;;  %v4857_v5 = vpop.f32.mrb[9].mxu0  ;;  %v4864_v8 = vpop.f32.mrb[3].mxu1 }
 0xd5d   : > { %v1161_v45 = vsub.f32 %v1160_v42, %v1086_v44  ;;  %v1245_v46 = vsub.f32 %v1244_v43, %v1086_v44 }
 0xd5f   : > { %v1247_v51 = vrot.slane %v1245_v46, 1  ;;  %v1163_v52 = vrot.slane %v1161_v45, 1 }
 0xd61   : > { %vm1249_vm1 = vcmp.ge.f32.partialorder %v1245_v46, %v1247_v51  ;;  %vm1165_vm3 = vcmp.ge.f32.partialorder %v1161_v45, %v1163_v52 }
 0xd62   : > { %v4520_v53 = vsel %vm1249_vm1, 1.0, %v5528_v48  ;;  %v4518_v57 = vsel %vm1165_vm3, 1.0, %v5528_v48 }
 0xd63   : > { %v1252_v54 = vsub.f32 1.0, %v4520_v53  ;;  %v1168_v58 = vsub.f32 1.0, %v4518_v57 }
 0xd65   : > { %v1254_v55 = vrot.slane %v1252_v54, 7  ;;  %v1170_v59 = vrot.slane %v1168_v58, 7 }
 0xd67   : > { %v1256_v56 = vsel %vm1172_vm2, %v4520_v53, %v1254_v55  ;;  %v1173_v60 = vsel %vm1172_vm2, %v4518_v57, %v1170_v59 }
 0xd68   : > { %4872 = vmatmul.mubr.msk.f32.vlgmr.msra.gmra.mrb[10].mxu0 %vm330_vm0, %v1256_v56 }
 0xd69   : > { %5224 = vmatpush3.bf16.xpose.msk.msra.mxu0 %vm5753_vm13, %v5758_v33  ;;  %4880 = vmatprep.mubr.msk.f32.mxu0 %vm5527_vm12, %v5528_v48 }
 0xd6a   : > { %4878 = vmatprep.subr.mxu0 %v5528_v48 }
 0xd71   : > { %4879 = vmatpush3.xpose.msk.msra.mxu0 %vm330_vm0, %v5529_v39 }
 0xd72   : > { %5239 = vmatprep.subr.bf16.mxu0 %v5526_v47 }
 0xd74   : > { %4881 = vmatmul.mubr.msk.f32.vlgmr.msra.gmra.mrb[10].mxu0 %vm330_vm0, %v1173_v60 }
 0xd75   : > { %5241 = vmatpush3.bf16.msra.mxu0 %v5758_v33  ;;  %4919 = vmatprep.mubr.msk.f32.mxu0 %vm5527_vm12, %v5528_v48 }
 0xd76   : > { %5242 = vmatprep.subr.bf16.mxu0 %v5526_v47 }
 0xe47   : > { %v1408_v61 = vpop.f32.mrb[10].mxu0 }
 0xe48   : > { %v1412_v62 = vmax.f32 %v1408_v61, 1.0  ;;  %v4882_v63 = vpop.f32.mrb[11].mxu0  ;;  %vm1420_vm4 = vcmp.gt.f32.partialorder %v1408_v61, 0.0 }
 0xe49   : > { %v1421_v0 = vsel %vm1420_vm4, 1, %v5515_v4 }
 0xe4a   : > { %1415 = vperm.xlu0 %5474, %v1412_v62  }
 0xe4e   : > { %1423 = vperm.xlu0 %5474, %v1421_v0  }
 0xec9   : > { %v1416_v3 = vpop.permute.xlu0 %1415 }
 0xeca   : > { %5485 = vrcp.f32 %v1416_v3 }
 0xecd   : > { %v1424_v6 = vpop.permute.xlu0 %1423 }
 0xece   : > { %vm1425_vm5 = vcmp.eq.s32.totalorder %v1424_v6, 1 }
 0xed4   : > { %v5486_v9 = vpop.eup %5485 }
 0xed5   : > { %v1419_v10 = vmul.f32 %v5486_v9, %v1408_v61 }
 0xed7   : > { %v1426_v11 = vsel %vm1425_vm5, %v1419_v10, %v5775_v49 }
 0xed8   : > { %4888 = vmatmul.mubr.msk.f32.vlgmr.msra.gmra.mrb[4].mxu1 %vm874_vm11, %v1426_v11  ;;  %v1427_v12 = vmul.f32 %v1426_v11, %v1426_v11 }
 0xed9   : > { %5230 = vmatpush3.bf16.msra.mxu1 %v5765_v35  ;;  %4894 = vmatprep.mubr.msk.f32.mxu1 %vm5527_vm12, %v5528_v48 }
 0xeda   : > { %v1428_v13 = vsel %vm1083_vm15, %v1427_v12, 0.0  ;;  %5231 = vmatprep.subr.bf16.mxu1 %v5526_v47 }
 0xedb   : > { %1429 = vadd.xlane.f32.xlu0 %v1428_v13 }
 0xedc   : > { %4895 = vmatmul.mubr.msk.f32.vlgmr.msra.gmra.mrb[6].mxu1 %vm874_vm11, %v1426_v11 }
 0xedd   : > { %4903 = vmatprep.mubr.msk.f32.mxu1 %vm5527_vm12, %v5528_v48 }
 0xee2   : > { %5234 = vmatpush3.bf16.xpose.msk.msra.mxu1 %vm5753_vm13, %v5765_v35 }
 0xee3   : > { %4901 = vmatprep.subr.mxu1 %v5528_v48 }
 0xeea   : > { %4902 = vmatpush3.xpose.msk.msra.mxu1 %vm330_vm0, %v5529_v39 }
 0xeeb   : > { %5235 = vmatprep.subr.bf16.mxu1 %v5526_v47 }
 0xf68   : > { %v1430_v17 = vpop.xlane.xlu0 %1429 }
 0xfab   : > { %v1500_v14 = vpop.f32.mrb[4].mxu1 }
 0xfac   : > { %v4889_v15 = vpop.f32.mrb[5].mxu1  ;;  %v1504_v28 = vmul.f32 2.0, %v1500_v14 }
 0xfae   : > { %v1505_v18 = vsub.f32 %v1504_v28, %v1430_v17 }
 0xfaf   : > { %v1583_v2 = vpop.f32.mrb[6].mxu1 }
 0xfb0   : > { %v1587_v16 = vmul.f32 2.0, %v1583_v2  ;;  %v4896_v29 = vpop.f32.mrb[7].mxu1  ;;  %v1507_v21 = vrot.slane %v1505_v18, 1 }
 0xfb2   : > { %v1588_v19 = vsub.f32 %v1587_v16, %v1430_v17  ;;  %vm1509_vm7 = vcmp.ge.f32.partialorder %v1505_v18, %v1507_v21 }
 0xfb3   : > { %v4530_v26 = vsel %vm1509_vm7, 1.0, %v5528_v48 }
 0xfb4   : > { %v1590_v20 = vrot.slane %v1588_v19, 1  ;;  %v1512_v27 = vsub.f32 1.0, %v4530_v26 }
 0xfb6   : > { %vm1592_vm6 = vcmp.ge.f32.partialorder %v1588_v19, %v1590_v20  ;;  %v1514_v30 = vrot.slane %v1512_v27, 7 }
 0xfb7   : > { %v4532_v22 = vsel %vm1592_vm6, 1.0, %v5528_v48 }
 0xfb8   : > { %v1595_v23 = vsub.f32 1.0, %v4532_v22  ;;  %v1516_v32 = vsel %vm1172_vm2, %v4530_v26, %v1514_v30 }
 0xfba   : > { %v1597_v24 = vrot.slane %v1595_v23, 7 }
 0xfbc   : > { %v1599_v25 = vsel %vm1172_vm2, %v4532_v22, %v1597_v24 }
 0xfbd   : > { %4904 = vmatmul.mubr.msk.f32.vlgmr.msra.gmra.mrb[8].mxu1 %vm330_vm0, %v1599_v25 }
 0xfbe   : > { %5238 = vmatpush3.bf16.xpose.msk.msra.mxu1 %vm5753_vm13, %v5758_v33  ;;  %4912 = vmatprep.mubr.msk.f32.mxu1 %vm5527_vm12, %v5528_v48 }
 0xfbf   : > { %4910 = vmatprep.subr.mxu1 %v5528_v48 }
 0xfc6   : > { %4911 = vmatpush3.xpose.msk.msra.mxu1 %vm330_vm0, %v5529_v39 }
 0xfc7   : > { %5253 = vmatprep.subr.bf16.mxu1 %v5526_v47 }
 0xfc9   : > { %4913 = vmatmul.mubr.msk.f32.vlgmr.msra.gmra.mrb[8].mxu1 %vm330_vm0, %v1516_v32 }
 0xfca   : > { %5255 = vmatpush3.bf16.msra.mxu1 %v5758_v33  ;;  %4951 = vmatprep.mubr.msk.f32.mxu1 %vm5527_vm12, %v5528_v48 }
 0xfcb   : > { %5256 = vmatprep.subr.bf16.mxu1 %v5526_v47 }
0x109c   : > { %v1742_v34 = vpop.f32.mrb[8].mxu1 }
0x109d   : > { %v1746_v7 = vmax.f32 %v1742_v34, 1.0  ;;  %v4914_v1 = vpop.f32.mrb[9].mxu1  ;;  %vm1754_vm8 = vcmp.gt.f32.partialorder %v1742_v34, 0.0 }
0x109e   : > { %v1755_v36 = vsel %vm1754_vm8, 1, %v5515_v4 }
0x109f   : > { %1757 = vperm.xlu0 %5474, %v1755_v36   ;;  %1749 = vperm.xlu1 %5473, %v1746_v7  }
0x111e   : > { %v1750_v49 = vpop.permute.xlu1 %1749  ;;  %v1758_v50 = vpop.permute.xlu0 %1757 }
0x111f   : > { %5487 = vrcp.f32 %v1750_v49  ;;  %vm1759_vm9 = vcmp.eq.s32.totalorder %v1758_v50, 1 }
0x1129   : > { %v5488_v37 = vpop.eup %5487 }
0x112a   : > { %v1753_v38 = vmul.f32 %v5488_v37, %v1742_v34 }
0x112c   : > { %v1760_v40 = vsel %vm1759_vm9, %v1753_v38, %v1426_v11 }
0x112d   : > { %4920 = vmatmul.mubr.msk.f32.vlgmr.msra.gmra.mrb[12].mxu0 %vm874_vm11, %v1760_v40  ;;  %v1761_v41 = vmul.f32 %v1760_v40, %v1760_v40 }
0x112e   : > { %5244 = vmatpush3.bf16.msra.mxu0 %v5765_v35  ;;  %4926 = vmatprep.mubr.msk.f32.mxu0 %vm5527_vm12, %v5528_v48 }
0x112f   : > { %v1762_v42 = vsel %vm1083_vm15, %v1761_v41, 0.0  ;;  %5245 = vmatprep.subr.bf16.mxu0 %v5526_v47 }
0x1130   : > { %1763 = vadd.xlane.f32.xlu1 %v1762_v42 }
0x1131   : > { %4927 = vmatmul.mubr.msk.f32.vlgmr.msra.gmra.mrb[14].mxu0 %vm874_vm11, %v1760_v40 }
0x1132   : > { %4935 = vmatprep.mubr.msk.f32.mxu0 %vm5527_vm12, %v5528_v48 }
0x1137   : > { %5248 = vmatpush3.bf16.xpose.msk.msra.mxu0 %vm5753_vm13, %v5765_v35 }
0x1138   : > { %4933 = vmatprep.subr.mxu0 %v5528_v48 }
0x113f   : > { %4934 = vmatpush3.xpose.msk.msra.mxu0 %vm330_vm0, %v5529_v39 }
0x1140   : > { %5249 = vmatprep.subr.bf16.mxu0 %v5526_v47 }
0x11bd   : > { %v1764_v51 = vpop.xlane.xlu1 %1763 }
0x1200   : > { %v1834_v43 = vpop.f32.mrb[12].mxu0 }
0x1201   : > { %v4921_v5 = vpop.f32.mrb[13].mxu0  ;;  %v1838_v8 = vmul.f32 2.0, %v1834_v43 }
0x1203   : > { %v1839_v52 = vsub.f32 %v1838_v8, %v1764_v51 }
0x1204   : > { %v1917_v44 = vpop.f32.mrb[14].mxu0 }
0x1205   : > { %v1921_v45 = vmul.f32 2.0, %v1917_v44  ;;  %v4928_v46 = vpop.f32.mrb[15].mxu0  ;;  %v1841_v55 = vrot.slane %v1839_v52, 1 }
0x1207   : > { %v1922_v53 = vsub.f32 %v1921_v45, %v1764_v51  ;;  %vm1843_vm14 = vcmp.ge.f32.partialorder %v1839_v52, %v1841_v55 }
0x1208   : > { %v4542_v60 = vsel %vm1843_vm14, 1.0, %v5528_v48 }
0x1209   : > { %v1924_v54 = vrot.slane %v1922_v53, 1  ;;  %v1846_v61 = vsub.f32 1.0, %v4542_v60 }
0x120b   : > { %vm1926_vm10 = vcmp.ge.f32.partialorder %v1922_v53, %v1924_v54  ;;  %v1848_v62 = vrot.slane %v1846_v61, 7 }
0x120c   : > { %v4544_v56 = vsel %vm1926_vm10, 1.0, %v5528_v48 }
0x120d   : > { %v1929_v57 = vsub.f32 1.0, %v4544_v56  ;;  %v1850_v63 = vsel %vm1172_vm2, %v4542_v60, %v1848_v62 }
0x120f   : > { %v1931_v58 = vrot.slane %v1929_v57, 7 }
0x1211   : > { %v1933_v59 = vsel %vm1172_vm2, %v4544_v56, %v1931_v58 }
0x1212   : > { %4936 = vmatmul.mubr.msk.f32.vlgmr.msra.gmra.mrb[16].mxu0 %vm330_vm0, %v1933_v59 }
0x1213   : > { %5252 = vmatpush3.bf16.xpose.msk.msra.mxu0 %vm5753_vm13, %v5758_v33  ;;  %4944 = vmatprep.mubr.msk.f32.mxu0 %vm5527_vm12, %v5528_v48 }
0x1214   : > { %4942 = vmatprep.subr.mxu0 %v5528_v48 }
0x121b   : > { %4943 = vmatpush3.xpose.msk.msra.mxu0 %vm330_vm0, %v5529_v39 }
0x121c   : > { %5267 = vmatprep.subr.bf16.mxu0 %v5526_v47 }
0x121e   : > { %4945 = vmatmul.mubr.msk.f32.vlgmr.msra.gmra.mrb[16].mxu0 %vm330_vm0, %v1850_v63 }
0x121f   : > { %5269 = vmatpush3.bf16.msra.mxu0 %v5758_v33  ;;  %4983 = vmatprep.mubr.msk.f32.mxu0 %vm5527_vm12, %v5528_v48 }
0x1220   : > { %5270 = vmatprep.subr.bf16.mxu0 %v5526_v47 }
0x12f1   : > { %v2076_v0 = vpop.f32.mrb[16].mxu0 }
0x12f2   : > { %v2080_v3 = vmax.f32 %v2076_v0, 1.0  ;;  %v4946_v6 = vpop.f32.mrb[17].mxu0  ;;  %vm2088_vm1 = vcmp.gt.f32.partialorder %v2076_v0, 0.0 }
0x12f3   : > { %v2089_v9 = vsel %vm2088_vm1, 1, %v5515_v4 }
0x12f4   : > { %2083 = vperm.xlu0 %5474, %v2080_v3  }
0x12f8   : > { %2091 = vperm.xlu0 %5474, %v2089_v9  }
0x1373   : > { %v2084_v10 = vpop.permute.xlu0 %2083 }
0x1374   : > { %5489 = vrcp.f32 %v2084_v10 }
0x1377   : > { %v2092_v11 = vpop.permute.xlu0 %2091 }
0x1378   : > { %vm2093_vm3 = vcmp.eq.s32.totalorder %v2092_v11, 1 }
0x137e   : > { %v5490_v12 = vpop.eup %5489 }
0x137f   : > { %v2087_v13 = vmul.f32 %v5490_v12, %v2076_v0 }
0x1381   : > { %v2094_v14 = vsel %vm2093_vm3, %v2087_v13, %v1760_v40 }
0x1382   : > { %4952 = vmatmul.mubr.msk.f32.vlgmr.msra.gmra.mrb[10].mxu1 %vm874_vm11, %v2094_v14  ;;  %v2095_v15 = vmul.f32 %v2094_v14, %v2094_v14 }
0x1383   : > { %5258 = vmatpush3.bf16.msra.mxu1 %v5765_v35  ;;  %4958 = vmatprep.mubr.msk.f32.mxu1 %vm5527_vm12, %v5528_v48 }
0x1384   : > { %v2096_v28 = vsel %vm1083_vm15, %v2095_v15, 0.0  ;;  %5259 = vmatprep.subr.bf16.mxu1 %v5526_v47 }
0x1385   : > { %2097 = vadd.xlane.f32.xlu0 %v2096_v28 }
0x1386   : > { %4959 = vmatmul.mubr.msk.f32.vlgmr.msra.gmra.mrb[12].mxu1 %vm874_vm11, %v2094_v14 }
0x1387   : > { %4967 = vmatprep.mubr.msk.f32.mxu1 %vm5527_vm12, %v5528_v48 }
0x138c   : > { %5262 = vmatpush3.bf16.xpose.msk.msra.mxu1 %vm5753_vm13, %v5765_v35 }
0x138d   : > { %4965 = vmatprep.subr.mxu1 %v5528_v48 }
0x1394   : > { %4966 = vmatpush3.xpose.msk.msra.mxu1 %vm330_vm0, %v5529_v39 }
0x1395   : > { %5263 = vmatprep.subr.bf16.mxu1 %v5526_v47 }
0x1412   : > { %v2098_v20 = vpop.xlane.xlu0 %2097 }
0x1455   : > { %v2168_v2 = vpop.f32.mrb[10].mxu1 }
0x1456   : > { %v4953_v16 = vpop.f32.mrb[11].mxu1  ;;  %v2172_v29 = vmul.f32 2.0, %v2168_v2 }
0x1458   : > { %v2173_v21 = vsub.f32 %v2172_v29, %v2098_v20 }
0x1459   : > { %v2251_v17 = vpop.f32.mrb[12].mxu1 }
0x145a   : > { %v2255_v18 = vmul.f32 2.0, %v2251_v17  ;;  %v4960_v19 = vpop.f32.mrb[13].mxu1  ;;  %v2175_v24 = vrot.slane %v2173_v21, 1 }
0x145c   : > { %v2256_v22 = vsub.f32 %v2255_v18, %v2098_v20  ;;  %vm2177_vm5 = vcmp.ge.f32.partialorder %v2173_v21, %v2175_v24 }
0x145d   : > { %v4554_v32 = vsel %vm2177_vm5, 1.0, %v5528_v48 }
0x145e   : > { %v2258_v23 = vrot.slane %v2256_v22, 1  ;;  %v2180_v34 = vsub.f32 1.0, %v4554_v32 }
0x1460   : > { %vm2260_vm4 = vcmp.ge.f32.partialorder %v2256_v22, %v2258_v23  ;;  %v2182_v7 = vrot.slane %v2180_v34, 7 }
0x1461   : > { %v4556_v25 = vsel %vm2260_vm4, 1.0, %v5528_v48 }
0x1462   : > { %v2263_v26 = vsub.f32 1.0, %v4556_v25  ;;  %v2184_v1 = vsel %vm1172_vm2, %v4554_v32, %v2182_v7 }
0x1464   : > { %v2265_v27 = vrot.slane %v2263_v26, 7 }
0x1466   : > { %v2267_v30 = vsel %vm1172_vm2, %v4556_v25, %v2265_v27 }
0x1467   : > { %4968 = vmatmul.mubr.msk.f32.vlgmr.msra.gmra.mrb[14].mxu1 %vm330_vm0, %v2267_v30 }
0x1468   : > { %5266 = vmatpush3.bf16.xpose.msk.msra.mxu1 %vm5753_vm13, %v5758_v33  ;;  %4976 = vmatprep.mubr.msk.f32.mxu1 %vm5527_vm12, %v5528_v48 }
0x1469   : > { %4974 = vmatprep.subr.mxu1 %v5528_v48 }
0x1470   : > { %4975 = vmatpush3.xpose.msk.msra.mxu1 %vm330_vm0, %v5529_v39 }
0x1471   : > { %5281 = vmatprep.subr.bf16.mxu1 %v5526_v47 }
0x1473   : > { %4977 = vmatmul.mubr.msk.f32.vlgmr.msra.gmra.mrb[14].mxu1 %vm330_vm0, %v2184_v1 }
0x1474   : > { %5283 = vmatpush3.bf16.msra.mxu1 %v5758_v33  ;;  %5015 = vmatprep.mubr.msk.f32.mxu1 %vm5527_vm12, %v5528_v48 }
0x1475   : > { %5284 = vmatprep.subr.bf16.mxu1 %v5526_v47 }
0x1546   : > { %v2410_v36 = vpop.f32.mrb[14].mxu1 }
0x1547   : > { %v2414_v49 = vmax.f32 %v2410_v36, 1.0  ;;  %v4978_v50 = vpop.f32.mrb[15].mxu1  ;;  %vm2422_vm6 = vcmp.gt.f32.partialorder %v2410_v36, 0.0 }
0x1548   : > { %v2423_v37 = vsel %vm2422_vm6, 1, %v5515_v4 }
0x1549   : > { %2425 = vperm.xlu0 %5474, %v2423_v37   ;;  %2417 = vperm.xlu1 %5473, %v2414_v49  }
0x15c8   : > { %v2418_v38 = vpop.permute.xlu1 %2417  ;;  %v2426_v40 = vpop.permute.xlu0 %2425 }
0x15c9   : > { %5491 = vrcp.f32 %v2418_v38  ;;  %vm2427_vm7 = vcmp.eq.s32.totalorder %v2426_v40, 1 }
0x15d3   : > { %v5492_v41 = vpop.eup %5491 }
0x15d4   : > { %v2421_v42 = vmul.f32 %v5492_v41, %v2410_v36 }
0x15d6   : > { %v2428_v43 = vsel %vm2427_vm7, %v2421_v42, %v2094_v14 }
0x15d7   : > { %4984 = vmatmul.mubr.msk.f32.vlgmr.msra.gmra.mrb[18].mxu0 %vm874_vm11, %v2428_v43  ;;  %v2429_v5 = vmul.f32 %v2428_v43, %v2428_v43 }
0x15d8   : > { %5272 = vmatpush3.bf16.msra.mxu0 %v5765_v35  ;;  %4990 = vmatprep.mubr.msk.f32.mxu0 %vm5527_vm12, %v5528_v48 }
0x15d9   : > { %v2430_v8 = vsel %vm1083_vm15, %v2429_v5, 0.0  ;;  %5273 = vmatprep.subr.bf16.mxu0 %v5526_v47 }
0x15da   : > { %2431 = vadd.xlane.f32.xlu1 %v2430_v8 }
0x15db   : > { %4991 = vmatmul.mubr.msk.f32.vlgmr.msra.gmra.mrb[20].mxu0 %vm874_vm11, %v2428_v43 }
0x15dc   : > { %4999 = vmatprep.mubr.msk.f32.mxu0 %vm5527_vm12, %v5528_v48 }
0x15e1   : > { %5276 = vmatpush3.bf16.xpose.msk.msra.mxu0 %vm5753_vm13, %v5765_v35 }
0x15e2   : > { %4997 = vmatprep.subr.mxu0 %v5528_v48 }
0x15e9   : > { %4998 = vmatpush3.xpose.msk.msra.mxu0 %vm330_vm0, %v5529_v39 }
0x15ea   : > { %5277 = vmatprep.subr.bf16.mxu0 %v5526_v47 }
0x1667   : > { %v2432_v54 = vpop.xlane.xlu1 %2431 }
0x16aa   : > { %v2502_v44 = vpop.f32.mrb[18].mxu0 }
0x16ab   : > { %v4985_v45 = vpop.f32.mrb[19].mxu0  ;;  %v2506_v46 = vmul.f32 2.0, %v2502_v44 }
0x16ad   : > { %v2507_v55 = vsub.f32 %v2506_v46, %v2432_v54 }
0x16ae   : > { %v2585_v51 = vpop.f32.mrb[20].mxu0 }
0x16af   : > { %v2589_v52 = vmul.f32 2.0, %v2585_v51  ;;  %v4992_v53 = vpop.f32.mrb[21].mxu0  ;;  %v2509_v58 = vrot.slane %v2507_v55, 1 }
0x16b1   : > { %v2590_v56 = vsub.f32 %v2589_v52, %v2432_v54  ;;  %vm2511_vm9 = vcmp.ge.f32.partialorder %v2507_v55, %v2509_v58 }
0x16b2   : > { %v4566_v63 = vsel %vm2511_vm9, 1.0, %v5528_v48 }
0x16b3   : > { %v2592_v57 = vrot.slane %v2590_v56, 1  ;;  %v2514_v0 = vsub.f32 1.0, %v4566_v63 }
0x16b5   : > { %vm2594_vm8 = vcmp.ge.f32.partialorder %v2590_v56, %v2592_v57  ;;  %v2516_v3 = vrot.slane %v2514_v0, 7 }
0x16b6   : > { %v4568_v59 = vsel %vm2594_vm8, 1.0, %v5528_v48 }
0x16b7   : > { %v2597_v60 = vsub.f32 1.0, %v4568_v59  ;;  %v2518_v6 = vsel %vm1172_vm2, %v4566_v63, %v2516_v3 }
0x16b9   : > { %v2599_v61 = vrot.slane %v2597_v60, 7 }
0x16bb   : > { %v2601_v62 = vsel %vm1172_vm2, %v4568_v59, %v2599_v61 }
0x16bc   : > { %5000 = vmatmul.mubr.msk.f32.vlgmr.msra.gmra.mrb[22].mxu0 %vm330_vm0, %v2601_v62 }
0x16bd   : > { %5280 = vmatpush3.bf16.xpose.msk.msra.mxu0 %vm5753_vm13, %v5758_v33  ;;  %5008 = vmatprep.mubr.msk.f32.mxu0 %vm5527_vm12, %v5528_v48 }
0x16be   : > { %5006 = vmatprep.subr.mxu0 %v5528_v48 }
0x16c5   : > { %5007 = vmatpush3.xpose.msk.msra.mxu0 %vm330_vm0, %v5529_v39 }
0x16c6   : > { %5295 = vmatprep.subr.bf16.mxu0 %v5526_v47 }
0x16c8   : > { %5009 = vmatmul.mubr.msk.f32.vlgmr.msra.gmra.mrb[22].mxu0 %vm330_vm0, %v2518_v6 }
0x16c9   : > { %5297 = vmatpush3.bf16.msra.mxu0 %v5758_v33  ;;  %5047 = vmatprep.mubr.msk.f32.mxu0 %vm5527_vm12, %v5528_v48 }
0x16ca   : > { %5298 = vmatprep.subr.bf16.mxu0 %v5526_v47 }
0x179b   : > { %v2744_v9 = vpop.f32.mrb[22].mxu0 }
0x179c   : > { %v2748_v10 = vmax.f32 %v2744_v9, 1.0  ;;  %v5010_v11 = vpop.f32.mrb[23].mxu0  ;;  %vm2756_vm10 = vcmp.gt.f32.partialorder %v2744_v9, 0.0 }
0x179d   : > { %v2757_v12 = vsel %vm2756_vm10, 1, %v5515_v4 }
0x179e   : > { %2751 = vperm.xlu0 %5474, %v2748_v10  }
0x17a2   : > { %2759 = vperm.xlu0 %5474, %v2757_v12  }
0x181d   : > { %v2752_v13 = vpop.permute.xlu0 %2751 }
0x181e   : > { %5493 = vrcp.f32 %v2752_v13 }
0x1821   : > { %v2760_v14 = vpop.permute.xlu0 %2759 }
0x1822   : > { %vm2761_vm14 = vcmp.eq.s32.totalorder %v2760_v14, 1 }
0x1828   : > { %v5494_v15 = vpop.eup %5493 }
0x1829   : > { %v2755_v28 = vmul.f32 %v5494_v15, %v2744_v9 }
0x182b   : > { %v2762_v2 = vsel %vm2761_vm14, %v2755_v28, %v2428_v43 }
0x182c   : > { %5016 = vmatmul.mubr.msk.f32.vlgmr.msra.gmra.mrb[16].mxu1 %vm874_vm11, %v2762_v2  ;;  %v2763_v16 = vmul.f32 %v2762_v2, %v2762_v2 }
0x182d   : > { %5286 = vmatpush3.bf16.msra.mxu1 %v5765_v35  ;;  %5022 = vmatprep.mubr.msk.f32.mxu1 %vm5527_vm12, %v5528_v48 }
0x182e   : > { %v2764_v29 = vsel %vm1083_vm15, %v2763_v16, 0.0  ;;  %5287 = vmatprep.subr.bf16.mxu1 %v5526_v47 }
0x182f   : > { %2765 = vadd.xlane.f32.xlu0 %v2764_v29 }
0x1830   : > { %5023 = vmatmul.mubr.msk.f32.vlgmr.msra.gmra.mrb[18].mxu1 %vm874_vm11, %v2762_v2 }
0x1831   : > { %5031 = vmatprep.mubr.msk.f32.mxu1 %vm5527_vm12, %v5528_v48 }
0x1836   : > { %5290 = vmatpush3.bf16.xpose.msk.msra.mxu1 %vm5753_vm13, %v5765_v35 }
0x1837   : > { %5029 = vmatprep.subr.mxu1 %v5528_v48 }
0x183e   : > { %5030 = vmatpush3.xpose.msk.msra.mxu1 %vm330_vm0, %v5529_v39 }
0x183f   : > { %5291 = vmatprep.subr.bf16.mxu1 %v5526_v47 }
0x18bc   : > { %v2766_v23 = vpop.xlane.xlu0 %2765 }
0x18ff   : > { %v2836_v17 = vpop.f32.mrb[16].mxu1 }
0x1900   : > { %v5017_v18 = vpop.f32.mrb[17].mxu1  ;;  %v2840_v19 = vmul.f32 2.0, %v2836_v17 }
0x1902   : > { %v2841_v24 = vsub.f32 %v2840_v19, %v2766_v23 }
0x1903   : > { %v2919_v20 = vpop.f32.mrb[18].mxu1 }
0x1904   : > { %v2923_v21 = vmul.f32 2.0, %v2919_v20  ;;  %v5024_v22 = vpop.f32.mrb[19].mxu1  ;;  %v2843_v27 = vrot.slane %v2841_v24, 1 }
0x1906   : > { %v2924_v25 = vsub.f32 %v2923_v21, %v2766_v23  ;;  %vm2845_vm3 = vcmp.ge.f32.partialorder %v2841_v24, %v2843_v27 }
0x1907   : > { %v4578_v1 = vsel %vm2845_vm3, 1.0, %v5528_v48 }
0x1908   : > { %v2926_v26 = vrot.slane %v2924_v25, 1  ;;  %v2848_v36 = vsub.f32 1.0, %v4578_v1 }
0x190a   : > { %vm2928_vm1 = vcmp.ge.f32.partialorder %v2924_v25, %v2926_v26  ;;  %v2850_v49 = vrot.slane %v2848_v36, 7 }
0x190b   : > { %v4580_v30 = vsel %vm2928_vm1, 1.0, %v5528_v48 }
0x190c   : > { %v2931_v32 = vsub.f32 1.0, %v4580_v30  ;;  %v2852_v50 = vsel %vm1172_vm2, %v4578_v1, %v2850_v49 }
0x190e   : > { %v2933_v34 = vrot.slane %v2931_v32, 7 }
0x1910   : > { %v2935_v7 = vsel %vm1172_vm2, %v4580_v30, %v2933_v34 }
0x1911   : > { %5032 = vmatmul.mubr.msk.f32.vlgmr.msra.gmra.mrb[20].mxu1 %vm330_vm0, %v2935_v7 }
0x1912   : > { %5294 = vmatpush3.bf16.xpose.msk.msra.mxu1 %vm5753_vm13, %v5758_v33  ;;  %5040 = vmatprep.mubr.msk.f32.mxu1 %vm5527_vm12, %v5528_v48 }
0x1913   : > { %5038 = vmatprep.subr.mxu1 %v5528_v48 }
0x191a   : > { %5039 = vmatpush3.xpose.msk.msra.mxu1 %vm330_vm0, %v5529_v39 }
0x191b   : > { %5309 = vmatprep.subr.bf16.mxu1 %v5526_v47 }
0x191d   : > { %5041 = vmatmul.mubr.msk.f32.vlgmr.msra.gmra.mrb[20].mxu1 %vm330_vm0, %v2852_v50 }
0x191e   : > { %5311 = vmatpush3.bf16.msra.mxu1 %v5758_v33  ;;  %5079 = vmatprep.mubr.msk.f32.mxu1 %vm5527_vm12, %v5528_v48 }
0x191f   : > { %5312 = vmatprep.subr.bf16.mxu1 %v5526_v47 }
0x19f0   : > { %v3078_v37 = vpop.f32.mrb[20].mxu1 }
0x19f1   : > { %v3082_v38 = vmax.f32 %v3078_v37, 1.0  ;;  %v5042_v40 = vpop.f32.mrb[21].mxu1  ;;  %vm3090_vm4 = vcmp.gt.f32.partialorder %v3078_v37, 0.0 }
0x19f2   : > { %v3091_v41 = vsel %vm3090_vm4, 1, %v5515_v4 }
0x19f3   : > { %3085 = vperm.xlu1 %5473, %v3082_v38  }
0x19f7   : > { %3093 = vperm.xlu1 %5473, %v3091_v41  }
0x1a72   : > { %v3086_v42 = vpop.permute.xlu1 %3085 }
0x1a73   : > { %5495 = vrcp.f32 %v3086_v42 }
0x1a76   : > { %v3094_v43 = vpop.permute.xlu1 %3093 }
0x1a77   : > { %vm3095_vm5 = vcmp.eq.s32.totalorder %v3094_v43, 1 }
0x1a7d   : > { %v5496_v5 = vpop.eup %5495 }
0x1a7e   : > { %v3089_v8 = vmul.f32 %v5496_v5, %v3078_v37 }
0x1a80   : > { %v3096_v44 = vsel %vm3095_vm5, %v3089_v8, %v2762_v2 }
0x1a81   : > { %5048 = vmatmul.mubr.msk.f32.vlgmr.msra.gmra.mrb[24].mxu0 %vm874_vm11, %v3096_v44  ;;  %v3097_v45 = vmul.f32 %v3096_v44, %v3096_v44 }
0x1a82   : > { %5300 = vmatpush3.bf16.msra.mxu0 %v5765_v35  ;;  %5054 = vmatprep.mubr.msk.f32.mxu0 %vm5527_vm12, %v5528_v48 }
0x1a83   : > { %v3098_v46 = vsel %vm1083_vm15, %v3097_v45, 0.0  ;;  %5301 = vmatprep.subr.bf16.mxu0 %v5526_v47 }
0x1a84   : > { %3099 = vadd.xlane.f32.xlu1 %v3098_v46 }
0x1a85   : > { %5055 = vmatmul.mubr.msk.f32.vlgmr.msra.gmra.mrb[26].mxu0 %vm874_vm11, %v3096_v44 }
0x1a86   : > { %5063 = vmatprep.mubr.msk.f32.mxu0 %vm5527_vm12, %v5528_v48 }
0x1a8b   : > { %5304 = vmatpush3.bf16.xpose.msk.msra.mxu0 %vm5753_vm13, %v5765_v35 }
0x1a8c   : > { %5061 = vmatprep.subr.mxu0 %v5528_v48 }
0x1a93   : > { %5062 = vmatpush3.xpose.msk.msra.mxu0 %vm330_vm0, %v5529_v39 }
0x1a94   : > { %5305 = vmatprep.subr.bf16.mxu0 %v5526_v47 }
0x1b11   : > { %v3100_v57 = vpop.xlane.xlu1 %3099 }
0x1b54   : > { %v3170_v51 = vpop.f32.mrb[24].mxu0 }
0x1b55   : > { %v5049_v52 = vpop.f32.mrb[25].mxu0  ;;  %v3174_v53 = vmul.f32 2.0, %v3170_v51 }
0x1b57   : > { %v3175_v58 = vsub.f32 %v3174_v53, %v3100_v57 }
0x1b58   : > { %v3253_v54 = vpop.f32.mrb[26].mxu0 }
0x1b59   : > { %v3257_v55 = vmul.f32 2.0, %v3253_v54  ;;  %v5056_v56 = vpop.f32.mrb[27].mxu0  ;;  %v3177_v61 = vrot.slane %v3175_v58, 1 }
0x1b5b   : > { %v3258_v59 = vsub.f32 %v3257_v55, %v3100_v57  ;;  %vm3179_vm7 = vcmp.ge.f32.partialorder %v3175_v58, %v3177_v61 }
0x1b5c   : > { %v4590_v6 = vsel %vm3179_vm7, 1.0, %v5528_v48 }
0x1b5d   : > { %v3260_v60 = vrot.slane %v3258_v59, 1  ;;  %v3182_v9 = vsub.f32 1.0, %v4590_v6 }
0x1b5f   : > { %vm3262_vm6 = vcmp.ge.f32.partialorder %v3258_v59, %v3260_v60  ;;  %v3184_v10 = vrot.slane %v3182_v9, 7 }
0x1b60   : > { %v4592_v62 = vsel %vm3262_vm6, 1.0, %v5528_v48 }
0x1b61   : > { %v3265_v63 = vsub.f32 1.0, %v4592_v62  ;;  %v3186_v11 = vsel %vm1172_vm2, %v4590_v6, %v3184_v10 }
0x1b63   : > { %v3267_v0 = vrot.slane %v3265_v63, 7 }
0x1b65   : > { %v3269_v3 = vsel %vm1172_vm2, %v4592_v62, %v3267_v0 }
0x1b66   : > { %5064 = vmatmul.mubr.msk.f32.vlgmr.msra.gmra.mrb[28].mxu0 %vm330_vm0, %v3269_v3 }
0x1b67   : > { %5308 = vmatpush3.bf16.xpose.msk.msra.mxu0 %vm5753_vm13, %v5758_v33  ;;  %5072 = vmatprep.mubr.msk.f32.mxu0 %vm5527_vm12, %v5528_v48 }
0x1b68   : > { %5070 = vmatprep.subr.mxu0 %v5528_v48 }
0x1b6f   : > { %5071 = vmatpush3.xpose.msk.msra.mxu0 %vm330_vm0, %v5529_v39 }
0x1b70   : > { %5323 = vmatprep.subr.bf16.mxu0 %v5526_v47 }
0x1b72   : > { %5073 = vmatmul.mubr.msk.f32.vlgmr.msra.gmra.mrb[28].mxu0 %vm330_vm0, %v3186_v11 }
0x1b73   : > { %5325 = vmatpush3.bf16.msra.mxu0 %v5758_v33  ;;  %5111 = vmatprep.mubr.msk.f32.mxu0 %vm5527_vm12, %v5528_v48 }
0x1b74   : > { %5326 = vmatprep.subr.bf16.mxu0 %v5526_v47 }
0x1c45   : > { %v3412_v12 = vpop.f32.mrb[28].mxu0 }
0x1c46   : > { %v3416_v13 = vmax.f32 %v3412_v12, 1.0  ;;  %v5074_v14 = vpop.f32.mrb[29].mxu0  ;;  %vm3424_vm8 = vcmp.gt.f32.partialorder %v3412_v12, 0.0 }
0x1c47   : > { %v3425_v15 = vsel %vm3424_vm8, 1, %v5515_v4 }
0x1c48   : > { %3419 = vperm.xlu0 %5474, %v3416_v13  }
0x1c4c   : > { %3427 = vperm.xlu0 %5474, %v3425_v15  }
0x1cc7   : > { %v3420_v28 = vpop.permute.xlu0 %3419 }
0x1cc8   : > { %5497 = vrcp.f32 %v3420_v28 }
0x1ccb   : > { %v3428_v2 = vpop.permute.xlu0 %3427 }
0x1ccc   : > { %vm3429_vm9 = vcmp.eq.s32.totalorder %v3428_v2, 1 }
0x1cd2   : > { %v5498_v16 = vpop.eup %5497 }
0x1cd3   : > { %v3423_v29 = vmul.f32 %v5498_v16, %v3412_v12 }
0x1cd5   : > { %v3430_v17 = vsel %vm3429_vm9, %v3423_v29, %v3096_v44 }
0x1cd6   : > { %5080 = vmatmul.mubr.msk.f32.vlgmr.msra.gmra.mrb[22].mxu1 %vm874_vm11, %v3430_v17  ;;  %v3431_v18 = vmul.f32 %v3430_v17, %v3430_v17 }
0x1cd7   : > { %5314 = vmatpush3.bf16.msra.mxu1 %v5765_v35  ;;  %5086 = vmatprep.mubr.msk.f32.mxu1 %vm5527_vm12, %v5528_v48 }
0x1cd8   : > { %v3432_v19 = vsel %vm1083_vm15, %v3431_v18, 0.0  ;;  %5315 = vmatprep.subr.bf16.mxu1 %v5526_v47 }
0x1cd9   : > { %3433 = vadd.xlane.f32.xlu0 %v3432_v19 }
0x1cda   : > { %5087 = vmatmul.mubr.msk.f32.vlgmr.msra.gmra.mrb[24].mxu1 %vm874_vm11, %v3430_v17 }
0x1cdb   : > { %5095 = vmatprep.mubr.msk.f32.mxu1 %vm5527_vm12, %v5528_v48 }
0x1ce0   : > { %5318 = vmatpush3.bf16.xpose.msk.msra.mxu1 %vm5753_vm13, %v5765_v35 }
0x1ce1   : > { %5093 = vmatprep.subr.mxu1 %v5528_v48 }
0x1ce8   : > { %5094 = vmatpush3.xpose.msk.msra.mxu1 %vm330_vm0, %v5529_v39 }
0x1ce9   : > { %5319 = vmatprep.subr.bf16.mxu1 %v5526_v47 }
0x1d66   : > { %v3434_v26 = vpop.xlane.xlu0 %3433 }
0x1da9   : > { %v3504_v20 = vpop.f32.mrb[22].mxu1 }
0x1daa   : > { %v5081_v21 = vpop.f32.mrb[23].mxu1  ;;  %v3508_v22 = vmul.f32 2.0, %v3504_v20 }
0x1dac   : > { %v3509_v27 = vsub.f32 %v3508_v22, %v3434_v26 }
0x1dad   : > { %v3587_v23 = vpop.f32.mrb[24].mxu1 }
0x1dae   : > { %v3591_v24 = vmul.f32 2.0, %v3587_v23  ;;  %v5088_v25 = vpop.f32.mrb[25].mxu1  ;;  %v3511_v34 = vrot.slane %v3509_v27, 1 }
0x1db0   : > { %v3592_v30 = vsub.f32 %v3591_v24, %v3434_v26  ;;  %vm3513_vm14 = vcmp.ge.f32.partialorder %v3509_v27, %v3511_v34 }
0x1db1   : > { %v4602_v50 = vsel %vm3513_vm14, 1.0, %v5528_v48 }
0x1db2   : > { %v3594_v32 = vrot.slane %v3592_v30, 1  ;;  %v3516_v37 = vsub.f32 1.0, %v4602_v50 }
0x1db4   : > { %vm3596_vm10 = vcmp.ge.f32.partialorder %v3592_v30, %v3594_v32  ;;  %v3518_v38 = vrot.slane %v3516_v37, 7 }
0x1db5   : > { %v4604_v7 = vsel %vm3596_vm10, 1.0, %v5528_v48 }
0x1db6   : > { %v3599_v1 = vsub.f32 1.0, %v4604_v7  ;;  %v3520_v40 = vsel %vm1172_vm2, %v4602_v50, %v3518_v38 }
0x1db8   : > { %v3601_v36 = vrot.slane %v3599_v1, 7 }
0x1dba   : > { %v3603_v49 = vsel %vm1172_vm2, %v4604_v7, %v3601_v36 }
0x1dbb   : > { %5096 = vmatmul.mubr.msk.f32.vlgmr.msra.gmra.mrb[26].mxu1 %vm330_vm0, %v3603_v49 }
0x1dbc   : > { %5322 = vmatpush3.bf16.xpose.msk.msra.mxu1 %vm5753_vm13, %v5758_v33  ;;  %5104 = vmatprep.mubr.msk.f32.mxu1 %vm5527_vm12, %v5528_v48 }
0x1dbd   : > { %5102 = vmatprep.subr.mxu1 %v5528_v48 }
0x1dc4   : > { %5103 = vmatpush3.xpose.msk.msra.mxu1 %vm330_vm0, %v5529_v39 }
0x1dc5   : > { %5337 = vmatprep.subr.bf16.mxu1 %v5526_v47 }
0x1dc7   : > { %5105 = vmatmul.mubr.msk.f32.vlgmr.msra.gmra.mrb[26].mxu1 %vm330_vm0, %v3520_v40 }
0x1dc8   : > { %5339 = vmatpush3.bf16.msra.mxu1 %v5758_v33  ;;  %5143 = vmatprep.mubr.msk.f32.mxu1 %vm5527_vm12, %v5528_v48 }
0x1dc9   : > { %5340 = vmatprep.subr.bf16.mxu1 %v5526_v47 }
0x1e9a   : > { %v3746_v41 = vpop.f32.mrb[26].mxu1 }
0x1e9b   : > { %v3750_v42 = vmax.f32 %v3746_v41, 1.0  ;;  %v5106_v43 = vpop.f32.mrb[27].mxu1  ;;  %vm3758_vm1 = vcmp.gt.f32.partialorder %v3746_v41, 0.0 }
0x1e9c   : > { %v3759_v5 = vsel %vm3758_vm1, 1, %v5515_v4 }
0x1e9d   : > { %3753 = vperm.xlu1 %5473, %v3750_v42  }
0x1ea1   : > { %3761 = vperm.xlu1 %5473, %v3759_v5  }
0x1f1c   : > { %v3754_v8 = vpop.permute.xlu1 %3753 }
0x1f1d   : > { %5499 = vrcp.f32 %v3754_v8 }
0x1f20   : > { %v3762_v44 = vpop.permute.xlu1 %3761 }
0x1f21   : > { %vm3763_vm3 = vcmp.eq.s32.totalorder %v3762_v44, 1 }
0x1f27   : > { %v5500_v45 = vpop.eup %5499 }
0x1f28   : > { %v3757_v46 = vmul.f32 %v5500_v45, %v3746_v41 }
0x1f2a   : > { %v3764_v51 = vsel %vm3763_vm3, %v3757_v46, %v3430_v17 }
0x1f2b   : > { %5112 = vmatmul.mubr.msk.f32.vlgmr.msra.gmra.mrb[30].mxu0 %vm874_vm11, %v3764_v51  ;;  %v3765_v52 = vmul.f32 %v3764_v51, %v3764_v51 }
0x1f2c   : > { %5328 = vmatpush3.bf16.msra.mxu0 %v5765_v35  ;;  %5118 = vmatprep.mubr.msk.f32.mxu0 %vm5527_vm12, %v5528_v48 }
0x1f2d   : > { %v3766_v53 = vsel %vm1083_vm15, %v3765_v52, 0.0  ;;  %5329 = vmatprep.subr.bf16.mxu0 %v5526_v47 }
0x1f2e   : > { %3767 = vadd.xlane.f32.xlu1 %v3766_v53 }
0x1f2f   : > { %5119 = vmatmul.mubr.msk.f32.vlgmr.msra.gmra.mrb[32].mxu0 %vm874_vm11, %v3764_v51 }
0x1f30   : > { %5127 = vmatprep.mubr.msk.f32.mxu0 %vm5527_vm12, %v5528_v48 }
0x1f35   : > { %5332 = vmatpush3.bf16.xpose.msk.msra.mxu0 %vm5753_vm13, %v5765_v35 }
0x1f36   : > { %5125 = vmatprep.subr.mxu0 %v5528_v48 }
0x1f3d   : > { %5126 = vmatpush3.xpose.msk.msra.mxu0 %vm330_vm0, %v5529_v39 }
0x1f3e   : > { %5333 = vmatprep.subr.bf16.mxu0 %v5526_v47 }
0x1fbb   : > { %v3768_v60 = vpop.xlane.xlu1 %3767 }
0x1ffe   : > { %v3838_v54 = vpop.f32.mrb[30].mxu0 }
0x1fff   : > { %v5113_v55 = vpop.f32.mrb[31].mxu0  ;;  %v3842_v56 = vmul.f32 2.0, %v3838_v54 }
0x2001   : > { %v3843_v61 = vsub.f32 %v3842_v56, %v3768_v60 }
0x2002   : > { %v3921_v57 = vpop.f32.mrb[32].mxu0 }
0x2003   : > { %v3925_v58 = vmul.f32 2.0, %v3921_v57  ;;  %v5120_v59 = vpop.f32.mrb[33].mxu0  ;;  %v3845_v0 = vrot.slane %v3843_v61, 1 }
0x2005   : > { %v3926_v62 = vsub.f32 %v3925_v58, %v3768_v60  ;;  %vm3847_vm5 = vcmp.ge.f32.partialorder %v3843_v61, %v3845_v0 }
0x2006   : > { %v4614_v11 = vsel %vm3847_vm5, 1.0, %v5528_v48 }
0x2007   : > { %v3928_v63 = vrot.slane %v3926_v62, 1  ;;  %v3850_v12 = vsub.f32 1.0, %v4614_v11 }
0x2009   : > { %vm3930_vm4 = vcmp.ge.f32.partialorder %v3926_v62, %v3928_v63  ;;  %v3852_v13 = vrot.slane %v3850_v12, 7 }
0x200a   : > { %v4616_v3 = vsel %vm3930_vm4, 1.0, %v5528_v48 }
0x200b   : > { %v3933_v6 = vsub.f32 1.0, %v4616_v3  ;;  %v3854_v14 = vsel %vm1172_vm2, %v4614_v11, %v3852_v13 }
0x200d   : > { %v3935_v9 = vrot.slane %v3933_v6, 7 }
0x200f   : > { %v3937_v10 = vsel %vm1172_vm2, %v4616_v3, %v3935_v9 }
0x2010   : > { %5128 = vmatmul.mubr.msk.f32.vlgmr.msra.gmra.mrb[34].mxu0 %vm330_vm0, %v3937_v10 }
0x2011   : > { %5336 = vmatpush3.bf16.xpose.msk.msra.mxu0 %vm5753_vm13, %v5758_v33  ;;  %5136 = vmatprep.mubr.msk.f32.mxu0 %vm5527_vm12, %v5528_v48 }
0x2012   : > { %5134 = vmatprep.subr.mxu0 %v5528_v48 }
0x2019   : > { %5135 = vmatpush3.xpose.msk.msra.mxu0 %vm330_vm0, %v5529_v39 }
0x201c   : > { %5137 = vmatmul.mubr.msk.f32.vlgmr.msra.gmra.mrb[34].mxu0 %vm330_vm0, %v3854_v14 }
0x20ef   : > { %v4080_v15 = vpop.f32.mrb[34].mxu0 }
0x20f0   : > { %v4084_v28 = vmax.f32 %v4080_v15, 1.0  ;;  %v5138_v2 = vpop.f32.mrb[35].mxu0  ;;  %vm4092_vm6 = vcmp.gt.f32.partialorder %v4080_v15, 0.0 }
0x20f1   : > { %v4093_v16 = vsel %vm4092_vm6, 1, %v5515_v4 }
0x20f2   : > { %4087 = vperm.xlu0 %5474, %v4084_v28  }
0x20f6   : > { %4095 = vperm.xlu0 %5474, %v4093_v16  }
0x2171   : > { %v4088_v29 = vpop.permute.xlu0 %4087 }
0x2172   : > { %5501 = vrcp.f32 %v4088_v29 }
0x2175   : > { %v4096_v17 = vpop.permute.xlu0 %4095 }
0x2176   : > { %vm4097_vm7 = vcmp.eq.s32.totalorder %v4096_v17, 1 }
0x217c   : > { %v5502_v18 = vpop.eup %5501 }
0x217d   : > { %v4091_v19 = vmul.f32 %v5502_v18, %v4080_v15 }
0x217f   : > { %v4098_v20 = vsel %vm4097_vm7, %v4091_v19, %v3764_v51 }
0x2180   : > { %5144 = vmatmul.mubr.msk.f32.vlgmr.msra.gmra.mrb[28].mxu1 %vm874_vm11, %v4098_v20  ;;  %v4099_v21 = vmul.f32 %v4098_v20, %v4098_v20 }
0x2181   : > { %5342 = vmatpush3.bf16.msra.mxu1 %v5765_v35  ;;  %5150 = vmatprep.mubr.msk.f32.mxu1 %vm5527_vm12, %v5528_v48 }
0x2182   : > { %v4100_v22 = vsel %vm1083_vm15, %v4099_v21, 0.0  ;;  %5343 = vmatprep.subr.bf16.mxu1 %v5526_v47 }
0x2183   : > { %4101 = vadd.xlane.f32.xlu0 %v4100_v22 }
0x2184   : > { %5151 = vmatmul.mubr.msk.f32.vlgmr.msra.gmra.mrb[30].mxu1 %vm874_vm11, %v4098_v20 }
0x2185   : > { %5159 = vmatprep.mubr.msk.f32.mxu1 %vm5527_vm12, %v5528_v48 }
0x218a   : > { %5346 = vmatpush3.bf16.xpose.msk.msra.mxu1 %vm5753_vm13, %v5765_v35 }
0x218b   : > { %5157 = vmatprep.subr.mxu1 %v5528_v48 }
0x2192   : > { %5158 = vmatpush3.xpose.msk.msra.mxu1 %vm330_vm0, %v5529_v39 }
0x2193   : > { %5347 = vmatprep.subr.bf16.mxu1 %v5526_v47 }
0x2210   : > { %v4102_v32 = vpop.xlane.xlu0 %4101 }
0x2253   : > { %v4172_v23 = vpop.f32.mrb[28].mxu1 }
0x2254   : > { %v5145_v24 = vpop.f32.mrb[29].mxu1  ;;  %v4176_v25 = vmul.f32 2.0, %v4172_v23 }
0x2256   : > { %v4177_v34 = vsub.f32 %v4176_v25, %v4102_v32 }
0x2257   : > { %v4255_v26 = vpop.f32.mrb[30].mxu1 }
0x2258   : > { %v4259_v27 = vmul.f32 2.0, %v4255_v26  ;;  %v5152_v30 = vpop.f32.mrb[31].mxu1  ;;  %v4179_v36 = vrot.slane %v4177_v34, 1 }
0x225a   : > { %v4260_v7 = vsub.f32 %v4259_v27, %v4102_v32  ;;  %vm4181_vm8 = vcmp.ge.f32.partialorder %v4177_v34, %v4179_v36 }
0x225b   : > { %v4626_v47 = vsel %vm4181_vm8, 1.0, %v5528_v48 }
0x225c   : > { %v4262_v1 = vrot.slane %v4260_v7, 1  ;;  %v4184_v38 = vsub.f32 1.0, %v4626_v47 }
0x225e   : > { %vm4264_vm11 = vcmp.ge.f32.partialorder %v4260_v7, %v4262_v1  ;;  %v4186_v40 = vrot.slane %v4184_v38, 7 }
0x225f   : > { %v4628_v35 = vsel %vm4264_vm11, 1.0, %v5528_v48 }
0x2260   : > { %v4267_v49 = vsub.f32 1.0, %v4628_v35  ;;  %v4188_v41 = vsel %vm1172_vm2, %v4626_v47, %v4186_v40 }
0x2262   : > { %v4269_v50 = vrot.slane %v4267_v49, 7 }
0x2264   : > { %v4271_v37 = vsel %vm1172_vm2, %v4628_v35, %v4269_v50 }
0x2265   : > { %5160 = vmatmul.mubr.msk.f32.vlgmr.msra.gmra.mrb[32].mxu1 %vm330_vm0, %v4271_v37 }
0x2266   : > { %5350 = vmatpush3.bf16.xpose.msk.msra.mxu1 %vm5753_vm13, %v5758_v33  ;;  %5168 = vmatprep.mubr.msk.f32.mxu1 %vm5527_vm12, %v5528_v48 }
0x2267   : > { %5166 = vmatprep.subr.mxu1 %v5528_v48 }
0x226e   : > { %5167 = vmatpush3.xpose.msk.msra.mxu1 %vm330_vm0, %v5529_v39 }
0x2271   : > { %5169 = vmatmul.mubr.msk.f32.vlgmr.msra.gmra.mrb[32].mxu1 %vm330_vm0, %v4188_v41 }
0x2344   : > { %v4414_v42 = vpop.f32.mrb[32].mxu1 }
0x2345   : > { %v4418_v43 = vmax.f32 %v4414_v42, 1.0  ;;  %v5170_v5 = vpop.f32.mrb[33].mxu1  ;;  %vm4426_vm9 = vcmp.gt.f32.partialorder %v4414_v42, 0.0 }
0x2346   : > { %v4427_v31 = vsel %vm4426_vm9, 1, %v5515_v4 }
0x2347   : > { %4421 = vperm.xlu1 %5473, %v4418_v43  }
0x234b   : > { %4429 = vperm.xlu1 %5473, %v4427_v31  }
0x23c6   : > { %v4422_v33 = vpop.permute.xlu1 %4421 }
0x23c7   : > { %5503 = vrcp.f32 %v4422_v33 }
0x23ca   : > { %v4430_v48 = vpop.permute.xlu1 %4429 }
0x23cb   : > { %vm4431_vm12 = vcmp.eq.s32.totalorder %v4430_v48, 1 }
0x23d1   : > { %v5504_v8 = vpop.eup %5503 }
0x23d2   : > { %v4425_v39 = vmul.f32 %v5504_v8, %v4414_v42 }
0x23d4   : > { %v4432_v44 = vsel %vm4431_vm12, %v4425_v39, %v4098_v20 }
0x23d5   : > { %4433 = vst.msk [vmem:[%s216_s20] sm:$0x3] %vm1083_vm15, %v4432_v44 }
0x23d6 PF: > { %s15_s18 = sadd.s32 1, %s5511_s18  }
0x23d7   : > { %p12_p4 = scmp.ge.s32.totalorder %s15_s18, 4  }
0x23d9   :  { %14 = sbr.rel (!%p12_p4) target bundleno = 1 (0x1), region = 73 }

</bundles_post_ra>
